<compile_context>
chip_gen: v7x
topology: tpu7x:2x2x1
jax: 0.10.0
libtpu: 0.0.40
codegen_flags: <defaults>
</compile_context>

<pallas_src>
import jax
import jax.numpy as jnp
from jax.experimental import pallas as pl
from jax.experimental.pallas import tpu as pltpu

EPS = 1e-5


def _fused_kernel(x_ref, res_ref, w1_ref, gamma_ref, beta_ref, w2_hbm,
                  o_ref, w2_vmem, w2_sem):
    # x_ref, res_ref : (C, M) f32   -- NCHW flattened to channels x (N*H*W)
    # w1_ref         : (C, C) bf16  (torch conv 1x1 layout, used directly), in VMEM
    # w2_hbm         : (C, C) bf16  raw HBM ref (memory_space=pl.ANY)
    # gamma/beta     : (C, 1) f32
    # o_ref          : (C, M) f32
    # w2_vmem        : (C, C) bf16 VMEM scratch, w2_sem: DMA semaphore

    # Kick off the W2 transfer immediately; it is not needed until the last op,
    # so it overlaps the first matmul + BN below.
    w2_copy = pltpu.make_async_copy(w2_hbm, w2_vmem, w2_sem)
    w2_copy.start()

    x = x_ref[...]
    m = x.shape[1]
    inv_m = 1.0 / m

    # Conv2d33 (1x1, no bias):  y1 = W1 @ X   (bf16 MXU inputs, f32 accumulate)
    y1 = jnp.dot(w1_ref[...], x.astype(jnp.bfloat16),
                 preferred_element_type=jnp.float32)  # (C, M) f32

    # BatchNorm2d, training mode: per-channel batch mean / biased variance.
    # Centered two-pass over the VMEM-resident y1 (cheap VALU, better numerics).
    mean = jnp.sum(y1, axis=1, keepdims=True) * inv_m          # (C, 1)
    d = y1 - mean                                              # (C, M)
    var = jnp.sum(d * d, axis=1, keepdims=True) * inv_m        # (C, 1)
    scale = gamma_ref[...] * jax.lax.rsqrt(var + EPS)          # (C, 1)

    # folded BN affine + residual add + ReLU (all f32)
    y3 = jnp.maximum(res_ref[...] + d * scale + beta_ref[...], 0.0)

    # Conv2d34 (1x1, no bias):  out = W2 @ y3
    w2_copy.wait()
    o_ref[...] = jnp.dot(w2_vmem[...], y3.astype(jnp.bfloat16),
                         preferred_element_type=jnp.float32).astype(o_ref.dtype)


def prepare_params(w1, gamma, beta, w2):
    """One-time parameter prep (outside the per-call path):
    cast conv weights to bf16, reshape BN affine to (C, 1)."""
    C = w1.shape[0]
    return (w1.astype(jnp.bfloat16),
            gamma.reshape(C, 1).astype(jnp.float32),
            beta.reshape(C, 1).astype(jnp.float32),
            w2.astype(jnp.bfloat16))


def fused_block(x101, x89, w1_bf16, gamma2d, beta2d, w2_bf16):
    """x101, x89: (N, C, H, W) f32.  w1_bf16/w2_bf16: (Cout, Cin) bf16 conv weights.
    gamma2d/beta2d: (C, 1) f32 BN affine params."""
    N, C, H, W = x101.shape
    M = N * H * W

    if N == 1:
        # Free reshape: NCHW with N=1 is already channel-major over H*W.
        x_cm = x101.reshape(C, M)
        r_cm = x89.reshape(C, M)
    else:
        # General-N fallback (requires a real transpose). The spec uses N=1.
        x_cm = jnp.transpose(x101, (1, 0, 2, 3)).reshape(C, M)
        r_cm = jnp.transpose(x89, (1, 0, 2, 3)).reshape(C, M)

    vmem = pl.BlockSpec(memory_space=pltpu.MemorySpace.VMEM)
    any_spec = pl.BlockSpec(memory_space=pl.ANY)   # W2 stays in HBM; manual DMA

    flops = 2 * 2 * C * C * M                       # two (C,C)x(C,M) matmuls
    bytes_accessed = (x_cm.size * 4 + r_cm.size * 4          # f32 activations in
                      + w1_bf16.size * 2 + w2_bf16.size * 2  # bf16 weights in
                      + 2 * C * 4                            # BN affine in
                      + C * M * 4)                           # f32 output

    out_cm = pl.pallas_call(
        _fused_kernel,
        out_shape=jax.ShapeDtypeStruct((C, M), jnp.float32),
        in_specs=[vmem, vmem, vmem, vmem, vmem, any_spec],
        out_specs=vmem,
        scratch_shapes=[pltpu.VMEM((C, C), jnp.bfloat16),
                        pltpu.SemaphoreType.DMA(())],
        cost_estimate=pl.CostEstimate(flops=flops, transcendentals=C,
                                      bytes_accessed=bytes_accessed),
    )(x_cm, r_cm, w1_bf16, gamma2d, beta2d, w2_bf16)

    if N == 1:
        return out_cm.reshape(N, C, H, W)
    return jnp.transpose(out_cm.reshape(C, N, H, W), (1, 0, 2, 3))


def _reference_f32(x101, x89, w1, gamma, beta, w2):
    # Pure-JAX f32 reference matching the PyTorch module (train-mode BN).
    N, C, H, W = x101.shape
    x = jnp.transpose(x101, (0, 2, 3, 1)).reshape(-1, C)
    r = jnp.transpose(x89, (0, 2, 3, 1)).reshape(-1, C)
    y1 = x @ w1.T
    mean = y1.mean(axis=0, keepdims=True)
    var = ((y1 - mean) ** 2).mean(axis=0, keepdims=True)
    y2 = (y1 - mean) / jnp.sqrt(var + EPS) * gamma + beta
    y3 = jnp.maximum(r + y2, 0.0)
    out = y3 @ w2.T
    return jnp.transpose(out.reshape(N, H, W, C), (0, 3, 1, 2))


def _reference_bf16(x101, x89, w1_bf16, gamma, beta, w2_bf16):
    # Reference mirroring the kernel numerics (bf16 matmul inputs, f32 accumulation,
    # centered variance) for a tight correctness check of layout / BN / fusion logic.
    N, C, H, W = x101.shape
    x = jnp.transpose(x101, (0, 2, 3, 1)).reshape(-1, C)
    r = jnp.transpose(x89, (0, 2, 3, 1)).reshape(-1, C)
    y1 = jnp.dot(x.astype(jnp.bfloat16), w1_bf16.T,
                 preferred_element_type=jnp.float32)
    mean = y1.mean(axis=0, keepdims=True)
    d = y1 - mean
    var = (d * d).mean(axis=0, keepdims=True)
    scale = gamma * jax.lax.rsqrt(var + EPS)
    y3 = jnp.maximum(r + d * scale + beta, 0.0)
    out = jnp.dot(y3.astype(jnp.bfloat16), w2_bf16.T,
                  preferred_element_type=jnp.float32)
    return jnp.transpose(out.reshape(N, H, W, C), (0, 3, 1, 2))


if __name__ == "__main__":
    N, C, H, W = 1, 320, 14, 14  # shapes implied by the module

    key = jax.random.PRNGKey(0)
    k1, k2, k3, k4, k5, k6 = jax.random.split(key, 6)

    x101 = jax.random.normal(k1, (N, C, H, W), dtype=jnp.float32)
    x89 = jax.random.normal(k2, (N, C, H, W), dtype=jnp.float32)

    # Conv2d(320, 320, 1x1, bias=False) weights: (Cout, Cin)
    w1 = jax.random.normal(k3, (C, C), dtype=jnp.float32) * 0.05
    w2 = jax.random.normal(k4, (C, C), dtype=jnp.float32) * 0.05
    # BatchNorm2d affine params
    gamma = 1.0 + 0.1 * jax.random.normal(k5, (C,), dtype=jnp.float32)
    beta = 0.1 * jax.random.normal(k6, (C,), dtype=jnp.float32)

    # One-time parameter prep (bf16 weights, reshaped BN affine) -- reused per call.
    w1_bf16, gamma2d, beta2d, w2_bf16 = jax.block_until_ready(
        prepare_params(w1, gamma, beta, w2))

    out = jax.block_until_ready(
        fused_block(x101, x89, w1_bf16, gamma2d, beta2d, w2_bf16))
    ref_tight = jax.block_until_ready(
        _reference_bf16(x101, x89, w1_bf16, gamma, beta, w2_bf16))
    ref_f32 = jax.block_until_ready(_reference_f32(x101, x89, w1, gamma, beta, w2))

    assert out.shape == (N, C, H, W)
    # Tight check vs a reference with matching bf16-weight numerics.
    assert jnp.allclose(out, ref_tight, atol=2e-2, rtol=2e-2)
    # Loose check vs the full-f32 reference (bf16 MXU inputs -> ~1e-2 level abs error).
    assert jnp.allclose(out, ref_f32, atol=1e-1, rtol=1e-1)
    print("KERNEL_OK")
</pallas_src>

<mosaic_0001>
module attributes {stable_mosaic.version = 11 : i64} {
  func.func @_fused_kernel(%arg0: memref<320x196xf32, #tpu.memory_space<vmem>>, %arg1: memref<320x196xf32, #tpu.memory_space<vmem>>, %arg2: memref<320x320xbf16, #tpu.memory_space<vmem>>, %arg3: memref<320x1xf32, #tpu.memory_space<vmem>>, %arg4: memref<320x1xf32, #tpu.memory_space<vmem>>, %arg5: memref<320x320xbf16, #tpu.memory_space<any>>, %arg6: memref<320x196xf32, #tpu.memory_space<vmem>>, %arg7: memref<320x320xbf16, #tpu.memory_space<vmem>>, %arg8: memref<!tpu.dma_semaphore, #tpu.memory_space<semaphore_mem>>) attributes {dimension_semantics = [], scalar_prefetch = 0 : i64, scratch_operands = 2 : i64, tpu.core_type = #tpu.core_type<tc>} {
    tpu.enqueue_dma source(%arg5 : memref<320x320xbf16, #tpu.memory_space<any>>) target(%arg7 : memref<320x320xbf16, #tpu.memory_space<vmem>>) target_semaphore(%arg8 : memref<!tpu.dma_semaphore, #tpu.memory_space<semaphore_mem>>)
    %c0 = arith.constant 0 : index
    %c0_0 = arith.constant 0 : index
    %0 = vector.load %arg0[%c0, %c0_0] : memref<320x196xf32, #tpu.memory_space<vmem>>, vector<320x196xf32>
    %c0_1 = arith.constant 0 : index
    %c0_2 = arith.constant 0 : index
    %1 = vector.load %arg2[%c0_1, %c0_2] : memref<320x320xbf16, #tpu.memory_space<vmem>>, vector<320x320xbf16>
    %2 = arith.truncf %0 : vector<320x196xf32> to vector<320x196xbf16>
    %cst = arith.constant dense<0.000000e+00> : vector<320x196xf32>
    %3 = tpu.matmul %1, %2, %cst {dimension_numbers = #tpu.dot_dimension_numbers<[1], [0], [0], [1], [0, 0, 1, 1], [], []>} : vector<320x320xbf16>, vector<320x196xbf16>, vector<320x196xf32> -> vector<320x196xf32>
    %cst_3 = arith.constant dense<0.000000e+00> : vector<320xf32>
    %4 = vector.multi_reduction <add>, %3, %cst_3 [1] : vector<320x196xf32> to vector<320xf32>
    %5 = vector.shape_cast %4 : vector<320xf32> to vector<320x1xf32>
    %cst_4 = arith.constant 0.00510204071 : f32
    %6 = vector.broadcast %cst_4 : f32 to vector<320x1xf32>
    %7 = arith.mulf %5, %6 : vector<320x1xf32>
    %8 = vector.broadcast %7 : vector<320x1xf32> to vector<320x196xf32>
    %9 = arith.subf %3, %8 : vector<320x196xf32>
    %10 = arith.mulf %9, %9 : vector<320x196xf32>
    %cst_5 = arith.constant dense<0.000000e+00> : vector<320xf32>
    %11 = vector.multi_reduction <add>, %10, %cst_5 [1] : vector<320x196xf32> to vector<320xf32>
    %12 = vector.shape_cast %11 : vector<320xf32> to vector<320x1xf32>
    %cst_6 = arith.constant 0.00510204071 : f32
    %13 = vector.broadcast %cst_6 : f32 to vector<320x1xf32>
    %14 = arith.mulf %12, %13 : vector<320x1xf32>
    %c0_7 = arith.constant 0 : index
    %c0_8 = arith.constant 0 : index
    %15 = vector.load %arg3[%c0_7, %c0_8] : memref<320x1xf32, #tpu.memory_space<vmem>>, vector<320x1xf32>
    %cst_9 = arith.constant 9.99999974E-6 : f32
    %16 = vector.broadcast %cst_9 : f32 to vector<320x1xf32>
    %17 = arith.addf %14, %16 : vector<320x1xf32>
    %18 = math.rsqrt %17 : vector<320x1xf32>
    %19 = arith.mulf %15, %18 : vector<320x1xf32>
    %c0_10 = arith.constant 0 : index
    %c0_11 = arith.constant 0 : index
    %20 = vector.load %arg1[%c0_10, %c0_11] : memref<320x196xf32, #tpu.memory_space<vmem>>, vector<320x196xf32>
    %21 = vector.broadcast %19 : vector<320x1xf32> to vector<320x196xf32>
    %22 = arith.mulf %9, %21 : vector<320x196xf32>
    %23 = arith.addf %20, %22 : vector<320x196xf32>
    %c0_12 = arith.constant 0 : index
    %c0_13 = arith.constant 0 : index
    %24 = vector.load %arg4[%c0_12, %c0_13] : memref<320x1xf32, #tpu.memory_space<vmem>>, vector<320x1xf32>
    %25 = vector.broadcast %24 : vector<320x1xf32> to vector<320x196xf32>
    %26 = arith.addf %23, %25 : vector<320x196xf32>
    %cst_14 = arith.constant 0.000000e+00 : f32
    %27 = vector.broadcast %cst_14 : f32 to vector<320x196xf32>
    %28 = arith.maximumf %26, %27 : vector<320x196xf32>
    tpu.wait_dma2 semaphore(%arg8 : memref<!tpu.dma_semaphore, #tpu.memory_space<semaphore_mem>>) src(%arg5 : memref<320x320xbf16, #tpu.memory_space<any>>) dst(%arg7 : memref<320x320xbf16, #tpu.memory_space<vmem>>)
    %c0_15 = arith.constant 0 : index
    %c0_16 = arith.constant 0 : index
    %29 = vector.load %arg7[%c0_15, %c0_16] : memref<320x320xbf16, #tpu.memory_space<vmem>>, vector<320x320xbf16>
    %30 = arith.truncf %28 : vector<320x196xf32> to vector<320x196xbf16>
    %cst_17 = arith.constant dense<0.000000e+00> : vector<320x196xf32>
    %31 = tpu.matmul %29, %30, %cst_17 {dimension_numbers = #tpu.dot_dimension_numbers<[1], [0], [0], [1], [0, 0, 1, 1], [], []>} : vector<320x320xbf16>, vector<320x196xbf16>, vector<320x196xf32> -> vector<320x196xf32>
    %c0_18 = arith.constant 0 : index
    %c0_19 = arith.constant 0 : index
    %32 = vector.load %arg6[%c0_18, %c0_19] : memref<320x196xf32, #tpu.memory_space<vmem>>, vector<320x196xf32>
    tpu.vector_store %arg6[%c0_18, %c0_19], %31 {strides = array<i32>} : memref<320x196xf32, #tpu.memory_space<vmem>>, vector<320x196xf32>,
    return
  }
}

</mosaic_0001>

<bundles_post_ra>
// kernel: tpu_custom_call.1
= control target key start
LH: loop header
LB: loop body
LE: loop exit
PB: predicated region body
PF: predicated region fallthrough
CT: control target
= control target key end

     0   :  { %s7251_s0 = inlined_call_operand.vmem [shape: f32[320,196], index: 0, kind: input, shape index: {}]   ;;  %s7252_s1 = inlined_call_operand.vmem [shape: f32[320,196], index: 1, kind: input, shape index: {}]   ;;  %s7253_s2 = inlined_call_operand.vmem [shape: bf16[320,320], index: 2, kind: input, shape index: {}]   ;;  %s7254_s3 = inlined_call_operand.vmem [shape: f32[320,1], index: 3, kind: input, shape index: {}]   ;;  %s7255_s4 = inlined_call_operand.vmem [shape: f32[320,1], index: 4, kind: input, shape index: {}]   ;;  %s7256_s5 = inlined_call_operand.vmem [shape: bf16[320,320], index: 5, kind: input, shape index: {}]   ;;  %s7257_s6 = inlined_call_operand.vmem [shape: f32[320,196], index: 6, kind: output, shape index: {}]  }
   0x1   :  { %v39_v0 = vld [vmem:[%s7256_s5] sm:$0xf]  ;;  %v41_v1 = vld [vmem:[%s7256_s5 + $0xc] sm:$0xf]  ;;  %v43_v2 = vld [vmem:[%s7256_s5 + $0x4] sm:$0xf] }
   0x2   :  { %40 = vst [vmem:[#allocation2] sm:$0xf] %v39_v0  ;;  %42 = vst [vmem:[#allocation2 + $0x4] sm:$0xf] %v41_v1  ;;  %v45_v3 = vld [vmem:[%s7256_s5 + $0x10] sm:$0xf] }
   0x3   :  { %44 = vst [vmem:[#allocation2 + $0x8] sm:$0xf] %v43_v2  ;;  %v47_v4 = vld [vmem:[%s7256_s5 + $0x8] sm:$0xf]  ;;  %v49_v5 = vld [vmem:[%s7256_s5 + $0x14] sm:$0xff]   ;;  %v61_v10 = vld [vmem:[%s7256_s5 + $0x2c] sm:$0xff]  }
   0x4   :  { %46 = vst [vmem:[#allocation2 + $0xc] sm:$0xf] %v45_v3  ;;  %48 = vst [vmem:[#allocation2 + $0x10] sm:$0xf] %v47_v4  ;;  %v53_v6 = vld [vmem:[%s7256_s5 + $0x24] sm:$0xf] }
   0x5   :  { %50 = vst [vmem:[#allocation2 + $0x14] sm:$0xff] %v49_v5   ;;  %v55_v7 = vld [vmem:[%s7256_s5 + $0x1c] sm:$0xf]  ;;  %v57_v8 = vld [vmem:[%s7256_s5 + $0x28] sm:$0xf]  ;;  %62 = vst [vmem:[#allocation2 + $0x2c] sm:$0xff] %v61_v10  }
   0x6   :  { %54 = vst [vmem:[#allocation2 + $0x1c] sm:$0xf] %v53_v6  ;;  %56 = vst [vmem:[#allocation2 + $0x20] sm:$0xf] %v55_v7  ;;  %v59_v9 = vld [vmem:[%s7256_s5 + $0x20] sm:$0xf] }
   0x7   :  { %58 = vst [vmem:[#allocation2 + $0x24] sm:$0xf] %v57_v8  ;;  %v65_v11 = vld [vmem:[%s7256_s5 + $0x3c] sm:$0xf]  ;;  %60 = vst [vmem:[#allocation2 + $0x28] sm:$0xf] %v59_v9 }
   0x8   :  { %66 = vst [vmem:[#allocation2 + $0x34] sm:$0xf] %v65_v11  ;;  %v67_v12 = vld [vmem:[%s7256_s5 + $0x34] sm:$0xf]  ;;  %v69_v13 = vld [vmem:[%s7256_s5 + $0x40] sm:$0xf] }
   0x9   :  { %v71_v14 = vld [vmem:[%s7256_s5 + $0x38] sm:$0xf]  ;;  %68 = vst [vmem:[#allocation2 + $0x38] sm:$0xf] %v67_v12  ;;  %70 = vst [vmem:[#allocation2 + $0x3c] sm:$0xf] %v69_v13 }
   0xa   :  { %72 = vst [vmem:[#allocation2 + $0x40] sm:$0xf] %v71_v14  ;;  %v73_v15 = vld [vmem:[%s7256_s5 + $0x44] sm:$0xff]   ;;  %v77_v16 = vld [vmem:[%s7256_s5 + $0x54] sm:$0xf]  ;;  %v85_v20 = vld [vmem:[%s7256_s5 + $0x5c] sm:$0xff]  }
   0xb   :  { %v79_v17 = vld [vmem:[%s7256_s5 + $0x4c] sm:$0xf]  ;;  %74 = vst [vmem:[#allocation2 + $0x44] sm:$0xff] %v73_v15   ;;  %78 = vst [vmem:[#allocation2 + $0x4c] sm:$0xf] %v77_v16  ;;  %v97_v25 = vld [vmem:[%s7256_s5 + $0x74] sm:$0xff]  }
   0xc   :  { %80 = vst [vmem:[#allocation2 + $0x50] sm:$0xf] %v79_v17  ;;  %v81_v18 = vld [vmem:[%s7256_s5 + $0x58] sm:$0xf]  ;;  %v83_v19 = vld [vmem:[%s7256_s5 + $0x50] sm:$0xf] }
   0xd   :  { %82 = vst [vmem:[#allocation2 + $0x54] sm:$0xf] %v81_v18  ;;  %84 = vst [vmem:[#allocation2 + $0x58] sm:$0xf] %v83_v19  ;;  %v89_v21 = vld [vmem:[%s7256_s5 + $0x6c] sm:$0xf] }
   0xe   :  { %86 = vst [vmem:[#allocation2 + $0x5c] sm:$0xff] %v85_v20   ;;  %v91_v22 = vld [vmem:[%s7256_s5 + $0x64] sm:$0xf]  ;;  %v93_v23 = vld [vmem:[%s7256_s5 + $0x70] sm:$0xf]  ;;  %98 = vst [vmem:[#allocation2 + $0x74] sm:$0xff] %v97_v25  }
   0xf   :  { %90 = vst [vmem:[#allocation2 + $0x64] sm:$0xf] %v89_v21  ;;  %92 = vst [vmem:[#allocation2 + $0x68] sm:$0xf] %v91_v22  ;;  %v95_v24 = vld [vmem:[%s7256_s5 + $0x68] sm:$0xf] }
  0x10   :  { %94 = vst [vmem:[#allocation2 + $0x6c] sm:$0xf] %v93_v23  ;;  %v101_v26 = vld [vmem:[%s7256_s5 + $0x84] sm:$0xf]  ;;  %96 = vst [vmem:[#allocation2 + $0x70] sm:$0xf] %v95_v24 }
  0x11   :  { %102 = vst [vmem:[#allocation2 + $0x7c] sm:$0xf] %v101_v26  ;;  %v103_v27 = vld [vmem:[%s7256_s5 + $0x7c] sm:$0xf]  ;;  %v105_v28 = vld [vmem:[%s7256_s5 + $0x88] sm:$0xf] }
  0x12   :  { %v107_v29 = vld [vmem:[%s7256_s5 + $0x80] sm:$0xf]  ;;  %104 = vst [vmem:[#allocation2 + $0x80] sm:$0xf] %v103_v27  ;;  %106 = vst [vmem:[#allocation2 + $0x84] sm:$0xf] %v105_v28 }
  0x13   :  { %108 = vst [vmem:[#allocation2 + $0x88] sm:$0xf] %v107_v29  ;;  %v109_v30 = vld [vmem:[%s7256_s5 + $0x8c] sm:$0xff]   ;;  %v113_v31 = vld [vmem:[%s7256_s5 + $0x9c] sm:$0xf]  ;;  %v121_v35 = vld [vmem:[%s7256_s5 + $0xa4] sm:$0xff]  }
  0x14   :  { %v115_v32 = vld [vmem:[%s7256_s5 + $0x94] sm:$0xf]  ;;  %110 = vst [vmem:[#allocation2 + $0x8c] sm:$0xff] %v109_v30   ;;  %114 = vst [vmem:[#allocation2 + $0x94] sm:$0xf] %v113_v31  ;;  %v133_v40 = vld [vmem:[%s7256_s5 + $0xbc] sm:$0xff]  }
  0x15   :  { %116 = vst [vmem:[#allocation2 + $0x98] sm:$0xf] %v115_v32  ;;  %v117_v33 = vld [vmem:[%s7256_s5 + $0xa0] sm:$0xf]  ;;  %v119_v34 = vld [vmem:[%s7256_s5 + $0x98] sm:$0xf] }
  0x16   :  { %118 = vst [vmem:[#allocation2 + $0x9c] sm:$0xf] %v117_v33  ;;  %120 = vst [vmem:[#allocation2 + $0xa0] sm:$0xf] %v119_v34  ;;  %v125_v36 = vld [vmem:[%s7256_s5 + $0xb4] sm:$0xf] }
  0x17   :  { %122 = vst [vmem:[#allocation2 + $0xa4] sm:$0xff] %v121_v35   ;;  %v127_v37 = vld [vmem:[%s7256_s5 + $0xac] sm:$0xf]  ;;  %v129_v38 = vld [vmem:[%s7256_s5 + $0xb8] sm:$0xf]  ;;  %134 = vst [vmem:[#allocation2 + $0xbc] sm:$0xff] %v133_v40  }
  0x18   :  { %126 = vst [vmem:[#allocation2 + $0xac] sm:$0xf] %v125_v36  ;;  %128 = vst [vmem:[#allocation2 + $0xb0] sm:$0xf] %v127_v37  ;;  %v131_v39 = vld [vmem:[%s7256_s5 + $0xb0] sm:$0xf] }
  0x19   :  { %130 = vst [vmem:[#allocation2 + $0xb4] sm:$0xf] %v129_v38  ;;  %v137_v41 = vld [vmem:[%s7256_s5 + $0xcc] sm:$0xf]  ;;  %132 = vst [vmem:[#allocation2 + $0xb8] sm:$0xf] %v131_v39 }
  0x1a   :  { %138 = vst [vmem:[#allocation2 + $0xc4] sm:$0xf] %v137_v41  ;;  %v139_v42 = vld [vmem:[%s7256_s5 + $0xc4] sm:$0xf]  ;;  %v141_v43 = vld [vmem:[%s7256_s5 + $0xd0] sm:$0xf] }
  0x1b   :  { %v143_v44 = vld [vmem:[%s7256_s5 + $0xc8] sm:$0xf]  ;;  %140 = vst [vmem:[#allocation2 + $0xc8] sm:$0xf] %v139_v42  ;;  %142 = vst [vmem:[#allocation2 + $0xcc] sm:$0xf] %v141_v43 }
  0x1c   :  { %144 = vst [vmem:[#allocation2 + $0xd0] sm:$0xf] %v143_v44  ;;  %v145_v45 = vld [vmem:[%s7256_s5 + $0xd4] sm:$0xff]   ;;  %v149_v46 = vld [vmem:[%s7256_s5 + $0xe4] sm:$0xf]  ;;  %v157_v50 = vld [vmem:[%s7256_s5 + $0xec] sm:$0xff]  }
  0x1d   :  { %v151_v47 = vld [vmem:[%s7256_s5 + $0xdc] sm:$0xf]  ;;  %146 = vst [vmem:[#allocation2 + $0xd4] sm:$0xff] %v145_v45   ;;  %150 = vst [vmem:[#allocation2 + $0xdc] sm:$0xf] %v149_v46  ;;  %v169_v55 = vld [vmem:[%s7256_s5 + $0x104] sm:$0xff]  }
  0x1e   :  { %152 = vst [vmem:[#allocation2 + $0xe0] sm:$0xf] %v151_v47  ;;  %v153_v48 = vld [vmem:[%s7256_s5 + $0xe8] sm:$0xf]  ;;  %v155_v49 = vld [vmem:[%s7256_s5 + $0xe0] sm:$0xf] }
  0x1f   :  { %154 = vst [vmem:[#allocation2 + $0xe4] sm:$0xf] %v153_v48  ;;  %156 = vst [vmem:[#allocation2 + $0xe8] sm:$0xf] %v155_v49  ;;  %v161_v51 = vld [vmem:[%s7256_s5 + $0xfc] sm:$0xf] }
  0x20   :  { %158 = vst [vmem:[#allocation2 + $0xec] sm:$0xff] %v157_v50   ;;  %v163_v52 = vld [vmem:[%s7256_s5 + $0xf4] sm:$0xf]  ;;  %v165_v53 = vld [vmem:[%s7256_s5 + $0x100] sm:$0xf]  ;;  %170 = vst [vmem:[#allocation2 + $0x104] sm:$0xff] %v169_v55  }
  0x21   :  { %162 = vst [vmem:[#allocation2 + $0xf4] sm:$0xf] %v161_v51  ;;  %164 = vst [vmem:[#allocation2 + $0xf8] sm:$0xf] %v163_v52  ;;  %v167_v54 = vld [vmem:[%s7256_s5 + $0xf8] sm:$0xf] }
  0x22   :  { %166 = vst [vmem:[#allocation2 + $0xfc] sm:$0xf] %v165_v53  ;;  %v173_v56 = vld [vmem:[%s7256_s5 + $0x114] sm:$0xf]  ;;  %168 = vst [vmem:[#allocation2 + $0x100] sm:$0xf] %v167_v54 }
  0x23   :  { %174 = vst [vmem:[#allocation2 + $0x10c] sm:$0xf] %v173_v56  ;;  %v175_v57 = vld [vmem:[%s7256_s5 + $0x10c] sm:$0xf]  ;;  %v177_v58 = vld [vmem:[%s7256_s5 + $0x118] sm:$0xf] }
  0x24   :  { %v179_v59 = vld [vmem:[%s7256_s5 + $0x110] sm:$0xf]  ;;  %176 = vst [vmem:[#allocation2 + $0x110] sm:$0xf] %v175_v57  ;;  %178 = vst [vmem:[#allocation2 + $0x114] sm:$0xf] %v177_v58 }
  0x25   :  { %180 = vst [vmem:[#allocation2 + $0x118] sm:$0xf] %v179_v59  ;;  %v181_v60 = vld [vmem:[%s7256_s5 + $0x11c] sm:$0xff]   ;;  %v185_v61 = vld [vmem:[%s7256_s5 + $0x12c] sm:$0xf]  ;;  %v193_v1 = vld [vmem:[%s7256_s5 + $0x134] sm:$0xff]  }
  0x26   :  { %v187_v62 = vld [vmem:[%s7256_s5 + $0x124] sm:$0xf]  ;;  %182 = vst [vmem:[#allocation2 + $0x11c] sm:$0xff] %v181_v60   ;;  %186 = vst [vmem:[#allocation2 + $0x124] sm:$0xf] %v185_v61  ;;  %v205_v6 = vld [vmem:[%s7256_s5 + $0x14c] sm:$0xff]  }
  0x27   :  { %188 = vst [vmem:[#allocation2 + $0x128] sm:$0xf] %v187_v62  ;;  %v189_v63 = vld [vmem:[%s7256_s5 + $0x130] sm:$0xf]  ;;  %v191_v0 = vld [vmem:[%s7256_s5 + $0x128] sm:$0xf] }
  0x28   :  { %190 = vst [vmem:[#allocation2 + $0x12c] sm:$0xf] %v189_v63  ;;  %192 = vst [vmem:[#allocation2 + $0x130] sm:$0xf] %v191_v0  ;;  %v197_v2 = vld [vmem:[%s7256_s5 + $0x144] sm:$0xf] }
  0x29   :  { %194 = vst [vmem:[#allocation2 + $0x134] sm:$0xff] %v193_v1   ;;  %v199_v3 = vld [vmem:[%s7256_s5 + $0x13c] sm:$0xf]  ;;  %v201_v4 = vld [vmem:[%s7256_s5 + $0x148] sm:$0xf]  ;;  %206 = vst [vmem:[#allocation2 + $0x14c] sm:$0xff] %v205_v6  }
  0x2a   :  { %198 = vst [vmem:[#allocation2 + $0x13c] sm:$0xf] %v197_v2  ;;  %200 = vst [vmem:[#allocation2 + $0x140] sm:$0xf] %v199_v3  ;;  %v203_v5 = vld [vmem:[%s7256_s5 + $0x140] sm:$0xf] }
  0x2b   :  { %202 = vst [vmem:[#allocation2 + $0x144] sm:$0xf] %v201_v4  ;;  %v209_v7 = vld [vmem:[%s7256_s5 + $0x15c] sm:$0xf]  ;;  %204 = vst [vmem:[#allocation2 + $0x148] sm:$0xf] %v203_v5 }
  0x2c   :  { %210 = vst [vmem:[#allocation2 + $0x154] sm:$0xf] %v209_v7  ;;  %v211_v8 = vld [vmem:[%s7256_s5 + $0x154] sm:$0xf]  ;;  %v213_v9 = vld [vmem:[%s7256_s5 + $0x160] sm:$0xf] }
  0x2d   :  { %v215_v10 = vld [vmem:[%s7256_s5 + $0x158] sm:$0xf]  ;;  %212 = vst [vmem:[#allocation2 + $0x158] sm:$0xf] %v211_v8  ;;  %214 = vst [vmem:[#allocation2 + $0x15c] sm:$0xf] %v213_v9 }
  0x2e   :  { %216 = vst [vmem:[#allocation2 + $0x160] sm:$0xf] %v215_v10  ;;  %v217_v11 = vld [vmem:[%s7256_s5 + $0x164] sm:$0xff]   ;;  %v221_v12 = vld [vmem:[%s7256_s5 + $0x174] sm:$0xf]  ;;  %v229_v16 = vld [vmem:[%s7256_s5 + $0x17c] sm:$0xff]  }
  0x2f   :  { %v223_v13 = vld [vmem:[%s7256_s5 + $0x16c] sm:$0xf]  ;;  %218 = vst [vmem:[#allocation2 + $0x164] sm:$0xff] %v217_v11   ;;  %222 = vst [vmem:[#allocation2 + $0x16c] sm:$0xf] %v221_v12  ;;  %v241_v21 = vld [vmem:[%s7256_s5 + $0x194] sm:$0xff]  }
  0x30   :  { %224 = vst [vmem:[#allocation2 + $0x170] sm:$0xf] %v223_v13  ;;  %v225_v14 = vld [vmem:[%s7256_s5 + $0x178] sm:$0xf]  ;;  %v227_v15 = vld [vmem:[%s7256_s5 + $0x170] sm:$0xf] }
  0x31   :  { %226 = vst [vmem:[#allocation2 + $0x174] sm:$0xf] %v225_v14  ;;  %228 = vst [vmem:[#allocation2 + $0x178] sm:$0xf] %v227_v15  ;;  %v233_v17 = vld [vmem:[%s7256_s5 + $0x18c] sm:$0xf] }
  0x32   :  { %230 = vst [vmem:[#allocation2 + $0x17c] sm:$0xff] %v229_v16   ;;  %v235_v18 = vld [vmem:[%s7256_s5 + $0x184] sm:$0xf]  ;;  %v237_v19 = vld [vmem:[%s7256_s5 + $0x190] sm:$0xf]  ;;  %242 = vst [vmem:[#allocation2 + $0x194] sm:$0xff] %v241_v21  }
  0x33   :  { %234 = vst [vmem:[#allocation2 + $0x184] sm:$0xf] %v233_v17  ;;  %236 = vst [vmem:[#allocation2 + $0x188] sm:$0xf] %v235_v18  ;;  %v239_v20 = vld [vmem:[%s7256_s5 + $0x188] sm:$0xf] }
  0x34   :  { %238 = vst [vmem:[#allocation2 + $0x18c] sm:$0xf] %v237_v19  ;;  %v245_v22 = vld [vmem:[%s7256_s5 + $0x1a4] sm:$0xf]  ;;  %240 = vst [vmem:[#allocation2 + $0x190] sm:$0xf] %v239_v20 }
  0x35   :  { %246 = vst [vmem:[#allocation2 + $0x19c] sm:$0xf] %v245_v22  ;;  %v247_v23 = vld [vmem:[%s7256_s5 + $0x19c] sm:$0xf]  ;;  %v249_v24 = vld [vmem:[%s7256_s5 + $0x1a8] sm:$0xf] }
  0x36   :  { %v251_v25 = vld [vmem:[%s7256_s5 + $0x1a0] sm:$0xf]  ;;  %248 = vst [vmem:[#allocation2 + $0x1a0] sm:$0xf] %v247_v23  ;;  %250 = vst [vmem:[#allocation2 + $0x1a4] sm:$0xf] %v249_v24 }
  0x37   :  { %252 = vst [vmem:[#allocation2 + $0x1a8] sm:$0xf] %v251_v25  ;;  %v253_v26 = vld [vmem:[%s7256_s5 + $0x1ac] sm:$0xff]   ;;  %v257_v27 = vld [vmem:[%s7256_s5 + $0x1bc] sm:$0xf]  ;;  %v265_v31 = vld [vmem:[%s7256_s5 + $0x1c4] sm:$0xff]  }
  0x38   :  { %v259_v28 = vld [vmem:[%s7256_s5 + $0x1b4] sm:$0xf]  ;;  %254 = vst [vmem:[#allocation2 + $0x1ac] sm:$0xff] %v253_v26   ;;  %258 = vst [vmem:[#allocation2 + $0x1b4] sm:$0xf] %v257_v27 }
  0x39   :  { %260 = vst [vmem:[#allocation2 + $0x1b8] sm:$0xf] %v259_v28  ;;  %v261_v29 = vld [vmem:[%s7256_s5 + $0x1c0] sm:$0xf]  ;;  %v263_v30 = vld [vmem:[%s7256_s5 + $0x1b8] sm:$0xf] }
  0x3a   :  { %262 = vst [vmem:[#allocation2 + $0x1bc] sm:$0xf] %v261_v29  ;;  %264 = vst [vmem:[#allocation2 + $0x1c0] sm:$0xf] %v263_v30  ;;  %v269_v32 = vld [vmem:[%s7256_s5 + $0x1d4] sm:$0xf] }
  0x3b   :  { %266 = vst [vmem:[#allocation2 + $0x1c4] sm:$0xff] %v265_v31   ;;  %v271_v33 = vld [vmem:[%s7256_s5 + $0x1cc] sm:$0xf]  ;;  %v273_v34 = vld [vmem:[%s7256_s5 + $0x1d8] sm:$0xf] }
  0x3c   :  { %270 = vst [vmem:[#allocation2 + $0x1cc] sm:$0xf] %v269_v32  ;;  %272 = vst [vmem:[#allocation2 + $0x1d0] sm:$0xf] %v271_v33  ;;  %v275_v35 = vld [vmem:[%s7256_s5 + $0x1d0] sm:$0xf] }
  0x3d   :  { %274 = vst [vmem:[#allocation2 + $0x1d4] sm:$0xf] %v273_v34  ;;  %v277_v36 = vld [vmem:[%s7256_s5 + $0x1dc] sm:$0xf]  ;;  %276 = vst [vmem:[#allocation2 + $0x1d8] sm:$0xf] %v275_v35 }
  0x3e   :  { %278 = vst [vmem:[#allocation2 + $0x1dc] sm:$0xf] %v277_v36 }
  0x3f   :  { %549 = vsyncadd [#allocation3], 7680  ;;  %v551_v37 = vld [vmem:[%s7251_s0 + $0x8] sm:$0xff]  ;;  %v553_v38 = vld [vmem:[%s7251_s0 + $0x18] sm:$0xff]  ;;  %vm1050_vm0 = vcmask 523264   ;;  %vm1577_vm1 = vcmask 556032  }
  0x40   :  { %v711_v39 = vpack.c.bf16 %v553_v38, %v551_v37  ;;  %v550_v40 = vld [vmem:[%s7251_s0] sm:$0xff]  ;;  %v552_v41 = vld [vmem:[%s7251_s0 + $0x10] sm:$0xff]  ;;  %v555_v42 = vld [vmem:[%s7251_s0 + $0x28] sm:$0xff] }
  0x41   :  { %v710_v43 = vpack.c.bf16 %v552_v41, %v550_v40  ;;  %v557_v44 = vld [vmem:[%s7251_s0 + $0x38] sm:$0xff]  ;;  %v554_v45 = vld [vmem:[%s7251_s0 + $0x20] sm:$0xff]  ;;  %v556_v46 = vld [vmem:[%s7251_s0 + $0x30] sm:$0xff] }
  0x42   :  { %1111 = vmatprep.subr.bf16.mxu0 %v711_v39  ;;  %v713_v47 = vpack.c.bf16 %v557_v44, %v555_v42  ;;  %v559_v48 = vld [vmem:[%s7251_s0 + $0x48] sm:$0xff]  ;;  %v561_v49 = vld [vmem:[%s7251_s0 + $0x58] sm:$0xff]  ;;  %v712_v50 = vpack.c.bf16 %v556_v46, %v554_v45  ;;  %v558_v52 = vld [vmem:[%s7251_s0 + $0x40] sm:$0xff] }
  0x43   :  { %1112 = vmatpush1.bf16.msra.mxu0 %v710_v43  ;;  %v715_v51 = vpack.c.bf16 %v561_v49, %v559_v48  ;;  %v560_v53 = vld [vmem:[%s7251_s0 + $0x50] sm:$0xff]  ;;  %v563_v54 = vld [vmem:[%s7251_s0 + $0x68] sm:$0xff]  ;;  %v565_v55 = vld [vmem:[%s7251_s0 + $0x78] sm:$0xff] }
  0x44   :  { %1113 = vmatprep.subr.bf16.mxu0 %v713_v47  ;;  %v714_v56 = vpack.c.bf16 %v560_v53, %v558_v52  ;;  %v717_v57 = vpack.c.bf16 %v565_v55, %v563_v54  ;;  %v562_v58 = vld [vmem:[%s7251_s0 + $0x60] sm:$0xff]  ;;  %v564_v59 = vld [vmem:[%s7251_s0 + $0x70] sm:$0xff]  ;;  %v567_v60 = vld [vmem:[%s7251_s0 + $0x88] sm:$0xff] }
  0x45   :  { %v569_v61 = vld [vmem:[%s7251_s0 + $0x98] sm:$0xff]  ;;  %v716_v62 = vpack.c.bf16 %v564_v59, %v562_v58  ;;  %v566_v0 = vld [vmem:[%s7251_s0 + $0x80] sm:$0xff]  ;;  %v568_v1 = vld [vmem:[%s7251_s0 + $0x90] sm:$0xff] }
  0x46   :  { %v719_v63 = vpack.c.bf16 %v569_v61, %v567_v60  ;;  %v571_v2 = vld [vmem:[%s7251_s0 + $0xa8] sm:$0xff]  ;;  %v573_v3 = vld [vmem:[%s7251_s0 + $0xb8] sm:$0xff]  ;;  %v718_v4 = vpack.c.bf16 %v568_v1, %v566_v0  ;;  %v570_v6 = vld [vmem:[%s7251_s0 + $0xa0] sm:$0xff] }
  0x47   :  { %1114 = vmatpush1.bf16.msra.mxu0 %v712_v50  ;;  %v721_v5 = vpack.c.bf16 %v573_v3, %v571_v2  ;;  %v572_v7 = vld [vmem:[%s7251_s0 + $0xb0] sm:$0xff]  ;;  %v575_v8 = vld [vmem:[%s7251_s0 + $0xc8] sm:$0xff]  ;;  %v577_v9 = vld [vmem:[%s7251_s0 + $0xd8] sm:$0xff] }
  0x48   :  { %1115 = vmatprep.subr.bf16.mxu0 %v715_v51  ;;  %v720_v10 = vpack.c.bf16 %v572_v7, %v570_v6  ;;  %v574_v11 = vld [vmem:[%s7251_s0 + $0xc0] sm:$0xff]  ;;  %v723_v12 = vpack.c.bf16 %v577_v9, %v575_v8  ;;  %v576_v13 = vld [vmem:[%s7251_s0 + $0xd0] sm:$0xff]  ;;  %v579_v14 = vld [vmem:[%s7251_s0 + $0xe8] sm:$0xff] }
  0x49   :  { %v581_v15 = vld [vmem:[%s7251_s0 + $0xf8] sm:$0xff]  ;;  %v4138_v16 = vld [vmem:[%s7253_s2 + $0x4] ss:$12 sps:$4 sm:$0xff]   ;;  %v722_v17 = vpack.c.bf16 %v576_v13, %v574_v11  ;;  %v583_v21 = vld [vmem:[%s7251_s0 + $0x108] sm:$0xff] }
  0x4a   :  { %1143 = vmatprep.mubr.bf16.mxu0 %v4138_v16  ;;  %v725_v18 = vpack.c.bf16 %v581_v15, %v579_v14  ;;  %v578_v19 = vld [vmem:[%s7251_s0 + $0xe0] sm:$0xff]  ;;  %v580_v20 = vld [vmem:[%s7251_s0 + $0xf0] sm:$0xff]  ;;  %v585_v22 = vld [vmem:[%s7251_s0 + $0x118] sm:$0xff] }
  0x4b   :  { %1116 = vmatpush1.bf16.msra.mxu0 %v714_v56  ;;  %v724_v23 = vpack.c.bf16 %v580_v20, %v578_v19  ;;  %v727_v24 = vpack.c.bf16 %v585_v22, %v583_v21  ;;  %v582_v25 = vld [vmem:[%s7251_s0 + $0x100] sm:$0xff]  ;;  %v584_v26 = vld [vmem:[%s7251_s0 + $0x110] sm:$0xff]  ;;  %v587_v27 = vld [vmem:[%s7251_s0 + $0x128] sm:$0xff] }
  0x4c   :  { %1117 = vmatprep.subr.bf16.mxu0 %v717_v57  ;;  %v589_v28 = vld [vmem:[%s7251_s0 + $0x138] sm:$0xff]  ;;  %v726_v29 = vpack.c.bf16 %v584_v26, %v582_v25  ;;  %v586_v31 = vld [vmem:[%s7251_s0 + $0x120] sm:$0xff]  ;;  %v588_v32 = vld [vmem:[%s7251_s0 + $0x130] sm:$0xff] }
  0x4d   :  { %v729_v30 = vpack.c.bf16 %v589_v28, %v587_v27  ;;  %v591_v33 = vld [vmem:[%s7251_s0 + $0x148] sm:$0xff]  ;;  %v593_v34 = vld [vmem:[%s7251_s0 + $0x158] sm:$0xff]  ;;  %v728_v35 = vpack.c.bf16 %v588_v32, %v586_v31  ;;  %v590_v37 = vld [vmem:[%s7251_s0 + $0x140] sm:$0xff] }
  0x4e   :  { %v731_v36 = vpack.c.bf16 %v593_v34, %v591_v33  ;;  %v592_v38 = vld [vmem:[%s7251_s0 + $0x150] sm:$0xff]  ;;  %v595_v39 = vld [vmem:[%s7251_s0 + $0x168] sm:$0xff]  ;;  %v597_v40 = vld [vmem:[%s7251_s0 + $0x178] sm:$0xff] }
  0x4f   :  { %1118 = vmatpush1.bf16.msra.mxu0 %v716_v62  ;;  %v730_v41 = vpack.c.bf16 %v592_v38, %v590_v37  ;;  %v733_v42 = vpack.c.bf16 %v597_v40, %v595_v39  ;;  %v594_v43 = vld [vmem:[%s7251_s0 + $0x160] sm:$0xff]  ;;  %v596_v44 = vld [vmem:[%s7251_s0 + $0x170] sm:$0xff]  ;;  %v599_v45 = vld [vmem:[%s7251_s0 + $0x188] sm:$0xff]  ;;  %v7258_v38 = vmov 0  }
  0x50   :  { %1119 = vmatprep.subr.bf16.mxu0 %v719_v63  ;;  %v601_v46 = vld [vmem:[%s7251_s0 + $0x198] sm:$0xff]  ;;  %v598_v47 = vld [vmem:[%s7251_s0 + $0x180] sm:$0xff]  ;;  %v732_v48 = vpack.c.bf16 %v596_v44, %v594_v43  ;;  %v600_v49 = vld [vmem:[%s7251_s0 + $0x190] sm:$0xff]  ;;  %4135 = vset.pattern.permute.xlu0 %v7258_v38 }
  0x51   :  { %v735_v50 = vpack.c.bf16 %v601_v46, %v599_v45  ;;  %v603_v51 = vld [vmem:[%s7251_s0 + $0x1a8] sm:$0xff]  ;;  %v605_v52 = vld [vmem:[%s7251_s0 + $0x1b8] sm:$0xff]  ;;  %v602_v53 = vld [vmem:[%s7251_s0 + $0x1a0] sm:$0xff]  ;;  %v734_v55 = vpack.c.bf16 %v600_v49, %v598_v47  ;;  %4134 = vset.pattern.permute.xlu1 %v7258_v38 }
  0x52   :  { %v604_v54 = vld [vmem:[%s7251_s0 + $0x1b0] sm:$0xff]  ;;  %v607_v56 = vld [vmem:[%s7251_s0 + $0x1c8] sm:$0xff]  ;;  %v609_v57 = vld [vmem:[%s7251_s0 + $0x1d8] sm:$0xff]  ;;  %v737_v58 = vpack.c.bf16 %v605_v52, %v603_v51 }
  0x53   :  { %1120 = vmatpush1.bf16.msra.mxu0 %v718_v4  ;;  %v606_v59 = vld [vmem:[%s7251_s0 + $0x1c0] sm:$0xff]  ;;  %v608_v60 = vld [vmem:[%s7251_s0 + $0x1d0] sm:$0xff]  ;;  %v736_v61 = vpack.c.bf16 %v604_v54, %v602_v53  ;;  %v611_v62 = vld [vmem:[%s7251_s0 + $0x1e8] sm:$0xff]  ;;  %v739_v0 = vpack.c.bf16 %v609_v57, %v607_v56 }
  0x54   :  { %1121 = vmatprep.subr.bf16.mxu0 %v721_v5  ;;  %v613_v63 = vld [vmem:[%s7251_s0 + $0x1f8] sm:$0xff]  ;;  %v610_v1 = vld [vmem:[%s7251_s0 + $0x1e0] sm:$0xff]  ;;  %v612_v2 = vld [vmem:[%s7251_s0 + $0x1f0] sm:$0xff]  ;;  %v738_v3 = vpack.c.bf16 %v608_v60, %v606_v59 }
  0x55   :  { %v615_v4 = vld [vmem:[%s7251_s0 + $0x208] sm:$0xff]  ;;  %v617_v5 = vld [vmem:[%s7251_s0 + $0x218] sm:$0xff]  ;;  %v741_v6 = vpack.c.bf16 %v613_v63, %v611_v62  ;;  %v614_v7 = vld [vmem:[%s7251_s0 + $0x200] sm:$0xff]  ;;  %v740_v8 = vpack.c.bf16 %v612_v2, %v610_v1 }
  0x56   :  { %v616_v9 = vld [vmem:[%s7251_s0 + $0x210] sm:$0xff]  ;;  %v621_v11 = vld [vmem:[%s7251_s0 + $0x238] sm:$0xff]  ;;  %v743_v13 = vpack.c.bf16 %v617_v5, %v615_v4  ;;  %v623_v19 = vld [vmem:[%s7251_s0 + $0x248] sm:$0xff] }
  0x57   :  { %1122 = vmatpush1.bf16.msra.mxu0 %v720_v10  ;;  %v619_v10 = vld [vmem:[%s7251_s0 + $0x228] sm:$0xff]  ;;  %v742_v15 = vpack.c.bf16 %v616_v9, %v614_v7  ;;  %v625_v20 = vld [vmem:[%s7251_s0 + $0x258] sm:$0xff]  ;;  %v4142_v28 = vld [vmem:[%s7253_s2 + $0x34] ss:$12 sps:$4 sm:$0xff]  }
  0x58   :  { %1123 = vmatprep.subr.bf16.mxu0 %v723_v12  ;;  %v4136_v12 = vld [vmem:[%s7253_s2] ss:$12 sps:$4 sm:$0xff]   ;;  %v4139_v14 = vld [vmem:[%s7253_s2 + $0x1c] ss:$12 sps:$4 sm:$0xff]   ;;  %v745_v16 = vpack.c.bf16 %v621_v11, %v619_v10  ;;  %v747_v22 = vpack.c.bf16 %v625_v20, %v623_v19  ;;  %v4141_v27 = vld [vmem:[%s7253_s2 + $0x18] ss:$12 sps:$4 sm:$0xff]  }
  0x59   :  { %v627_v25 = vld [vmem:[%s7251_s0 + $0x268] sm:$0xff]  ;;  %v629_v26 = vld [vmem:[%s7251_s0 + $0x278] sm:$0xff]  ;;  %v626_v31 = vld [vmem:[%s7251_s0 + $0x260] sm:$0xff] }
  0x5a   :  { %v628_v32 = vld [vmem:[%s7251_s0 + $0x270] sm:$0xff]  ;;  %v4150_v39 = vld [vmem:[%s7253_s2 + $0x60] ss:$12 sps:$4 sm:$0xff]   ;;  %v4151_v40 = vld [vmem:[%s7253_s2 + $0x7c] ss:$12 sps:$4 sm:$0xff]  }
  0x5b   :  { %1124 = vmatpush1.bf16.msra.mxu0 %v722_v17  ;;  %v618_v17 = vld [vmem:[%s7251_s0 + $0x220] sm:$0xff]  ;;  %v748_v33 = vpack.c.bf16 %v628_v32, %v626_v31  ;;  %v4144_v34 = vld [vmem:[%s7253_s2 + $0x30] ss:$12 sps:$4 sm:$0xff]   ;;  %v4157_v44 = vld [vmem:[%s7253_s2 + $0xac] ss:$12 sps:$4 sm:$0xff]  }
  0x5c   :  { %1125 = vmatprep.subr.bf16.mxu0 %v725_v18  ;;  %v620_v18 = vld [vmem:[%s7251_s0 + $0x230] sm:$0xff]  ;;  %v4162_v47 = vld [vmem:[%s7253_s2 + $0xc0] ss:$12 sps:$4 sm:$0xff]   ;;  %v4165_v49 = vld [vmem:[%s7253_s2 + $0xd8] ss:$12 sps:$4 sm:$0xff]  }
  0x5d   :  { %v744_v21 = vpack.c.bf16 %v620_v18, %v618_v17  ;;  %v4148_v37 = vld [vmem:[%s7253_s2 + $0x64] ss:$12 sps:$4 sm:$0xff]   ;;  %v4159_v45 = vld [vmem:[%s7253_s2 + $0xa8] ss:$12 sps:$4 sm:$0xff]   ;;  %v2741_v52 = vld [vmem:[%s7255_s4 + $0x18] sm:$0xff] }
  0x5e   :  { %v4156_v43 = vld [vmem:[%s7253_s2 + $0x90] ss:$12 sps:$4 sm:$0xff]   ;;  %v2739_v51 = vld [vmem:[%s7255_s4 + $0x8] sm:$0xff]  ;;  %v4177_v1 = vld [vmem:[%s7253_s2 + $0x138] ss:$12 sps:$4 sm:$0xff]  }
  0x5f   :  { %1126 = vmatpush1.bf16.msra.mxu0 %v724_v23  ;;  %v622_v23 = vld [vmem:[%s7251_s0 + $0x240] sm:$0xff]  ;;  %2785 = vperm.xlu0 %4135, %v2739_v51   ;;  %v4168_v53 = vld [vmem:[%s7253_s2 + $0xf0] ss:$12 sps:$4 sm:$0xff]   ;;  %v4169_v54 = vld [vmem:[%s7253_s2 + $0x10c] ss:$12 sps:$4 sm:$0xff]  }
  0x60   :  { %1127 = vmatprep.subr.bf16.mxu0 %v727_v24  ;;  %v624_v24 = vld [vmem:[%s7251_s0 + $0x250] sm:$0xff]  ;;  %v2745_v56 = vld [vmem:[%s7255_s4 + $0x38] sm:$0xff]  ;;  %v2747_v59 = vld [vmem:[%s7255_s4 + $0x48] sm:$0xff] }
  0x61   :  { %v4160_v46 = vld [vmem:[%s7253_s2 + $0xc4] ss:$12 sps:$4 sm:$0xff]   ;;  %v4171_v57 = vld [vmem:[%s7253_s2 + $0x108] ss:$12 sps:$4 sm:$0xff]   ;;  %v2749_v60 = vld [vmem:[%s7255_s4 + $0x58] sm:$0xff] }
  0x62   :  { %v4175_v62 = vld [vmem:[%s7253_s2 + $0x13c] ss:$12 sps:$4 sm:$0xff]   ;;  %v4178_v2 = vld [vmem:[%s7253_s2 + $0x154] ss:$12 sps:$4 sm:$0xff]   ;;  %v4184_v10 = vld [vmem:[%s7253_s2 + $0x184] ss:$12 sps:$4 sm:$0xff]  }
  0x63   :  { %1128 = vmatpush1.bf16.msra.mxu0 %v726_v29  ;;  %v746_v29 = vpack.c.bf16 %v624_v24, %v622_v23  ;;  %2795 = vperm.xlu0 %4135, %v2741_v52   ;;  %v2751_v63 = vld [vmem:[%s7255_s4 + $0x68] sm:$0xff]  ;;  %v2757_v4 = vld [vmem:[%s7255_s4 + $0x98] sm:$0xff]  ;;  %v4190_v18 = vld [vmem:[%s7253_s2 + $0x1b4] ss:$12 sps:$4 sm:$0xff]  }
  0x64   :  { %1129 = vmatprep.subr.bf16.mxu0 %v729_v30  ;;  %v749_v30 = vpack.c.bf16 %v629_v26, %v627_v25  ;;  %v4180_v5 = vld [vmem:[%s7253_s2 + $0x150] ss:$12 sps:$4 sm:$0xff]   ;;  %v2759_v7 = vld [vmem:[%s7255_s4 + $0xa8] sm:$0xff]  ;;  %v4189_v17 = vld [vmem:[%s7253_s2 + $0x198] ss:$12 sps:$4 sm:$0xff]  }
  0x65   :  { %v4183_v9 = vld [vmem:[%s7253_s2 + $0x168] ss:$12 sps:$4 sm:$0xff]   ;;  %v2738_v20 = vld [vmem:[%s7255_s4] sm:$0xff]  ;;  %v4193_v23 = vld [vmem:[%s7253_s2 + $0x1cc] ss:$12 sps:$4 sm:$0xff]  }
  0x66   :  { %v2763_v11 = vld [vmem:[%s7255_s4 + $0xc8] sm:$0xff]  ;;  %2780 = vperm.xlu1 %4134, %v2738_v20   ;;  %v2740_v25 = vld [vmem:[%s7255_s4 + $0x10] sm:$0xff]  ;;  %v2742_v26 = vld [vmem:[%s7255_s4 + $0x20] sm:$0xff] }
  0x67   :  { %1130 = vmatpush1.bf16.msra.mxu0 %v728_v35  ;;  %v4145_v35 = vld [vmem:[%s7253_s2 + $0x4c] ss:$12 sps:$4 sm:$0xff]   ;;  %v2748_v31 = vld [vmem:[%s7255_s4 + $0x50] sm:$0xff]  ;;  %v2750_v32 = vld [vmem:[%s7255_s4 + $0x60] sm:$0xff] }
  0x68   :  { %1131 = vmatprep.subr.bf16.mxu0 %v731_v36  ;;  %v4147_v36 = vld [vmem:[%s7253_s2 + $0x48] ss:$12 sps:$4 sm:$0xff]   ;;  %v2774_v51 = vld [vmem:[%s7255_s4 + $0x120] sm:$0xff]  ;;  %v4203_v52 = vld [vmem:[%s7253_s2 + $0xb0] ss:$12 sps:$4 sm:$0xff]  }
  0x69   :  { %v2771_v19 = vld [vmem:[%s7255_s4 + $0x108] sm:$0xff] }
  0x6a   :  { %v2775_v24 = vld [vmem:[%s7255_s4 + $0x128] sm:$0xff]  ;;  %2790 = vperm.xlu1 %4134, %v2740_v25  }
  0x6b   :  { %1132 = vmatpush1.bf16.msra.mxu0 %v730_v41  ;;  %v4153_v41 = vld [vmem:[%s7253_s2 + $0x78] ss:$12 sps:$4 sm:$0xff]  }
  0x6c   :  { %1133 = vmatprep.subr.bf16.mxu0 %v733_v42  ;;  %v4154_v42 = vld [vmem:[%s7253_s2 + $0x94] ss:$12 sps:$4 sm:$0xff]  }
  0x6e   :  { %2800 = vperm.xlu1 %4134, %v2742_v26  }
  0x6f   :  { %1134 = vmatpush1.bf16.msra.mxu0 %v732_v48  ;;  %v4163_v48 = vld [vmem:[%s7253_s2 + $0xdc] ss:$12 sps:$4 sm:$0xff]  }
  0x70   :  { %1135 = vmatprep.subr.bf16.mxu0 %v735_v50  ;;  %v4166_v50 = vld [vmem:[%s7253_s2 + $0xf4] ss:$12 sps:$4 sm:$0xff]  }
  0x73   :  { %1136 = vmatpush1.bf16.msra.mxu0 %v734_v55  ;;  %v2743_v55 = vld [vmem:[%s7255_s4 + $0x28] sm:$0xff] }
  0x74   :  { %1137 = vmatprep.subr.bf16.mxu0 %v737_v58  ;;  %2805 = vperm.xlu0 %4135, %v2743_v55   ;;  %v4172_v58 = vld [vmem:[%s7253_s2 + $0x124] ss:$12 sps:$4 sm:$0xff]  }
  0x75   :  { %v4206_v55 = vld [vmem:[%s7253_s2 + $0xf8] ss:$12 sps:$4 sm:$0xff]  }
  0x77   :  { %1138 = vmatpush1.bf16.msra.mxu0 %v736_v61  ;;  %v4174_v61 = vld [vmem:[%s7253_s2 + $0x120] ss:$12 sps:$4 sm:$0xff]  }
  0x78   :  { %1139 = vmatprep.subr.bf16.mxu0 %v739_v0  ;;  %2815 = vperm.xlu0 %4135, %v2745_v56   ;;  %v2753_v0 = vld [vmem:[%s7255_s4 + $0x78] sm:$0xff] }
  0x79   :  { %v4207_v56 = vld [vmem:[%s7253_s2 + $0x110] ss:$12 sps:$4 sm:$0xff]  }
  0x7b   :  { %1140 = vmatpush1.bf16.msra.mxu0 %v738_v3  ;;  %v2755_v3 = vld [vmem:[%s7255_s4 + $0x88] sm:$0xff] }
  0x7c   :  { %1141 = vmatprep.subr.bf16.mxu0 %v741_v6  ;;  %2825 = vperm.xlu0 %4135, %v2747_v59   ;;  %v4181_v6 = vld [vmem:[%s7253_s2 + $0x16c] ss:$12 sps:$4 sm:$0xff]  }
  0x7d   :  { %v4210_v59 = vld [vmem:[%s7253_s2 + $0x158] ss:$12 sps:$4 sm:$0xff]  }
  0x7f   :  { %1142 = vmatpush1.bf16.msra.mxu0 %v740_v8  ;;  %v2761_v8 = vld [vmem:[%s7255_s4 + $0xb8] sm:$0xff] }
  0x80   :  { %1344 = vmatprep.subr.bf16.mxu0 %v743_v13  ;;  %2835 = vperm.xlu0 %4135, %v2749_v60   ;;  %v4186_v13 = vld [vmem:[%s7253_s2 + $0x180] ss:$12 sps:$4 sm:$0xff]   ;;  %v4211_v60 = vld [vmem:[%s7253_s2 + $0x170] ss:$12 sps:$4 sm:$0xff]  }
  0x82   :  { %1144 = vmatmul.mubr.bf16.vlgmr.msra.gmra.mrb[0].mxu0 %v4136_v12  ;;  %v2765_v12 = vld [vmem:[%s7255_s4 + $0xd8] sm:$0xff] }
  0x83   :  { %1345 = vmatpush1.bf16.msra.mxu0 %v742_v15  ;;  %1153 = vmatprep.mubr.bf16.mxu0 %v4139_v14  ;;  %v4187_v14 = vld [vmem:[%s7253_s2 + $0x19c] ss:$12 sps:$4 sm:$0xff]  }
  0x84   :  { %1346 = vmatprep.subr.bf16.mxu0 %v745_v16  ;;  %2845 = vperm.xlu0 %4135, %v2751_v63   ;;  %v2767_v15 = vld [vmem:[%s7255_s4 + $0xe8] sm:$0xff]  ;;  %v2769_v16 = vld [vmem:[%s7255_s4 + $0xf8] sm:$0xff] }
  0x85   :  { %v4214_v63 = vld [vmem:[%s7253_s2 + $0x1b8] ss:$12 sps:$4 sm:$0xff]  }
  0x87   :  { %1347 = vmatpush1.bf16.msra.mxu0 %v744_v21  ;;  %v2773_v21 = vld [vmem:[%s7255_s4 + $0x118] sm:$0xff] }
  0x88   :  { %1348 = vmatprep.subr.bf16.mxu0 %v747_v22  ;;  %2855 = vperm.xlu0 %4135, %v2753_v0   ;;  %v4192_v22 = vld [vmem:[%s7253_s2 + $0x1b0] ss:$12 sps:$4 sm:$0xff]  }
  0x89   :  { %v4215_v0 = vld [vmem:[%s7253_s2 + $0x1d0] ss:$12 sps:$4 sm:$0xff]  }
  0x8a   :  { %1154 = vmatmul.mubr.bf16.gmra.mrb[4].mxu0 %v4141_v27  ;;  %v4195_v27 = vld [vmem:[%s7253_s2 + $0x1c8] ss:$12 sps:$4 sm:$0xff]  }
  0x8b   :  { %1163 = vmatprep.mubr.bf16.mxu0 %v4142_v28  ;;  %1349 = vmatpush1.bf16.msra.mxu0 %v746_v29  ;;  %v2744_v28 = vld [vmem:[%s7255_s4 + $0x30] sm:$0xff]  ;;  %v2746_v29 = vld [vmem:[%s7255_s4 + $0x40] sm:$0xff] }
  0x8c   :  { %1350 = vmatprep.subr.bf16.mxu0 %v749_v30  ;;  %2865 = vperm.xlu0 %4135, %v2755_v3   ;;  %v4196_v30 = vld [vmem:[%s7253_s2 + $0x8] ss:$12 sps:$4 sm:$0xff]  }
  0x8d   :  { %2810 = vperm.xlu1 %4134, %v2744_v28  }
  0x8f   :  { %1351 = vmatpush1.bf16.msra.mxu0 %v748_v33  ;;  %v4197_v33 = vld [vmem:[%s7253_s2 + $0x20] ss:$12 sps:$4 sm:$0xff]  }
  0x90   :  { %2875 = vperm.xlu0 %4135, %v2757_v4  }
  0x91   :  { %2820 = vperm.xlu1 %4134, %v2746_v29  }
  0x92   :  { %1164 = vmatmul.mubr.bf16.gmra.mrb[8].mxu0 %v4144_v34  ;;  %v2752_v34 = vld [vmem:[%s7255_s4 + $0x70] sm:$0xff] }
  0x93   :  { %1173 = vmatprep.mubr.bf16.mxu0 %v4145_v35  ;;  %v2754_v35 = vld [vmem:[%s7255_s4 + $0x80] sm:$0xff] }
  0x94   :  { %2885 = vperm.xlu0 %4135, %v2759_v7  }
  0x95   :  { %2830 = vperm.xlu1 %4134, %v2748_v31  }
  0x98   :  { %2895 = vperm.xlu0 %4135, %v2761_v8  }
  0x99   :  { %2840 = vperm.xlu1 %4134, %v2750_v32  }
  0x9a   :  { %1174 = vmatmul.mubr.bf16.gmra.mrb[12].mxu0 %v4147_v36  ;;  %v4198_v36 = vld [vmem:[%s7253_s2 + $0x38] ss:$12 sps:$4 sm:$0xff]  }
  0x9b   :  { %1183 = vmatprep.mubr.bf16.mxu0 %v4148_v37  ;;  %v2756_v37 = vld [vmem:[%s7255_s4 + $0x90] sm:$0xff] }
  0x9c   :  { %2905 = vperm.xlu0 %4135, %v2763_v11  }
  0x9d   :  { %2850 = vperm.xlu1 %4134, %v2752_v34  }
  0xa0   :  { %2915 = vperm.xlu0 %4135, %v2765_v12  }
  0xa1   :  { %2860 = vperm.xlu1 %4134, %v2754_v35  }
  0xa2   :  { %1184 = vmatmul.mubr.bf16.gmra.mrb[16].mxu0 %v4150_v39  ;;  %v2758_v39 = vld [vmem:[%s7255_s4 + $0xa0] sm:$0xff] }
  0xa3   :  { %1193 = vmatprep.mubr.bf16.mxu0 %v4151_v40  ;;  %v4199_v40 = vld [vmem:[%s7253_s2 + $0x50] ss:$12 sps:$4 sm:$0xff]  }
  0xa4   :  { %2925 = vperm.xlu0 %4135, %v2767_v15  }
  0xa5   :  { %2870 = vperm.xlu1 %4134, %v2756_v37  }
  0xa8   :  { %2935 = vperm.xlu0 %4135, %v2769_v16  }
  0xa9   :  { %2880 = vperm.xlu1 %4134, %v2758_v39  }
  0xaa   :  { %1194 = vmatmul.mubr.bf16.gmra.mrb[20].mxu0 %v4153_v41  ;;  %v2760_v41 = vld [vmem:[%s7255_s4 + $0xb0] sm:$0xff] }
  0xab   :  { %1203 = vmatprep.mubr.bf16.mxu0 %v4154_v42  ;;  %v2762_v42 = vld [vmem:[%s7255_s4 + $0xc0] sm:$0xff] }
  0xac   :  { %2945 = vperm.xlu0 %4135, %v2771_v19  }
  0xad   :  { %2890 = vperm.xlu1 %4134, %v2760_v41  }
  0xb0   :  { %2955 = vperm.xlu0 %4135, %v2773_v21  }
  0xb1   :  { %2900 = vperm.xlu1 %4134, %v2762_v42  }
  0xb2   :  { %1204 = vmatmul.mubr.bf16.gmra.mrb[24].mxu0 %v4156_v43  ;;  %v4200_v43 = vld [vmem:[%s7253_s2 + $0x68] ss:$12 sps:$4 sm:$0xff]  }
  0xb3   :  { %1213 = vmatprep.mubr.bf16.mxu0 %v4157_v44  ;;  %v2764_v44 = vld [vmem:[%s7255_s4 + $0xd0] sm:$0xff] }
  0xb4   :  { %2965 = vperm.xlu0 %4135, %v2775_v24  }
  0xb5   :  { %2910 = vperm.xlu1 %4134, %v2764_v44  }
  0xba   :  { %1214 = vmatmul.mubr.bf16.gmra.mrb[28].mxu0 %v4159_v45  ;;  %v2766_v45 = vld [vmem:[%s7255_s4 + $0xe0] sm:$0xff] }
  0xbb   :  { %1223 = vmatprep.mubr.bf16.mxu0 %v4160_v46  ;;  %v4201_v46 = vld [vmem:[%s7253_s2 + $0x80] ss:$12 sps:$4 sm:$0xff]   ;;  %2920 = vperm.xlu1 %4134, %v2766_v45  }
  0xc2   :  { %1224 = vmatmul.mubr.bf16.gmra.mrb[32].mxu0 %v4162_v47  ;;  %v2768_v47 = vld [vmem:[%s7255_s4 + $0xf0] sm:$0xff] }
  0xc3   :  { %1233 = vmatprep.mubr.bf16.mxu0 %v4163_v48  ;;  %2930 = vperm.xlu1 %4134, %v2768_v47   ;;  %v2770_v48 = vld [vmem:[%s7255_s4 + $0x100] sm:$0xff] }
  0xc7   :  { %2940 = vperm.xlu1 %4134, %v2770_v48  }
  0xca   :  { %1234 = vmatmul.mubr.bf16.gmra.mrb[36].mxu0 %v4165_v49  ;;  %v4202_v49 = vld [vmem:[%s7253_s2 + $0x98] ss:$12 sps:$4 sm:$0xff]  }
  0xcb   :  { %1243 = vmatprep.mubr.bf16.mxu0 %v4166_v50  ;;  %v2772_v50 = vld [vmem:[%s7255_s4 + $0x110] sm:$0xff] }
  0xcc   :  { %2950 = vperm.xlu1 %4134, %v2772_v50  }
  0xd0   :  { %2960 = vperm.xlu1 %4134, %v2774_v51  }
  0xd2   :  { %1244 = vmatmul.mubr.bf16.gmra.mrb[40].mxu0 %v4168_v53  ;;  %v4204_v53 = vld [vmem:[%s7253_s2 + $0xc8] ss:$12 sps:$4 sm:$0xff]  }
  0xd3   :  { %1253 = vmatprep.mubr.bf16.mxu0 %v4169_v54  ;;  %v4205_v54 = vld [vmem:[%s7253_s2 + $0xe0] ss:$12 sps:$4 sm:$0xff]  }
  0xda   :  { %1254 = vmatmul.mubr.bf16.gmra.mrb[44].mxu0 %v4171_v57  ;;  %v4208_v57 = vld [vmem:[%s7253_s2 + $0x128] ss:$12 sps:$4 sm:$0xff]  }
  0xdb   :  { %1263 = vmatprep.mubr.bf16.mxu0 %v4172_v58  ;;  %v4209_v58 = vld [vmem:[%s7253_s2 + $0x140] ss:$12 sps:$4 sm:$0xff]  }
  0xde   :  { %v5273_v35 = vpop.permute.xlu0 %2785 }
  0xdf   :  { %7394 = vst [vmem:[#allocation6_spill] sm:$0xff] %v5273_v35 }
  0xe2   :  { %1264 = vmatmul.mubr.bf16.gmra.mrb[48].mxu0 %v4174_v61  ;;  %v4212_v61 = vld [vmem:[%s7253_s2 + $0x188] ss:$12 sps:$4 sm:$0xff]  }
  0xe3   :  { %1273 = vmatprep.mubr.bf16.mxu0 %v4175_v62  ;;  %v4213_v62 = vld [vmem:[%s7253_s2 + $0x1a0] ss:$12 sps:$4 sm:$0xff]  }
  0xea   :  { %1274 = vmatmul.mubr.bf16.gmra.mrb[52].mxu0 %v4177_v1 }
  0xeb   :  { %1283 = vmatprep.mubr.bf16.mxu0 %v4178_v2 }
  0xf2   :  { %1284 = vmatmul.mubr.bf16.gmra.mrb[56].mxu0 %v4180_v5 }
  0xf3   :  { %1293 = vmatprep.mubr.bf16.mxu0 %v4181_v6 }
  0xfa   :  { %1294 = vmatmul.mubr.bf16.gmra.mrb[60].mxu0 %v4183_v9 }
  0xfb   :  { %1303 = vmatprep.mubr.bf16.mxu0 %v4184_v10 }
 0x102   :  { %1304 = vmatmul.mubr.bf16.gmra.mrb[64].mxu0 %v4186_v13 }
 0x103   :  { %1313 = vmatprep.mubr.bf16.mxu0 %v4187_v14 }
 0x10a   :  { %1314 = vmatmul.mubr.bf16.gmra.mrb[68].mxu0 %v4189_v17 }
 0x10b   :  { %1323 = vmatprep.mubr.bf16.mxu0 %v4190_v18 }
 0x112   :  { %1324 = vmatmul.mubr.bf16.gmra.mrb[72].mxu0 %v4192_v22 }
 0x113   :  { %1333 = vmatprep.mubr.bf16.mxu0 %v4193_v23 }
 0x11a   :  { %1334 = vmatmul.mubr.bf16.gmra.mrb[76].mxu0 %v4195_v27 }
 0x11b   :  { %1376 = vmatprep.mubr.bf16.mxu0 %v7258_v38 }
 0x122   :  { %3932 = vmatmul.mubr.msk.bf16.vlgmr.msra.gmra.mrb[0].mxu0 %vm1050_vm0, %v4196_v30 }
 0x123   :  { %1386 = vmatprep.mubr.bf16.mxu0 %v7258_v38 }
 0x12a   :  { %3933 = vmatmul.mubr.msk.bf16.gmra.mrb[4].mxu0 %vm1050_vm0, %v4197_v33 }
 0x12b   :  { %1396 = vmatprep.mubr.bf16.mxu0 %v7258_v38 }
 0x132   :  { %3934 = vmatmul.mubr.msk.bf16.gmra.mrb[8].mxu0 %vm1050_vm0, %v4198_v36 }
 0x133   :  { %1406 = vmatprep.mubr.bf16.mxu0 %v7258_v38 }
 0x13a   :  { %3935 = vmatmul.mubr.msk.bf16.gmra.mrb[12].mxu0 %vm1050_vm0, %v4199_v40 }
 0x13b   :  { %1416 = vmatprep.mubr.bf16.mxu0 %v7258_v38 }
 0x142   :  { %3936 = vmatmul.mubr.msk.bf16.gmra.mrb[16].mxu0 %vm1050_vm0, %v4200_v43  ;;  %v5285_v43 = vpop.permute.xlu0 %2795 }
 0x143   :  { %1426 = vmatprep.mubr.bf16.mxu0 %v7258_v38  ;;  %7395 = vst [vmem:[#allocation7_spill] sm:$0xff] %v5285_v43 }
 0x14a   :  { %3937 = vmatmul.mubr.msk.bf16.gmra.mrb[20].mxu0 %vm1050_vm0, %v4201_v46  ;;  %v5291_v46 = vpop.permute.xlu1 %2780 }
 0x14b   :  { %1436 = vmatprep.mubr.bf16.mxu0 %v7258_v38  ;;  %7396 = vst [vmem:[#allocation8_spill] sm:$0xff] %v5291_v46 }
 0x152   :  { %3938 = vmatmul.mubr.msk.bf16.gmra.mrb[24].mxu0 %vm1050_vm0, %v4202_v49 }
 0x153   :  { %1446 = vmatprep.mubr.bf16.mxu0 %v7258_v38 }
 0x15a   :  { %3939 = vmatmul.mubr.msk.bf16.gmra.mrb[28].mxu0 %vm1050_vm0, %v4203_v52 }
 0x15b   :  { %1456 = vmatprep.mubr.bf16.mxu0 %v7258_v38 }
 0x162   :  { %3940 = vmatmul.mubr.msk.bf16.gmra.mrb[32].mxu0 %vm1050_vm0, %v4204_v53  ;;  %v5303_v53 = vpop.permute.xlu0 %2805 }
 0x163   :  { %1466 = vmatprep.mubr.bf16.mxu0 %v7258_v38  ;;  %7397 = vst [vmem:[#allocation9_spill] sm:$0xff] %v5303_v53 }
 0x16a   :  { %3941 = vmatmul.mubr.msk.bf16.gmra.mrb[36].mxu0 %vm1050_vm0, %v4205_v54  ;;  %v5305_v54 = vpop.permute.xlu1 %2790 }
 0x16b   :  { %1476 = vmatprep.mubr.bf16.mxu0 %v7258_v38  ;;  %7398 = vst [vmem:[#allocation10_spill] sm:$0xff] %v5305_v54 }
 0x172   :  { %3942 = vmatmul.mubr.msk.bf16.gmra.mrb[40].mxu0 %vm1050_vm0, %v4206_v55 }
 0x173   :  { %1486 = vmatprep.mubr.bf16.mxu0 %v7258_v38 }
 0x17a   :  { %3943 = vmatmul.mubr.msk.bf16.gmra.mrb[44].mxu0 %vm1050_vm0, %v4207_v56 }
 0x17b   :  { %1496 = vmatprep.mubr.bf16.mxu0 %v7258_v38 }
 0x182   :  { %3944 = vmatmul.mubr.msk.bf16.gmra.mrb[48].mxu0 %vm1050_vm0, %v4208_v57 }
 0x183   :  { %1506 = vmatprep.mubr.bf16.mxu0 %v7258_v38 }
 0x18a   :  { %3945 = vmatmul.mubr.msk.bf16.gmra.mrb[52].mxu0 %vm1050_vm0, %v4209_v58 }
 0x18b   :  { %1516 = vmatprep.mubr.bf16.mxu0 %v7258_v38 }
 0x192   :  { %3946 = vmatmul.mubr.msk.bf16.gmra.mrb[56].mxu0 %vm1050_vm0, %v4210_v59 }
 0x193   :  { %1526 = vmatprep.mubr.bf16.mxu0 %v7258_v38 }
 0x19a   :  { %3947 = vmatmul.mubr.msk.bf16.gmra.mrb[60].mxu0 %vm1050_vm0, %v4211_v60 }
 0x19b   :  { %1536 = vmatprep.mubr.bf16.mxu0 %v7258_v38 }
 0x1a2   :  { %3948 = vmatmul.mubr.msk.bf16.gmra.mrb[64].mxu0 %vm1050_vm0, %v4212_v61  ;;  %v5318_v61 = vpop.permute.xlu0 %2815 }
 0x1a3   :  { %1546 = vmatprep.mubr.bf16.mxu0 %v7258_v38  ;;  %7399 = vst [vmem:[#allocation11_spill] sm:$0xff] %v5318_v61 }
 0x1aa   :  { %3949 = vmatmul.mubr.msk.bf16.gmra.mrb[68].mxu0 %vm1050_vm0, %v4213_v62 }
 0x1ab   :  { %1556 = vmatprep.mubr.bf16.mxu0 %v7258_v38 }
 0x1b2   :  { %3950 = vmatmul.mubr.msk.bf16.gmra.mrb[72].mxu0 %vm1050_vm0, %v4214_v63 }
 0x1b3   :  { %1566 = vmatprep.mubr.bf16.mxu0 %v7258_v38 }
 0x1ba   :  { %3951 = vmatmul.mubr.msk.bf16.gmra.mrb[76].mxu0 %vm1050_vm0, %v4215_v0  ;;  %v5323_v0 = vpop.permute.xlu1 %2800 }
 0x1bb   :  { %7400 = vst [vmem:[#allocation12_spill] sm:$0xff] %v5323_v0 }
 0x1f5   :  { %v5213_v1 = vpop.f32.mrb[0].mxu0 }
 0x1f6   :  { %v5215_v2 = vpop.f32.mrb[1].mxu0 }
 0x1f7   :  { %v1578_v3 = vsel %vm1577_vm1, %v5215_v2, 0.0  ;;  %v5219_v4 = vpop.f32.mrb[2].mxu0 }
 0x1f8   :  { %v5221_v5 = vpop.f32.mrb[3].mxu0  ;;  %v1579_v6 = vadd.f32 %v1578_v3, %v5213_v1 }
 0x1f9   :  { %v1582_v7 = vsel %vm1577_vm1, %v5221_v5, 0.0 }
 0x1fa   :  { %1580 = vadd.xlane.f32.xlu0 %v1579_v6  ;;  %v1583_v8 = vadd.f32 %v1582_v7, %v5219_v4  ;;  %v5329_v7 = vpop.permute.xlu0 %2825 }
 0x1fb   :  { %7401 = vst [vmem:[#allocation13_spill] sm:$0xff] %v5329_v7 }
 0x1fd   :  { %v5227_v9 = vpop.f32.mrb[4].mxu0 }
 0x1fe   :  { %1584 = vadd.xlane.f32.xlu0 %v1583_v8  ;;  %v5229_v10 = vpop.f32.mrb[5].mxu0 }
 0x1ff   :  { %v1586_v11 = vsel %vm1577_vm1, %v5229_v10, 0.0  ;;  %v5233_v12 = vpop.f32.mrb[6].mxu0 }
 0x200   :  { %v5235_v13 = vpop.f32.mrb[7].mxu0  ;;  %v1587_v14 = vadd.f32 %v1586_v11, %v5227_v9 }
 0x201   :  { %v1590_v15 = vsel %vm1577_vm1, %v5235_v13, 0.0 }
 0x202   :  { %1588 = vadd.xlane.f32.xlu1 %v1587_v14  ;;  %v1591_v16 = vadd.f32 %v1590_v15, %v5233_v12 }
 0x205   :  { %v5241_v17 = vpop.f32.mrb[8].mxu0 }
 0x206   :  { %1592 = vadd.xlane.f32.xlu1 %v1591_v16  ;;  %v5243_v18 = vpop.f32.mrb[9].mxu0  ;;  %v5338_v16 = vpop.permute.xlu1 %2810 }
 0x207   :  { %v1594_v19 = vsel %vm1577_vm1, %v5243_v18, 0.0  ;;  %v5247_v20 = vpop.f32.mrb[10].mxu0  ;;  %7402 = vst [vmem:[#allocation14_spill] sm:$0xff] %v5338_v16 }
 0x208   :  { %v5249_v21 = vpop.f32.mrb[11].mxu0  ;;  %v1595_v22 = vadd.f32 %v1594_v19, %v5241_v17 }
 0x209   :  { %v1598_v23 = vsel %vm1577_vm1, %v5249_v21, 0.0 }
 0x20a   :  { %1596 = vadd.xlane.f32.xlu0 %v1595_v22  ;;  %v1599_v24 = vadd.f32 %v1598_v23, %v5247_v20  ;;  %v5343_v23 = vpop.permute.xlu0 %2835 }
 0x20b   :  { %7403 = vst [vmem:[#allocation15_spill] sm:$0xff] %v5343_v23 }
 0x20c   :  { %1600 = vadd.xlane.f32.xlu1 %v1599_v24 }
 0x20d   :  { %v5255_v25 = vpop.f32.mrb[12].mxu0 }
 0x20e   :  { %v5257_v26 = vpop.f32.mrb[13].mxu0 }
 0x20f   :  { %v1602_v27 = vsel %vm1577_vm1, %v5257_v26, 0.0  ;;  %v5261_v28 = vpop.f32.mrb[14].mxu0 }
 0x210   :  { %v5263_v29 = vpop.f32.mrb[15].mxu0  ;;  %v1603_v30 = vadd.f32 %v1602_v27, %v5255_v25 }
 0x211   :  { %v1606_v31 = vsel %vm1577_vm1, %v5263_v29, 0.0 }
 0x212   :  { %1604 = vadd.xlane.f32.xlu0 %v1603_v30  ;;  %v1607_v32 = vadd.f32 %v1606_v31, %v5261_v28  ;;  %v5349_v30 = vpop.permute.xlu1 %2820 }
 0x213   :  { %7404 = vst [vmem:[#allocation16_spill] sm:$0xff] %v5349_v30 }
 0x214   :  { %1608 = vadd.xlane.f32.xlu1 %v1607_v32 }
 0x215   :  { %v5269_v33 = vpop.f32.mrb[16].mxu0 }
 0x216   :  { %v5271_v34 = vpop.f32.mrb[17].mxu0 }
 0x217   :  { %v1610_v36 = vsel %vm1577_vm1, %v5271_v34, 0.0  ;;  %v5277_v37 = vpop.f32.mrb[18].mxu0 }
 0x218   :  { %v5279_v39 = vpop.f32.mrb[19].mxu0  ;;  %v1611_v40 = vadd.f32 %v1610_v36, %v5269_v33 }
 0x219   :  { %v1614_v41 = vsel %vm1577_vm1, %v5279_v39, 0.0 }
 0x21a   :  { %1612 = vadd.xlane.f32.xlu0 %v1611_v40  ;;  %v1615_v42 = vadd.f32 %v1614_v41, %v5277_v37 }
 0x21c   :  { %1616 = vadd.xlane.f32.xlu1 %v1615_v42 }
 0x21d   :  { %v5287_v44 = vpop.f32.mrb[20].mxu0 }
 0x21e   :  { %v5289_v45 = vpop.f32.mrb[21].mxu0 }
 0x21f   :  { %v1618_v47 = vsel %vm1577_vm1, %v5289_v45, 0.0  ;;  %v5295_v48 = vpop.f32.mrb[22].mxu0 }
 0x220   :  { %v5297_v49 = vpop.f32.mrb[23].mxu0  ;;  %v1619_v50 = vadd.f32 %v1618_v47, %v5287_v44  ;;  %v5361_v47 = vpop.permute.xlu0 %2845 }
 0x221   :  { %v1622_v51 = vsel %vm1577_vm1, %v5297_v49, 0.0  ;;  %7405 = vst [vmem:[#allocation17_spill] sm:$0xff] %v5361_v47 }
 0x222   :  { %1620 = vadd.xlane.f32.xlu0 %v1619_v50  ;;  %v1623_v52 = vadd.f32 %v1622_v51, %v5295_v48  ;;  %v5363_v50 = vpop.permute.xlu1 %2830 }
 0x223   :  { %7406 = vst [vmem:[#allocation18_spill] sm:$0xff] %v5363_v50 }
 0x224   :  { %1624 = vadd.xlane.f32.xlu1 %v1623_v52 }
 0x225   :  { %v5307_v55 = vpop.f32.mrb[24].mxu0 }
 0x226   :  { %v5309_v56 = vpop.f32.mrb[25].mxu0 }
 0x227   :  { %v1626_v57 = vsel %vm1577_vm1, %v5309_v56, 0.0  ;;  %v5313_v58 = vpop.f32.mrb[26].mxu0 }
 0x228   :  { %v5315_v59 = vpop.f32.mrb[27].mxu0  ;;  %v1627_v60 = vadd.f32 %v1626_v57, %v5307_v55 }
 0x229   :  { %v1630_v62 = vsel %vm1577_vm1, %v5315_v59, 0.0 }
 0x22a   :  { %1628 = vadd.xlane.f32.xlu0 %v1627_v60  ;;  %v1631_v63 = vadd.f32 %v1630_v62, %v5313_v58 }
 0x22c   :  { %1632 = vadd.xlane.f32.xlu1 %v1631_v63 }
 0x22d   :  { %v5325_v3 = vpop.f32.mrb[28].mxu0 }
 0x22e   :  { %v5327_v6 = vpop.f32.mrb[29].mxu0 }
 0x22f   :  { %v1634_v8 = vsel %vm1577_vm1, %v5327_v6, 0.0  ;;  %v5333_v11 = vpop.f32.mrb[30].mxu0 }
 0x230   :  { %v5335_v14 = vpop.f32.mrb[31].mxu0  ;;  %v1635_v15 = vadd.f32 %v1634_v8, %v5325_v3  ;;  %v5376_v8 = vpop.permute.xlu0 %2855 }
 0x231   :  { %v1638_v19 = vsel %vm1577_vm1, %v5335_v14, 0.0  ;;  %7407 = vst [vmem:[#allocation19_spill] sm:$0xff] %v5376_v8 }
 0x232   :  { %1636 = vadd.xlane.f32.xlu0 %v1635_v15  ;;  %v1639_v22 = vadd.f32 %v1638_v19, %v5333_v11 }
 0x234   :  { %1640 = vadd.xlane.f32.xlu1 %v1639_v22  ;;  %v5381_v22 = vpop.permute.xlu1 %2840 }
 0x235   :  { %v5345_v24 = vpop.f32.mrb[32].mxu0  ;;  %7408 = vst [vmem:[#allocation20_spill] sm:$0xff] %v5381_v22 }
 0x236   :  { %v5347_v27 = vpop.f32.mrb[33].mxu0 }
 0x237   :  { %v1642_v31 = vsel %vm1577_vm1, %v5347_v27, 0.0  ;;  %v5353_v32 = vpop.f32.mrb[34].mxu0 }
 0x238   :  { %v5355_v36 = vpop.f32.mrb[35].mxu0  ;;  %v1643_v40 = vadd.f32 %v1642_v31, %v5345_v24  ;;  %v5396_v8 = vpop.permute.xlu1 %2850 }
 0x239   :  { %v1646_v41 = vsel %vm1577_vm1, %v5355_v36, 0.0  ;;  %7410 = vst [vmem:[#allocation22_spill] sm:$0xff] %v5396_v8 }
 0x23a   :  { %1644 = vadd.xlane.f32.xlu0 %v1643_v40  ;;  %v1647_v42 = vadd.f32 %v1646_v41, %v5353_v32  ;;  %v5387_v41 = vpop.permute.xlu0 %2865 }
 0x23b   :  { %7409 = vst [vmem:[#allocation21_spill] sm:$0xff] %v5387_v41 }
 0x23c   :  { %1648 = vadd.xlane.f32.xlu1 %v1647_v42  ;;  %v5407_v47 = vpop.permute.xlu1 %2860 }
 0x23d   :  { %v5365_v51 = vpop.f32.mrb[36].mxu0  ;;  %7412 = vst [vmem:[#allocation24_spill] sm:$0xff] %v5407_v47 }
 0x23e   :  { %v5367_v52 = vpop.f32.mrb[37].mxu0  ;;  %v5401_v22 = vpop.permute.xlu0 %2875 }
 0x23f   :  { %v1650_v57 = vsel %vm1577_vm1, %v5367_v52, 0.0  ;;  %v5371_v60 = vpop.f32.mrb[38].mxu0  ;;  %7411 = vst [vmem:[#allocation23_spill] sm:$0xff] %v5401_v22 }
 0x240   :  { %v5373_v62 = vpop.f32.mrb[39].mxu0  ;;  %v1651_v63 = vadd.f32 %v1650_v57, %v5365_v51  ;;  %v5421_v61 = vpop.permute.xlu1 %2870 }
 0x241   :  { %v1654_v15 = vsel %vm1577_vm1, %v5373_v62, 0.0  ;;  %7414 = vst [vmem:[#allocation26_spill] sm:$0xff] %v5421_v61 }
 0x242   :  { %1652 = vadd.xlane.f32.xlu0 %v1651_v63  ;;  %v1655_v19 = vadd.f32 %v1654_v15, %v5371_v60  ;;  %v5419_v22 = vpop.permute.xlu0 %2885 }
 0x243   :  { %7413 = vst [vmem:[#allocation25_spill] sm:$0xff] %v5419_v22 }
 0x244   :  { %1656 = vadd.xlane.f32.xlu1 %v1655_v19  ;;  %v5439_v22 = vpop.permute.xlu1 %2880 }
 0x245   :  { %v5383_v31 = vpop.f32.mrb[40].mxu0  ;;  %7418 = vst [vmem:[#allocation30_spill] sm:$0xff] %v5439_v22 }
 0x246   :  { %v5385_v40 = vpop.f32.mrb[41].mxu0  ;;  %v5434_v7 = vpop.permute.xlu0 %2895 }
 0x247   :  { %v1658_v42 = vsel %vm1577_vm1, %v5385_v40, 0.0  ;;  %v5391_v57 = vpop.f32.mrb[42].mxu0  ;;  %7417 = vst [vmem:[#allocation29_spill] sm:$0xff] %v5434_v7 }
 0x248   :  { %v5393_v38 = vpop.f32.mrb[43].mxu0  ;;  %v1659_v63 = vadd.f32 %v1658_v42, %v5383_v31  ;;  %v5454_v35 = vpop.permute.xlu1 %2890 }
 0x249   :  { %v1662_v15 = vsel %vm1577_vm1, %v5393_v38, 0.0  ;;  %7424 = vst [vmem:[#allocation36_spill] sm:$0xff] %v5454_v35 }
 0x24a   :  { %1660 = vadd.xlane.f32.xlu0 %v1659_v63  ;;  %v1663_v19 = vadd.f32 %v1662_v15, %v5391_v57  ;;  %v5445_v43 = vpop.permute.xlu0 %2905 }
 0x24b   :  { %7421 = vst [vmem:[#allocation33_spill] sm:$0xff] %v5445_v43 }
 0x24c   :  { %1664 = vadd.xlane.f32.xlu1 %v1663_v19 }
 0x24d   :  { %v5403_v41 = vpop.f32.mrb[44].mxu0 }
 0x24e   :  { %v5405_v50 = vpop.f32.mrb[45].mxu0  ;;  %v5459_v22 = vpop.permute.xlu0 %2915 }
 0x24f   :  { %v1666_v42 = vsel %vm1577_vm1, %v5405_v50, 0.0  ;;  %v5411_v30 = vpop.f32.mrb[46].mxu0  ;;  %7425 = vst [vmem:[#allocation37_spill] sm:$0xff] %v5459_v22 }
 0x250   :  { %v5413_v8 = vpop.f32.mrb[47].mxu0  ;;  %v1667_v63 = vadd.f32 %v1666_v42, %v5403_v41 }
 0x251   :  { %v1670_v15 = vsel %vm1577_vm1, %v5413_v8, 0.0 }
 0x252   :  { %1668 = vadd.xlane.f32.xlu0 %v1667_v63  ;;  %v1671_v19 = vadd.f32 %v1670_v15, %v5411_v30  ;;  %v5477_v22 = vpop.permute.xlu0 %2925 }
 0x253   :  { %7431 = vst [vmem:[#allocation43_spill] sm:$0xff] %v5477_v22 }
 0x254   :  { %1672 = vadd.xlane.f32.xlu1 %v1671_v19 }
 0x255   :  { %v5423_v47 = vpop.f32.mrb[48].mxu0 }
 0x256   :  { %v5425_v23 = vpop.f32.mrb[49].mxu0 }
 0x257   :  { %v1674_v16 = vsel %vm1577_vm1, %v5425_v23, 0.0  ;;  %v5429_v53 = vpop.f32.mrb[50].mxu0 }
 0x258   :  { %7415 = vst [vmem:[#allocation27_spill] sm:$0xff] %v5429_v53  ;;  %v5431_v42 = vpop.f32.mrb[51].mxu0  ;;  %v1675_v63 = vadd.f32 %v1674_v16, %v5423_v47 }
 0x259   :  { %7416 = vst [vmem:[#allocation28_spill] sm:$0xff] %v5431_v42  ;;  %v1678_v15 = vsel %vm1577_vm1, %v5431_v42, 0.0 }
 0x25a   :  { %1676 = vadd.xlane.f32.xlu0 %v1675_v63  ;;  %v1679_v19 = vadd.f32 %v1678_v15, %v5429_v53 }
 0x25c   :  { %1680 = vadd.xlane.f32.xlu1 %v1679_v19 }
 0x25d   :  { %v5441_v61 = vpop.f32.mrb[52].mxu0 }
 0x25e   :  { %7419 = vst [vmem:[#allocation31_spill] sm:$0xff] %v5441_v61  ;;  %v5443_v0 = vpop.f32.mrb[53].mxu0 }
 0x25f   :  { %7420 = vst [vmem:[#allocation32_spill] sm:$0xff] %v5443_v0  ;;  %v1682_v16 = vsel %vm1577_vm1, %v5443_v0, 0.0  ;;  %v5449_v54 = vpop.f32.mrb[54].mxu0  ;;  %v5465_v0 = vpop.permute.xlu1 %2900 }
 0x260   :  { %7422 = vst [vmem:[#allocation34_spill] sm:$0xff] %v5449_v54  ;;  %v5451_v7 = vpop.f32.mrb[55].mxu0  ;;  %v1683_v63 = vadd.f32 %v1682_v16, %v5441_v61  ;;  %7428 = vst [vmem:[#allocation40_spill] sm:$0xff] %v5465_v0 }
 0x261   :  { %7423 = vst [vmem:[#allocation35_spill] sm:$0xff] %v5451_v7  ;;  %v1686_v15 = vsel %vm1577_vm1, %v5451_v7, 0.0 }
 0x262   :  { %1684 = vadd.xlane.f32.xlu0 %v1683_v63  ;;  %v1687_v19 = vadd.f32 %v1686_v15, %v5449_v54 }
 0x263   :  { %v5479_v7 = vpop.permute.xlu1 %2910 }
 0x264   :  { %1688 = vadd.xlane.f32.xlu1 %v1687_v19  ;;  %7432 = vst [vmem:[#allocation44_spill] sm:$0xff] %v5479_v7 }
 0x265   :  { %v5461_v43 = vpop.f32.mrb[56].mxu0 }
 0x266   :  { %7426 = vst [vmem:[#allocation38_spill] sm:$0xff] %v5461_v43  ;;  %v5463_v46 = vpop.f32.mrb[57].mxu0 }
 0x267   :  { %7427 = vst [vmem:[#allocation39_spill] sm:$0xff] %v5463_v46  ;;  %v1690_v16 = vsel %vm1577_vm1, %v5463_v46, 0.0  ;;  %v5469_v61 = vpop.f32.mrb[58].mxu0  ;;  %v5497_v22 = vpop.permute.xlu1 %2920 }
 0x268   :  { %7429 = vst [vmem:[#allocation41_spill] sm:$0xff] %v5469_v61  ;;  %v5471_v35 = vpop.f32.mrb[59].mxu0  ;;  %v1691_v63 = vadd.f32 %v1690_v16, %v5461_v43  ;;  %7438 = vst [vmem:[#allocation50_spill] sm:$0xff] %v5497_v22 }
 0x269   :  { %7430 = vst [vmem:[#allocation42_spill] sm:$0xff] %v5471_v35  ;;  %v1694_v15 = vsel %vm1577_vm1, %v5471_v35, 0.0  ;;  %v5492_v35 = vpop.permute.xlu0 %2935 }
 0x26a   :  { %1692 = vadd.xlane.f32.xlu0 %v1691_v63  ;;  %v1695_v19 = vadd.f32 %v1694_v15, %v5469_v61  ;;  %7437 = vst [vmem:[#allocation49_spill] sm:$0xff] %v5492_v35 }
 0x26c   :  { %1696 = vadd.xlane.f32.xlu1 %v1695_v19 }
 0x26d   :  { %v5481_v0 = vpop.f32.mrb[60].mxu0  ;;  %v5503_v61 = vpop.permute.xlu0 %2945 }
 0x26e   :  { %7433 = vst [vmem:[#allocation45_spill] sm:$0xff] %v5481_v0  ;;  %v5483_v46 = vpop.f32.mrb[61].mxu0  ;;  %7441 = vst [vmem:[#allocation53_spill] sm:$0xff] %v5503_v61 }
 0x26f   :  { %7434 = vst [vmem:[#allocation46_spill] sm:$0xff] %v5483_v46  ;;  %v1698_v54 = vsel %vm1577_vm1, %v5483_v46, 0.0  ;;  %v5487_v42 = vpop.f32.mrb[62].mxu0 }
 0x270   :  { %7435 = vst [vmem:[#allocation47_spill] sm:$0xff] %v5487_v42  ;;  %v5489_v16 = vpop.f32.mrb[63].mxu0  ;;  %v1699_v63 = vadd.f32 %v1698_v54, %v5481_v0 }
 0x271   :  { %7436 = vst [vmem:[#allocation48_spill] sm:$0xff] %v5489_v16  ;;  %v1702_v15 = vsel %vm1577_vm1, %v5489_v16, 0.0  ;;  %v5512_v16 = vpop.permute.xlu1 %2930  ;;  %v5517_v22 = vpop.permute.xlu0 %2955 }
 0x272   :  { %1700 = vadd.xlane.f32.xlu0 %v1699_v63  ;;  %v1703_v19 = vadd.f32 %v1702_v15, %v5487_v42  ;;  %7444 = vst [vmem:[#allocation56_spill] sm:$0xff] %v5512_v16  ;;  %7445 = vst [vmem:[#allocation57_spill] sm:$0xff] %v5517_v22 }
 0x274   :  { %1704 = vadd.xlane.f32.xlu1 %v1703_v19 }
 0x275   :  { %v5499_v7 = vpop.f32.mrb[64].mxu0  ;;  %v5523_v42 = vpop.permute.xlu1 %2940 }
 0x276   :  { %7439 = vst [vmem:[#allocation51_spill] sm:$0xff] %v5499_v7  ;;  %v5501_v46 = vpop.f32.mrb[65].mxu0  ;;  %7448 = vst [vmem:[#allocation60_spill] sm:$0xff] %v5523_v42  ;;  %v5535_v22 = vpop.permute.xlu0 %2965 }
 0x277   :  { %7440 = vst [vmem:[#allocation52_spill] sm:$0xff] %v5501_v46  ;;  %v1706_v54 = vsel %vm1577_vm1, %v5501_v46, 0.0  ;;  %v5507_v0 = vpop.f32.mrb[66].mxu0  ;;  %7451 = vst [vmem:[#allocation63_spill] sm:$0xff] %v5535_v22 }
 0x278   :  { %7442 = vst [vmem:[#allocation54_spill] sm:$0xff] %v5507_v0  ;;  %v5509_v35 = vpop.f32.mrb[67].mxu0  ;;  %v1707_v63 = vadd.f32 %v1706_v54, %v5499_v7 }
 0x279   :  { %7443 = vst [vmem:[#allocation55_spill] sm:$0xff] %v5509_v35  ;;  %v1710_v15 = vsel %vm1577_vm1, %v5509_v35, 0.0  ;;  %v5537_v35 = vpop.permute.xlu1 %2950 }
 0x27a   :  { %1708 = vadd.xlane.f32.xlu0 %v1707_v63  ;;  %v1711_v19 = vadd.f32 %v1710_v15, %v5507_v0  ;;  %7452 = vst [vmem:[#allocation64_spill] sm:$0xff] %v5537_v35 }
 0x27c   :  { %1712 = vadd.xlane.f32.xlu1 %v1711_v19 }
 0x27d   :  { %v5519_v61 = vpop.f32.mrb[68].mxu0 }
 0x27e   :  { %7446 = vst [vmem:[#allocation58_spill] sm:$0xff] %v5519_v61  ;;  %v5521_v46 = vpop.f32.mrb[69].mxu0 }
 0x27f   :  { %7447 = vst [vmem:[#allocation59_spill] sm:$0xff] %v5521_v46  ;;  %v1714_v54 = vsel %vm1577_vm1, %v5521_v46, 0.0  ;;  %v5527_v7 = vpop.f32.mrb[70].mxu0 }
 0x280   :  { %7449 = vst [vmem:[#allocation61_spill] sm:$0xff] %v5527_v7  ;;  %v5529_v16 = vpop.f32.mrb[71].mxu0  ;;  %v1715_v63 = vadd.f32 %v1714_v54, %v5519_v61 }
 0x281   :  { %7450 = vst [vmem:[#allocation62_spill] sm:$0xff] %v5529_v16  ;;  %v1718_v15 = vsel %vm1577_vm1, %v5529_v16, 0.0 }
 0x282   :  { %1716 = vadd.xlane.f32.xlu0 %v1715_v63  ;;  %v1719_v19 = vadd.f32 %v1718_v15, %v5527_v7 }
 0x284   :  { %1720 = vadd.xlane.f32.xlu1 %v1719_v19 }
 0x285   :  { %v5539_v42 = vpop.f32.mrb[72].mxu0 }
 0x286   :  { %7453 = vst [vmem:[#allocation65_spill] sm:$0xff] %v5539_v42  ;;  %v5541_v46 = vpop.f32.mrb[73].mxu0 }
 0x287   :  { %7454 = vst [vmem:[#allocation66_spill] sm:$0xff] %v5541_v46  ;;  %v1722_v0 = vsel %vm1577_vm1, %v5541_v46, 0.0  ;;  %v1581_v43 = vpop.xlane.xlu0 %1580  ;;  %v5545_v54 = vpop.f32.mrb[74].mxu0 }
 0x288   :  { %7455 = vst [vmem:[#allocation67_spill] sm:$0xff] %v5545_v54  ;;  %v1738_v61 = vmul.f32 0.0051020407, %v1581_v43  ;;  %v5547_v16 = vpop.f32.mrb[75].mxu0  ;;  %v1723_v63 = vadd.f32 %v1722_v0, %v5539_v42  ;;  %v5559_v46 = vpop.permute.xlu1 %2960 }
 0x289   :  { %7456 = vst [vmem:[#allocation68_spill] sm:$0xff] %v5547_v16  ;;  %v1726_v15 = vsel %vm1577_vm1, %v5547_v16, 0.0  ;;  %7459 = vst [vmem:[#allocation71_spill] sm:$0xff] %v5559_v46 }
 0x28a   :  { %v5553_v19 = vsub.f32 %v5213_v1, %v1738_v61  ;;  %v5556_v22 = vsub.f32 %v5215_v2, %v1738_v61  ;;  %1724 = vadd.xlane.f32.xlu0 %v1723_v63  ;;  %v1727_v35 = vadd.f32 %v1726_v15, %v5545_v54 }
 0x28b   :  { %v1585_v7 = vpop.xlane.xlu0 %1584 }
 0x28c   :  { %7457 = vst [vmem:[#allocation69_spill] sm:$0xff] %v5553_v19  ;;  %7458 = vst [vmem:[#allocation70_spill] sm:$0xff] %v5556_v22  ;;  %v1739_v43 = vmul.f32 0.0051020407, %v1585_v7  ;;  %1728 = vadd.xlane.f32.xlu1 %v1727_v35  ;;  %v1858_v0 = vmul.f32 %v5553_v19, %v5553_v19  ;;  %v1859_v16 = vmul.f32 %v5556_v22, %v5556_v22 }
 0x28d   :  { %v5565_v42 = vpop.f32.mrb[76].mxu0 }
 0x28e   :  { %v5568_v1 = vsub.f32 %v5219_v4, %v1739_v43  ;;  %v5571_v2 = vsub.f32 %v5221_v5, %v1739_v43  ;;  %v5573_v61 = vpop.f32.mrb[77].mxu0  ;;  %v1938_v63 = vsel %vm1577_vm1, %v1859_v16, 0.0 }
 0x28f   :  { %7462 = vst [vmem:[#allocation74_spill] sm:$0xff] %v5573_v61  ;;  %v1730_v35 = vsel %vm1577_vm1, %v5573_v61, 0.0  ;;  %v1589_v7 = vpop.xlane.xlu1 %1588  ;;  %v5578_v15 = vpop.f32.mrb[78].mxu0  ;;  %v1939_v46 = vadd.f32 %v1938_v63, %v1858_v0 }
 0x290   :  { %7460 = vst [vmem:[#allocation72_spill] sm:$0xff] %v5568_v1  ;;  %7461 = vst [vmem:[#allocation73_spill] sm:$0xff] %v5571_v2  ;;  %v1740_v22 = vmul.f32 0.0051020407, %v1589_v7  ;;  %v5580_v19 = vpop.f32.mrb[79].mxu0  ;;  %v1860_v4 = vmul.f32 %v5568_v1, %v5568_v1  ;;  %v1861_v5 = vmul.f32 %v5571_v2, %v5571_v2  ;;  %v1731_v43 = vadd.f32 %v1730_v35, %v5565_v42 }
 0x291   :  { %v1734_v16 = vsel %vm1577_vm1, %v5580_v19, 0.0  ;;  %1940 = vadd.xlane.f32.xlu0 %v1939_v46 }
 0x292   :  { %v5590_v61 = vsub.f32 %v5227_v9, %v1740_v22  ;;  %v5593_v0 = vsub.f32 %v5229_v10, %v1740_v22  ;;  %v1942_v63 = vsel %vm1577_vm1, %v1861_v5, 0.0  ;;  %v1735_v7 = vadd.f32 %v1734_v16, %v5578_v15 }
 0x293   :  { %v1593_v1 = vpop.xlane.xlu1 %1592  ;;  %v1943_v54 = vadd.f32 %v1942_v63, %v1860_v4 }
 0x294   :  { %v1741_v53 = vmul.f32 0.0051020407, %v1593_v1  ;;  %v1862_v35 = vmul.f32 %v5590_v61, %v5590_v61  ;;  %v1863_v2 = vmul.f32 %v5593_v0, %v5593_v0 }
 0x295   :  { %1944 = vadd.xlane.f32.xlu1 %v1943_v54  ;;  %1732 = vadd.xlane.f32.xlu0 %v1731_v43 }
 0x296   :  { %v5602_v9 = vsub.f32 %v5233_v12, %v1741_v53  ;;  %v5605_v10 = vsub.f32 %v5235_v13, %v1741_v53  ;;  %v1946_v46 = vsel %vm1577_vm1, %v1863_v2, 0.0 }
 0x297   :  { %v1597_v22 = vpop.xlane.xlu0 %1596  ;;  %v1947_v5 = vadd.f32 %v1946_v46, %v1862_v35 }
 0x298   :  { %v1742_v4 = vmul.f32 0.0051020407, %v1597_v22  ;;  %v1864_v1 = vmul.f32 %v5602_v9, %v5602_v9  ;;  %v1865_v16 = vmul.f32 %v5605_v10, %v5605_v10 }
 0x299   :  { %v1601_v63 = vpop.xlane.xlu1 %1600  ;;  %1948 = vadd.xlane.f32.xlu0 %v1947_v5  ;;  %1736 = vadd.xlane.f32.xlu1 %v1735_v7 }
 0x29a   :  { %v5613_v12 = vsub.f32 %v5241_v17, %v1742_v4  ;;  %v5616_v13 = vsub.f32 %v5243_v18, %v1742_v4  ;;  %v1743_v53 = vmul.f32 0.0051020407, %v1601_v63  ;;  %v1950_v54 = vsel %vm1577_vm1, %v1865_v16, 0.0 }
 0x29b   :  { %v1951_v2 = vadd.f32 %v1950_v54, %v1864_v1 }
 0x29c   :  { %v5620_v43 = vsub.f32 %v5247_v20, %v1743_v53  ;;  %v5623_v35 = vsub.f32 %v5249_v21, %v1743_v53  ;;  %v1866_v46 = vmul.f32 %v5613_v12, %v5613_v12  ;;  %v1867_v17 = vmul.f32 %v5616_v13, %v5616_v13 }
 0x29d   :  { %1952 = vadd.xlane.f32.xlu1 %v1951_v2 }
 0x29e   :  { %v1954_v18 = vsel %vm1577_vm1, %v1867_v17, 0.0  ;;  %v1868_v7 = vmul.f32 %v5620_v43, %v5620_v43  ;;  %v1869_v22 = vmul.f32 %v5623_v35, %v5623_v35 }
 0x29f   :  { %v1605_v20 = vpop.xlane.xlu0 %1604  ;;  %v1955_v5 = vadd.f32 %v1954_v18, %v1866_v46 }
 0x2a0   :  { %v1744_v4 = vmul.f32 0.0051020407, %v1605_v20  ;;  %v1958_v21 = vsel %vm1577_vm1, %v1869_v22, 0.0 }
 0x2a1   :  { %v1609_v1 = vpop.xlane.xlu1 %1608  ;;  %1956 = vadd.xlane.f32.xlu0 %v1955_v5  ;;  %v1959_v16 = vadd.f32 %v1958_v21, %v1868_v7 }
 0x2a2   :  { %v5636_v63 = vsub.f32 %v5255_v25, %v1744_v4  ;;  %v5639_v53 = vsub.f32 %v5257_v26, %v1744_v4  ;;  %v1745_v54 = vmul.f32 0.0051020407, %v1609_v1 }
 0x2a3   :  { %1960 = vadd.xlane.f32.xlu1 %v1959_v16 }
 0x2a4   :  { %v5642_v2 = vsub.f32 %v5261_v28, %v1745_v54  ;;  %v5645_v17 = vsub.f32 %v5263_v29, %v1745_v54  ;;  %v1870_v46 = vmul.f32 %v5636_v63, %v5636_v63  ;;  %v1871_v18 = vmul.f32 %v5639_v53, %v5639_v53 }
 0x2a6   :  { %v1962_v25 = vsel %vm1577_vm1, %v1871_v18, 0.0  ;;  %v1872_v26 = vmul.f32 %v5642_v2, %v5642_v2  ;;  %v1873_v7 = vmul.f32 %v5645_v17, %v5645_v17 }
 0x2a7   :  { %v1613_v22 = vpop.xlane.xlu0 %1612  ;;  %v1963_v28 = vadd.f32 %v1962_v25, %v1870_v46 }
 0x2a8   :  { %v1746_v20 = vmul.f32 0.0051020407, %v1613_v22  ;;  %v1966_v29 = vsel %vm1577_vm1, %v1873_v7, 0.0 }
 0x2a9   :  { %v1617_v5 = vpop.xlane.xlu1 %1616  ;;  %1964 = vadd.xlane.f32.xlu0 %v1963_v28  ;;  %v1967_v4 = vadd.f32 %v1966_v29, %v1872_v26 }
 0x2aa   :  { %v5658_v21 = vsub.f32 %v5269_v33, %v1746_v20  ;;  %v5661_v1 = vsub.f32 %v5271_v34, %v1746_v20  ;;  %v1747_v16 = vmul.f32 0.0051020407, %v1617_v5 }
 0x2ab   :  { %1968 = vadd.xlane.f32.xlu1 %v1967_v4 }
 0x2ac   :  { %v5664_v54 = vsub.f32 %v5277_v37, %v1747_v16  ;;  %v5667_v18 = vsub.f32 %v5279_v39, %v1747_v16  ;;  %v1874_v46 = vmul.f32 %v5658_v21, %v5658_v21  ;;  %v1875_v25 = vmul.f32 %v5661_v1, %v5661_v1 }
 0x2ae   :  { %v1970_v33 = vsel %vm1577_vm1, %v1875_v25, 0.0  ;;  %v1876_v34 = vmul.f32 %v5664_v54, %v5664_v54  ;;  %v1877_v26 = vmul.f32 %v5667_v18, %v5667_v18 }
 0x2af   :  { %v1621_v7 = vpop.xlane.xlu0 %1620  ;;  %v1971_v37 = vadd.f32 %v1970_v33, %v1874_v46 }
 0x2b0   :  { %v1748_v22 = vmul.f32 0.0051020407, %v1621_v7  ;;  %v1974_v39 = vsel %vm1577_vm1, %v1877_v26, 0.0 }
 0x2b1   :  { %v1625_v28 = vpop.xlane.xlu1 %1624  ;;  %1972 = vadd.xlane.f32.xlu0 %v1971_v37  ;;  %v1975_v20 = vadd.f32 %v1974_v39, %v1876_v34 }
 0x2b2   :  { %v5680_v29 = vsub.f32 %v5287_v44, %v1748_v22  ;;  %v5683_v5 = vsub.f32 %v5289_v45, %v1748_v22  ;;  %v1749_v4 = vmul.f32 0.0051020407, %v1625_v28 }
 0x2b3   :  { %1976 = vadd.xlane.f32.xlu1 %v1975_v20 }
 0x2b4   :  { %v5686_v16 = vsub.f32 %v5295_v48, %v1749_v4  ;;  %v5689_v25 = vsub.f32 %v5297_v49, %v1749_v4  ;;  %v1878_v46 = vmul.f32 %v5680_v29, %v5680_v29  ;;  %v1879_v33 = vmul.f32 %v5683_v5, %v5683_v5 }
 0x2b6   :  { %v1978_v44 = vsel %vm1577_vm1, %v1879_v33, 0.0  ;;  %v1880_v45 = vmul.f32 %v5686_v16, %v5686_v16  ;;  %v1881_v34 = vmul.f32 %v5689_v25, %v5689_v25 }
 0x2b7   :  { %v1629_v26 = vpop.xlane.xlu0 %1628  ;;  %v1979_v48 = vadd.f32 %v1978_v44, %v1878_v46 }
 0x2b8   :  { %v1750_v7 = vmul.f32 0.0051020407, %v1629_v26  ;;  %v1982_v49 = vsel %vm1577_vm1, %v1881_v34, 0.0 }
 0x2b9   :  { %v1633_v37 = vpop.xlane.xlu1 %1632  ;;  %1980 = vadd.xlane.f32.xlu0 %v1979_v48  ;;  %v1983_v22 = vadd.f32 %v1982_v49, %v1880_v45 }
 0x2ba   :  { %v5702_v39 = vsub.f32 %v5307_v55, %v1750_v7  ;;  %v5705_v28 = vsub.f32 %v5309_v56, %v1750_v7  ;;  %v1751_v20 = vmul.f32 0.0051020407, %v1633_v37 }
 0x2bb   :  { %1984 = vadd.xlane.f32.xlu1 %v1983_v22 }
 0x2bc   :  { %v5708_v4 = vsub.f32 %v5313_v58, %v1751_v20  ;;  %v5711_v33 = vsub.f32 %v5315_v59, %v1751_v20  ;;  %v1882_v46 = vmul.f32 %v5702_v39, %v5702_v39  ;;  %v1883_v44 = vmul.f32 %v5705_v28, %v5705_v28 }
 0x2be   :  { %v1986_v55 = vsel %vm1577_vm1, %v1883_v44, 0.0  ;;  %v1884_v56 = vmul.f32 %v5708_v4, %v5708_v4  ;;  %v1885_v45 = vmul.f32 %v5711_v33, %v5711_v33 }
 0x2bf   :  { %v1637_v34 = vpop.xlane.xlu0 %1636  ;;  %v1987_v58 = vadd.f32 %v1986_v55, %v1882_v46 }
 0x2c0   :  { %v1752_v26 = vmul.f32 0.0051020407, %v1637_v34  ;;  %v1990_v59 = vsel %vm1577_vm1, %v1885_v45, 0.0 }
 0x2c1   :  { %v1641_v48 = vpop.xlane.xlu1 %1640  ;;  %1988 = vadd.xlane.f32.xlu0 %v1987_v58  ;;  %v1991_v7 = vadd.f32 %v1990_v59, %v1884_v56 }
 0x2c2   :  { %v5724_v49 = vsub.f32 %v5325_v3, %v1752_v26  ;;  %v5727_v37 = vsub.f32 %v5327_v6, %v1752_v26  ;;  %v1753_v22 = vmul.f32 0.0051020407, %v1641_v48 }
 0x2c3   :  { %1992 = vadd.xlane.f32.xlu1 %v1991_v7 }
 0x2c4   :  { %v5730_v20 = vsub.f32 %v5333_v11, %v1753_v22  ;;  %v5733_v44 = vsub.f32 %v5335_v14, %v1753_v22  ;;  %v1886_v46 = vmul.f32 %v5724_v49, %v5724_v49  ;;  %v1887_v55 = vmul.f32 %v5727_v37, %v5727_v37 }
 0x2c6   :  { %v1994_v3 = vsel %vm1577_vm1, %v1887_v55, 0.0  ;;  %v1888_v6 = vmul.f32 %v5730_v20, %v5730_v20  ;;  %v1889_v56 = vmul.f32 %v5733_v44, %v5733_v44 }
 0x2c7   :  { %v1645_v45 = vpop.xlane.xlu0 %1644  ;;  %v1995_v11 = vadd.f32 %v1994_v3, %v1886_v46 }
 0x2c8   :  { %v1754_v34 = vmul.f32 0.0051020407, %v1645_v45  ;;  %v1998_v14 = vsel %vm1577_vm1, %v1889_v56, 0.0 }
 0x2c9   :  { %v1649_v58 = vpop.xlane.xlu1 %1648  ;;  %1996 = vadd.xlane.f32.xlu0 %v1995_v11  ;;  %v1999_v26 = vadd.f32 %v1998_v14, %v1888_v6 }
 0x2ca   :  { %v5746_v59 = vsub.f32 %v5345_v24, %v1754_v34  ;;  %v5749_v48 = vsub.f32 %v5347_v27, %v1754_v34  ;;  %v1755_v7 = vmul.f32 0.0051020407, %v1649_v58 }
 0x2cb   :  { %2000 = vadd.xlane.f32.xlu1 %v1999_v26 }
 0x2cc   :  { %v5752_v22 = vsub.f32 %v5353_v32, %v1755_v7  ;;  %v5755_v55 = vsub.f32 %v5355_v36, %v1755_v7  ;;  %v1890_v46 = vmul.f32 %v5746_v59, %v5746_v59  ;;  %v1891_v3 = vmul.f32 %v5749_v48, %v5749_v48 }
 0x2ce   :  { %v2002_v24 = vsel %vm1577_vm1, %v1891_v3, 0.0  ;;  %v1892_v27 = vmul.f32 %v5752_v22, %v5752_v22  ;;  %v1893_v6 = vmul.f32 %v5755_v55, %v5755_v55 }
 0x2cf   :  { %v1653_v56 = vpop.xlane.xlu0 %1652  ;;  %v2003_v32 = vadd.f32 %v2002_v24, %v1890_v46 }
 0x2d0   :  { %v1756_v45 = vmul.f32 0.0051020407, %v1653_v56  ;;  %v2006_v36 = vsel %vm1577_vm1, %v1893_v6, 0.0 }
 0x2d1   :  { %v1657_v11 = vpop.xlane.xlu1 %1656  ;;  %2004 = vadd.xlane.f32.xlu0 %v2003_v32  ;;  %v2007_v34 = vadd.f32 %v2006_v36, %v1892_v27 }
 0x2d2   :  { %v5768_v14 = vsub.f32 %v5365_v51, %v1756_v45  ;;  %v5771_v58 = vsub.f32 %v5367_v52, %v1756_v45  ;;  %v1757_v26 = vmul.f32 0.0051020407, %v1657_v11 }
 0x2d3   :  { %2008 = vadd.xlane.f32.xlu1 %v2007_v34 }
 0x2d4   :  { %v5774_v7 = vsub.f32 %v5371_v60, %v1757_v26  ;;  %v5777_v3 = vsub.f32 %v5373_v62, %v1757_v26  ;;  %v1894_v46 = vmul.f32 %v5768_v14, %v5768_v14  ;;  %v1895_v24 = vmul.f32 %v5771_v58, %v5771_v58 }
 0x2d6   :  { %v2010_v51 = vsel %vm1577_vm1, %v1895_v24, 0.0  ;;  %v1896_v52 = vmul.f32 %v5774_v7, %v5774_v7  ;;  %v1897_v27 = vmul.f32 %v5777_v3, %v5777_v3 }
 0x2d7   :  { %v1661_v6 = vpop.xlane.xlu0 %1660  ;;  %v2011_v60 = vadd.f32 %v2010_v51, %v1894_v46 }
 0x2d8   :  { %v1758_v56 = vmul.f32 0.0051020407, %v1661_v6  ;;  %v2014_v62 = vsel %vm1577_vm1, %v1897_v27, 0.0 }
 0x2d9   :  { %v1665_v32 = vpop.xlane.xlu1 %1664  ;;  %2012 = vadd.xlane.f32.xlu0 %v2011_v60  ;;  %v2015_v45 = vadd.f32 %v2014_v62, %v1896_v52 }
 0x2da   :  { %v5790_v36 = vsub.f32 %v5383_v31, %v1758_v56  ;;  %v5793_v11 = vsub.f32 %v5385_v40, %v1758_v56  ;;  %v1759_v34 = vmul.f32 0.0051020407, %v1665_v32 }
 0x2db   :  { %2016 = vadd.xlane.f32.xlu1 %v2015_v45 }
 0x2dc   :  { %v1898_v26 = vmul.f32 %v5790_v36, %v5790_v36  ;;  %v1899_v46 = vmul.f32 %v5793_v11, %v5793_v11  ;;  %v5800_v24 = vsub.f32 %v5391_v57, %v1759_v34  ;;  %v5803_v51 = vsub.f32 %v5393_v38, %v1759_v34 }
 0x2de   :  { %v1900_v31 = vmul.f32 %v5800_v24, %v5800_v24  ;;  %v1901_v40 = vmul.f32 %v5803_v51, %v5803_v51  ;;  %v2018_v52 = vsel %vm1577_vm1, %v1899_v46, 0.0 }
 0x2df   :  { %v1669_v27 = vpop.xlane.xlu0 %1668  ;;  %v2019_v6 = vadd.f32 %v2018_v52, %v1898_v26 }
 0x2e0   :  { %v1760_v60 = vmul.f32 0.0051020407, %v1669_v27  ;;  %v2022_v56 = vsel %vm1577_vm1, %v1901_v40, 0.0 }
 0x2e1   :  { %v1673_v62 = vpop.xlane.xlu1 %1672  ;;  %2020 = vadd.xlane.f32.xlu0 %v2019_v6  ;;  %v2023_v57 = vadd.f32 %v2022_v56, %v1900_v31 }
 0x2e2   :  { %v5812_v32 = vsub.f32 %v5403_v41, %v1760_v60  ;;  %v5815_v38 = vsub.f32 %v5405_v50, %v1760_v60  ;;  %v1761_v45 = vmul.f32 0.0051020407, %v1673_v62 }
 0x2e3   :  { %2024 = vadd.xlane.f32.xlu1 %v2023_v57 }
 0x2e4   :  { %v1902_v34 = vmul.f32 %v5812_v32, %v5812_v32  ;;  %v1903_v26 = vmul.f32 %v5815_v38, %v5815_v38  ;;  %v5822_v46 = vsub.f32 %v5411_v30, %v1761_v45  ;;  %v5825_v40 = vsub.f32 %v5413_v8, %v1761_v45 }
 0x2e6   :  { %7463 = vst [vmem:[#allocation75_spill] sm:$0xff] %v5825_v40  ;;  %v1904_v41 = vmul.f32 %v5822_v46, %v5822_v46  ;;  %v1905_v50 = vmul.f32 %v5825_v40, %v5825_v40  ;;  %v2026_v31 = vsel %vm1577_vm1, %v1903_v26, 0.0  ;;  %v7466_v26 = vld [vmem:[#allocation27_spill] sm:$0xff] }
 0x2e7   :  { %v1677_v52 = vpop.xlane.xlu0 %1676  ;;  %v2027_v27 = vadd.f32 %v2026_v31, %v1902_v34 }
 0x2e8   :  { %v1762_v6 = vmul.f32 0.0051020407, %v1677_v52  ;;  %v2030_v60 = vsel %vm1577_vm1, %v1905_v50, 0.0  ;;  %v7468_v50 = vld [vmem:[#allocation28_spill] sm:$0xff] }
 0x2e9   :  { %v1681_v56 = vpop.xlane.xlu1 %1680  ;;  %2028 = vadd.xlane.f32.xlu0 %v2027_v27  ;;  %v2031_v30 = vadd.f32 %v2030_v60, %v1904_v41 }
 0x2ea   :  { %v5834_v62 = vsub.f32 %v5423_v47, %v1762_v6  ;;  %v5837_v8 = vsub.f32 %v5425_v23, %v1762_v6  ;;  %v1763_v57 = vmul.f32 0.0051020407, %v1681_v56 }
 0x2eb   :  { %2032 = vadd.xlane.f32.xlu1 %v2031_v30 }
 0x2ec   :  { %7464 = vst [vmem:[#allocation76_spill] sm:$0xff] %v5834_v62  ;;  %7465 = vst [vmem:[#allocation77_spill] sm:$0xff] %v5837_v8  ;;  %v1906_v45 = vmul.f32 %v5834_v62, %v5834_v62  ;;  %v1907_v34 = vmul.f32 %v5837_v8, %v5837_v8  ;;  %v5844_v31 = vsub.f32 %v7466_v26, %v1763_v57  ;;  %v7470_v8 = vld [vmem:[#allocation31_spill] sm:$0xff] }
 0x2ed   :  { %v5847_v52 = vsub.f32 %v7468_v50, %v1763_v57  ;;  %v7472_v57 = vld [vmem:[#allocation32_spill] sm:$0xff] }
 0x2ee   :  { %7467 = vst [vmem:[#allocation27_spill] sm:$0xff] %v5844_v31  ;;  %v1908_v47 = vmul.f32 %v5844_v31, %v5844_v31  ;;  %v2034_v41 = vsel %vm1577_vm1, %v1907_v34, 0.0  ;;  %v7474_v34 = vld [vmem:[#allocation34_spill] sm:$0xff] }
 0x2ef   :  { %7469 = vst [vmem:[#allocation28_spill] sm:$0xff] %v5847_v52  ;;  %v1909_v23 = vmul.f32 %v5847_v52, %v5847_v52  ;;  %v1685_v27 = vpop.xlane.xlu0 %1684  ;;  %v2035_v6 = vadd.f32 %v2034_v41, %v1906_v45 }
 0x2f0   :  { %v1764_v60 = vmul.f32 0.0051020407, %v1685_v27 }
 0x2f1   :  { %v2038_v56 = vsel %vm1577_vm1, %v1909_v23, 0.0  ;;  %v1689_v30 = vpop.xlane.xlu1 %1688  ;;  %2036 = vadd.xlane.f32.xlu0 %v2035_v6  ;;  %v7476_v23 = vld [vmem:[#allocation35_spill] sm:$0xff] }
 0x2f2   :  { %v2039_v26 = vadd.f32 %v2038_v56, %v1908_v47  ;;  %v5856_v62 = vsub.f32 %v7470_v8, %v1764_v60  ;;  %v5859_v50 = vsub.f32 %v7472_v57, %v1764_v60  ;;  %v1765_v31 = vmul.f32 0.0051020407, %v1689_v30 }
 0x2f4   :  { %7471 = vst [vmem:[#allocation31_spill] sm:$0xff] %v5856_v62  ;;  %7473 = vst [vmem:[#allocation32_spill] sm:$0xff] %v5859_v50  ;;  %2040 = vadd.xlane.f32.xlu1 %v2039_v26  ;;  %v1910_v52 = vmul.f32 %v5856_v62, %v5856_v62  ;;  %v1911_v45 = vmul.f32 %v5859_v50, %v5859_v50  ;;  %v5866_v41 = vsub.f32 %v7474_v34, %v1765_v31  ;;  %v7478_v50 = vld [vmem:[#allocation38_spill] sm:$0xff] }
 0x2f5   :  { %v5869_v27 = vsub.f32 %v7476_v23, %v1765_v31  ;;  %v7480_v31 = vld [vmem:[#allocation39_spill] sm:$0xff] }
 0x2f6   :  { %7475 = vst [vmem:[#allocation34_spill] sm:$0xff] %v5866_v41  ;;  %v1912_v8 = vmul.f32 %v5866_v41, %v5866_v41  ;;  %v2042_v6 = vsel %vm1577_vm1, %v1911_v45, 0.0  ;;  %v7482_v45 = vld [vmem:[#allocation41_spill] sm:$0xff] }
 0x2f7   :  { %7477 = vst [vmem:[#allocation35_spill] sm:$0xff] %v5869_v27  ;;  %v1913_v47 = vmul.f32 %v5869_v27, %v5869_v27  ;;  %v1693_v60 = vpop.xlane.xlu0 %1692  ;;  %v2043_v56 = vadd.f32 %v2042_v6, %v1910_v52 }
 0x2f8   :  { %v1766_v30 = vmul.f32 0.0051020407, %v1693_v60 }
 0x2f9   :  { %v2046_v26 = vsel %vm1577_vm1, %v1913_v47, 0.0  ;;  %v1697_v57 = vpop.xlane.xlu1 %1696  ;;  %2044 = vadd.xlane.f32.xlu0 %v2043_v56  ;;  %v7484_v47 = vld [vmem:[#allocation42_spill] sm:$0xff] }
 0x2fa   :  { %v2047_v34 = vadd.f32 %v2046_v26, %v1912_v8  ;;  %v5878_v62 = vsub.f32 %v7478_v50, %v1766_v30  ;;  %v5881_v23 = vsub.f32 %v7480_v31, %v1766_v30  ;;  %v1767_v41 = vmul.f32 0.0051020407, %v1697_v57 }
 0x2fc   :  { %7479 = vst [vmem:[#allocation38_spill] sm:$0xff] %v5878_v62  ;;  %7481 = vst [vmem:[#allocation39_spill] sm:$0xff] %v5881_v23  ;;  %2048 = vadd.xlane.f32.xlu1 %v2047_v34  ;;  %v1914_v27 = vmul.f32 %v5878_v62, %v5878_v62  ;;  %v1915_v52 = vmul.f32 %v5881_v23, %v5881_v23  ;;  %v5888_v6 = vsub.f32 %v7482_v45, %v1767_v41  ;;  %v7486_v23 = vld [vmem:[#allocation45_spill] sm:$0xff] }
 0x2fd   :  { %v5891_v60 = vsub.f32 %v7484_v47, %v1767_v41  ;;  %v7488_v41 = vld [vmem:[#allocation46_spill] sm:$0xff] }
 0x2fe   :  { %7483 = vst [vmem:[#allocation41_spill] sm:$0xff] %v5888_v6  ;;  %v1916_v50 = vmul.f32 %v5888_v6, %v5888_v6  ;;  %v2050_v56 = vsel %vm1577_vm1, %v1915_v52, 0.0  ;;  %v7490_v52 = vld [vmem:[#allocation47_spill] sm:$0xff] }
 0x2ff   :  { %7485 = vst [vmem:[#allocation42_spill] sm:$0xff] %v5891_v60  ;;  %v1917_v8 = vmul.f32 %v5891_v60, %v5891_v60  ;;  %v1701_v30 = vpop.xlane.xlu0 %1700  ;;  %v2051_v26 = vadd.f32 %v2050_v56, %v1914_v27 }
 0x300   :  { %v1768_v57 = vmul.f32 0.0051020407, %v1701_v30 }
 0x301   :  { %v2054_v34 = vsel %vm1577_vm1, %v1917_v8, 0.0  ;;  %v1705_v31 = vpop.xlane.xlu1 %1704  ;;  %2052 = vadd.xlane.f32.xlu0 %v2051_v26  ;;  %v7492_v8 = vld [vmem:[#allocation48_spill] sm:$0xff] }
 0x302   :  { %v2055_v45 = vadd.f32 %v2054_v34, %v1916_v50  ;;  %v5900_v62 = vsub.f32 %v7486_v23, %v1768_v57  ;;  %v5903_v47 = vsub.f32 %v7488_v41, %v1768_v57  ;;  %v1769_v6 = vmul.f32 0.0051020407, %v1705_v31 }
 0x304   :  { %7487 = vst [vmem:[#allocation45_spill] sm:$0xff] %v5900_v62  ;;  %7489 = vst [vmem:[#allocation46_spill] sm:$0xff] %v5903_v47  ;;  %2056 = vadd.xlane.f32.xlu1 %v2055_v45  ;;  %v1918_v60 = vmul.f32 %v5900_v62, %v5900_v62  ;;  %v1919_v27 = vmul.f32 %v5903_v47, %v5903_v47  ;;  %v5910_v56 = vsub.f32 %v7490_v52, %v1769_v6  ;;  %v7494_v47 = vld [vmem:[#allocation51_spill] sm:$0xff] }
 0x305   :  { %v5913_v30 = vsub.f32 %v7492_v8, %v1769_v6  ;;  %v7496_v6 = vld [vmem:[#allocation52_spill] sm:$0xff] }
 0x306   :  { %7491 = vst [vmem:[#allocation47_spill] sm:$0xff] %v5910_v56  ;;  %v1920_v23 = vmul.f32 %v5910_v56, %v5910_v56  ;;  %v2058_v26 = vsel %vm1577_vm1, %v1919_v27, 0.0  ;;  %v7498_v27 = vld [vmem:[#allocation54_spill] sm:$0xff] }
 0x307   :  { %7493 = vst [vmem:[#allocation48_spill] sm:$0xff] %v5913_v30  ;;  %v1921_v50 = vmul.f32 %v5913_v30, %v5913_v30  ;;  %v1709_v57 = vpop.xlane.xlu0 %1708  ;;  %v2059_v34 = vadd.f32 %v2058_v26, %v1918_v60 }
 0x308   :  { %v1770_v31 = vmul.f32 0.0051020407, %v1709_v57 }
 0x309   :  { %v2062_v45 = vsel %vm1577_vm1, %v1921_v50, 0.0  ;;  %v1713_v41 = vpop.xlane.xlu1 %1712  ;;  %2060 = vadd.xlane.f32.xlu0 %v2059_v34  ;;  %v7500_v50 = vld [vmem:[#allocation55_spill] sm:$0xff] }
 0x30a   :  { %v2063_v52 = vadd.f32 %v2062_v45, %v1920_v23  ;;  %v5922_v62 = vsub.f32 %v7494_v47, %v1770_v31  ;;  %v5925_v8 = vsub.f32 %v7496_v6, %v1770_v31  ;;  %v1771_v56 = vmul.f32 0.0051020407, %v1713_v41 }
 0x30c   :  { %7495 = vst [vmem:[#allocation51_spill] sm:$0xff] %v5922_v62  ;;  %7497 = vst [vmem:[#allocation52_spill] sm:$0xff] %v5925_v8  ;;  %2064 = vadd.xlane.f32.xlu1 %v2063_v52  ;;  %v1922_v30 = vmul.f32 %v5922_v62, %v5922_v62  ;;  %v1923_v60 = vmul.f32 %v5925_v8, %v5925_v8  ;;  %v5932_v26 = vsub.f32 %v7498_v27, %v1771_v56  ;;  %v7502_v8 = vld [vmem:[#allocation58_spill] sm:$0xff] }
 0x30d   :  { %v5935_v57 = vsub.f32 %v7500_v50, %v1771_v56  ;;  %v7504_v56 = vld [vmem:[#allocation59_spill] sm:$0xff] }
 0x30e   :  { %7499 = vst [vmem:[#allocation54_spill] sm:$0xff] %v5932_v26  ;;  %v1924_v47 = vmul.f32 %v5932_v26, %v5932_v26  ;;  %v2066_v34 = vsel %vm1577_vm1, %v1923_v60, 0.0  ;;  %v7506_v60 = vld [vmem:[#allocation61_spill] sm:$0xff] }
 0x30f   :  { %7501 = vst [vmem:[#allocation55_spill] sm:$0xff] %v5935_v57  ;;  %v1925_v23 = vmul.f32 %v5935_v57, %v5935_v57  ;;  %v1717_v31 = vpop.xlane.xlu0 %1716  ;;  %v2067_v45 = vadd.f32 %v2066_v34, %v1922_v30 }
 0x310   :  { %v1772_v41 = vmul.f32 0.0051020407, %v1717_v31 }
 0x311   :  { %v2070_v52 = vsel %vm1577_vm1, %v1925_v23, 0.0  ;;  %v1721_v6 = vpop.xlane.xlu1 %1720  ;;  %2068 = vadd.xlane.f32.xlu0 %v2067_v45  ;;  %v7508_v23 = vld [vmem:[#allocation62_spill] sm:$0xff] }
 0x312   :  { %v2071_v27 = vadd.f32 %v2070_v52, %v1924_v47  ;;  %v5944_v62 = vsub.f32 %v7502_v8, %v1772_v41  ;;  %v5947_v50 = vsub.f32 %v7504_v56, %v1772_v41  ;;  %v1773_v26 = vmul.f32 0.0051020407, %v1721_v6 }
 0x314   :  { %7503 = vst [vmem:[#allocation58_spill] sm:$0xff] %v5944_v62  ;;  %7505 = vst [vmem:[#allocation59_spill] sm:$0xff] %v5947_v50  ;;  %2072 = vadd.xlane.f32.xlu1 %v2071_v27  ;;  %v1926_v57 = vmul.f32 %v5944_v62, %v5944_v62  ;;  %v1927_v30 = vmul.f32 %v5947_v50, %v5947_v50  ;;  %v5954_v34 = vsub.f32 %v7506_v60, %v1773_v26  ;;  %v7510_v50 = vld [vmem:[#allocation65_spill] sm:$0xff] }
 0x315   :  { %v5957_v31 = vsub.f32 %v7508_v23, %v1773_v26  ;;  %v7512_v26 = vld [vmem:[#allocation66_spill] sm:$0xff] }
 0x316   :  { %7507 = vst [vmem:[#allocation61_spill] sm:$0xff] %v5954_v34  ;;  %v1928_v8 = vmul.f32 %v5954_v34, %v5954_v34  ;;  %v2074_v45 = vsel %vm1577_vm1, %v1927_v30, 0.0  ;;  %v7514_v30 = vld [vmem:[#allocation67_spill] sm:$0xff] }
 0x317   :  { %7509 = vst [vmem:[#allocation62_spill] sm:$0xff] %v5957_v31  ;;  %v1929_v47 = vmul.f32 %v5957_v31, %v5957_v31  ;;  %v1725_v41 = vpop.xlane.xlu0 %1724  ;;  %v2075_v52 = vadd.f32 %v2074_v45, %v1926_v57 }
 0x318   :  { %v1774_v6 = vmul.f32 0.0051020407, %v1725_v41 }
 0x319   :  { %v2078_v27 = vsel %vm1577_vm1, %v1929_v47, 0.0  ;;  %v1729_v56 = vpop.xlane.xlu1 %1728  ;;  %2076 = vadd.xlane.f32.xlu0 %v2075_v52  ;;  %v7516_v47 = vld [vmem:[#allocation68_spill] sm:$0xff] }
 0x31a   :  { %v2079_v60 = vadd.f32 %v2078_v27, %v1928_v8  ;;  %v5966_v62 = vsub.f32 %v7510_v50, %v1774_v6  ;;  %v5969_v23 = vsub.f32 %v7512_v26, %v1774_v6  ;;  %v1775_v34 = vmul.f32 0.0051020407, %v1729_v56 }
 0x31c   :  { %7511 = vst [vmem:[#allocation65_spill] sm:$0xff] %v5966_v62  ;;  %7513 = vst [vmem:[#allocation66_spill] sm:$0xff] %v5969_v23  ;;  %2080 = vadd.xlane.f32.xlu1 %v2079_v60  ;;  %v1930_v31 = vmul.f32 %v5966_v62, %v5966_v62  ;;  %v1931_v57 = vmul.f32 %v5969_v23, %v5969_v23  ;;  %v5976_v45 = vsub.f32 %v7514_v30, %v1775_v34 }
 0x31d   :  { %v5979_v41 = vsub.f32 %v7516_v47, %v1775_v34  ;;  %v7519_v47 = vld [vmem:[#allocation74_spill] sm:$0xff] }
 0x31e   :  { %7515 = vst [vmem:[#allocation67_spill] sm:$0xff] %v5976_v45  ;;  %v1932_v50 = vmul.f32 %v5976_v45, %v5976_v45  ;;  %v1941_v52 = vpop.xlane.xlu0 %1940  ;;  %v2082_v6 = vsel %vm1577_vm1, %v1931_v57, 0.0 }
 0x31f   :  { %7517 = vst [vmem:[#allocation68_spill] sm:$0xff] %v5979_v41  ;;  %v1933_v8 = vmul.f32 %v5979_v41, %v5979_v41  ;;  %v2083_v27 = vadd.f32 %v2082_v6, %v1930_v31 }
 0x321   :  { %v2086_v56 = vsel %vm1577_vm1, %v1933_v8, 0.0  ;;  %2084 = vadd.xlane.f32.xlu0 %v2083_v27  ;;  %v2098_v8 = vmul.f32 0.0051020407, %v1941_v52 }
 0x322   :  { %v2087_v60 = vadd.f32 %v2086_v56, %v1932_v50  ;;  %v1945_v26 = vpop.xlane.xlu1 %1944  ;;  %v1733_v30 = vpop.xlane.xlu0 %1732 }
 0x323   :  { %v1776_v23 = vmul.f32 0.0051020407, %v1733_v30 }
 0x324   :  { %2088 = vadd.xlane.f32.xlu1 %v2087_v60 }
 0x325   :  { %v5988_v34 = vsub.f32 %v5565_v42, %v1776_v23  ;;  %v5991_v45 = vsub.f32 %v7519_v47, %v1776_v23  ;;  %v2099_v23 = vmul.f32 0.0051020407, %v1945_v26 }
 0x326   :  { %v1737_v62 = vpop.xlane.xlu1 %1736  ;;  %v1949_v56 = vpop.xlane.xlu0 %1948 }
 0x327   :  { %7518 = vst [vmem:[#allocation78_spill] sm:$0xff] %v5988_v34  ;;  %7520 = vst [vmem:[#allocation74_spill] sm:$0xff] %v5991_v45  ;;  %v1934_v41 = vmul.f32 %v5988_v34, %v5988_v34  ;;  %v1935_v31 = vmul.f32 %v5991_v45, %v5991_v45  ;;  %v1777_v57 = vmul.f32 0.0051020407, %v1737_v62  ;;  %v2178_v62 = vadd.f32 1e-05, %v2098_v8 }
 0x328   :  { %v2179_v52 = vadd.f32 1e-05, %v2099_v23 }
 0x329   :  { %v2090_v50 = vsel %vm1577_vm1, %v1935_v31, 0.0  ;;  %v5999_v6 = vsub.f32 %v5578_v15, %v1777_v57  ;;  %v6002_v42 = vsub.f32 %v5580_v19, %v1777_v57  ;;  %v2100_v31 = vmul.f32 0.0051020407, %v1949_v56  ;;  %v2139_v56 = vld [vmem:[%s7254_s3 + $0x8] sm:$0xff] }
 0x32a   :  { %v2091_v27 = vadd.f32 %v2090_v50, %v1934_v41  ;;  %v1953_v45 = vpop.xlane.xlu1 %1952  ;;  %4216 = vrsqrt.f32 %v2178_v62 }
 0x32b   :  { %7521 = vst [vmem:[#allocation79_spill] sm:$0xff] %v5999_v6  ;;  %7522 = vst [vmem:[#allocation80_spill] sm:$0xff] %v6002_v42  ;;  %v1936_v60 = vmul.f32 %v5999_v6, %v5999_v6  ;;  %v1937_v30 = vmul.f32 %v6002_v42, %v6002_v42  ;;  %4218 = vrsqrt.f32 %v2179_v52  ;;  %v2180_v19 = vadd.f32 1e-05, %v2100_v31 }
 0x32c   :  { %2092 = vadd.xlane.f32.xlu0 %v2091_v27  ;;  %v2101_v41 = vmul.f32 0.0051020407, %v1953_v45  ;;  %v2138_v45 = vld [vmem:[%s7254_s3] sm:$0xff] }
 0x32d   :  { %v2094_v47 = vsel %vm1577_vm1, %v1937_v30, 0.0  ;;  %4220 = vrsqrt.f32 %v2180_v19  ;;  %v2140_v19 = vld [vmem:[%s7254_s3 + $0x10] sm:$0xff] }
 0x32e   :  { %v2095_v15 = vadd.f32 %v2094_v47, %v1936_v60  ;;  %v1957_v26 = vpop.xlane.xlu0 %1956  ;;  %v2181_v57 = vadd.f32 1e-05, %v2101_v41 }
 0x32f   :  { %v2102_v50 = vmul.f32 0.0051020407, %v1957_v26 }
 0x330   :  { %2096 = vadd.xlane.f32.xlu1 %v2095_v15  ;;  %v1961_v6 = vpop.xlane.xlu1 %1960  ;;  %4222 = vrsqrt.f32 %v2181_v57 }
 0x331   :  { %v2182_v42 = vadd.f32 1e-05, %v2102_v50  ;;  %v2103_v27 = vmul.f32 0.0051020407, %v1961_v6 }
 0x333   :  { %4224 = vrsqrt.f32 %v2182_v42  ;;  %v2183_v60 = vadd.f32 1e-05, %v2103_v27 }
 0x334   :  { %v4217_v8 = vpop.eup %4216 }
 0x335   :  { %v4219_v23 = vpop.eup %4218  ;;  %v2258_v31 = vmul.f32 %v4217_v8, %v2138_v45  ;;  %4226 = vrsqrt.f32 %v2183_v60 }
 0x336   :  { %v1965_v34 = vpop.xlane.xlu0 %1964  ;;  %v2259_v52 = vmul.f32 %v4219_v23, %v2139_v56 }
 0x337   :  { %v2104_v62 = vmul.f32 0.0051020407, %v1965_v34  ;;  %v4221_v15 = vpop.eup %4220  ;;  %v2141_v34 = vld [vmem:[%s7254_s3 + $0x18] sm:$0xff] }
 0x338   :  { %v1969_v30 = vpop.xlane.xlu1 %1968  ;;  %v2260_v40 = vmul.f32 %v4221_v15, %v2140_v19  ;;  %v2147_v19 = vld [vmem:[%s7254_s3 + $0x48] sm:$0xff] }
 0x339   :  { %v2184_v41 = vadd.f32 1e-05, %v2104_v62  ;;  %v2105_v26 = vmul.f32 0.0051020407, %v1969_v30  ;;  %v2142_v30 = vld [vmem:[%s7254_s3 + $0x20] sm:$0xff] }
 0x33a   :  { %v4223_v42 = vpop.eup %4222 }
 0x33b   :  { %v2185_v27 = vadd.f32 1e-05, %v2105_v26  ;;  %v2261_v45 = vmul.f32 %v4223_v42, %v2141_v34 }
 0x33e   :  { %v1973_v50 = vpop.xlane.xlu0 %1972 }
 0x33f   :  { %v2106_v8 = vmul.f32 0.0051020407, %v1973_v50 }
 0x340   :  { %v1977_v47 = vpop.xlane.xlu1 %1976 }
 0x341   :  { %v2107_v6 = vmul.f32 0.0051020407, %v1977_v47  ;;  %2385 = vperm.xlu1 %4134, %v2259_v52   ;;  %v4225_v47 = vpop.eup %4224  ;;  %v2186_v62 = vadd.f32 1e-05, %v2106_v8 }
 0x342   :  { %2380 = vperm.xlu0 %4135, %v2258_v31   ;;  %v2262_v15 = vmul.f32 %v4225_v47, %v2142_v30 }
 0x343   :  { %v2187_v57 = vadd.f32 1e-05, %v2107_v6  ;;  %v4227_v6 = vpop.eup %4226 }
 0x345   :  { %4228 = vrsqrt.f32 %v2187_v57  ;;  %2390 = vperm.xlu1 %4134, %v2260_v40   ;;  %v2143_v40 = vld [vmem:[%s7254_s3 + $0x28] sm:$0xff] }
 0x346   :  { %4230 = vrsqrt.f32 %v2184_v41  ;;  %v1981_v23 = vpop.xlane.xlu0 %1980  ;;  %v2263_v34 = vmul.f32 %v4227_v6, %v2143_v40 }
 0x347   :  { %4232 = vrsqrt.f32 %v2185_v27  ;;  %v2108_v52 = vmul.f32 0.0051020407, %v1981_v23 }
 0x348   :  { %v1985_v56 = vpop.xlane.xlu1 %1984 }
 0x349   :  { %v2109_v60 = vmul.f32 0.0051020407, %v1985_v56  ;;  %2395 = vperm.xlu1 %4134, %v2261_v45   ;;  %v2188_v57 = vadd.f32 1e-05, %v2108_v52  ;;  %v2144_v56 = vld [vmem:[%s7254_s3 + $0x30] sm:$0xff]  ;;  %v2149_v52 = vld [vmem:[%s7254_s3 + $0x58] sm:$0xff] }
 0x34b   :  { %v2189_v31 = vadd.f32 1e-05, %v2109_v60 }
 0x34d   :  { %4234 = vrsqrt.f32 %v2189_v31  ;;  %2400 = vperm.xlu1 %4134, %v2262_v15  }
 0x34e   :  { %v1989_v41 = vpop.xlane.xlu0 %1988  ;;  %4236 = vrsqrt.f32 %v2186_v62  ;;  %v2145_v62 = vld [vmem:[%s7254_s3 + $0x38] sm:$0xff] }
 0x34f   :  { %v4229_v26 = vpop.eup %4228  ;;  %v2110_v50 = vmul.f32 0.0051020407, %v1989_v41  ;;  %4238 = vrsqrt.f32 %v2188_v57 }
 0x350   :  { %v1993_v42 = vpop.xlane.xlu1 %1992  ;;  %v2267_v27 = vmul.f32 %v4229_v26, %v2147_v19  ;;  %v4231_v8 = vpop.eup %4230 }
 0x351   :  { %v2111_v23 = vmul.f32 0.0051020407, %v1993_v42  ;;  %2405 = vperm.xlu1 %4134, %v2263_v34   ;;  %v2190_v45 = vadd.f32 1e-05, %v2110_v50  ;;  %v2264_v60 = vmul.f32 %v4231_v8, %v2144_v56  ;;  %v4233_v30 = vpop.eup %4232  ;;  %v2146_v42 = vld [vmem:[%s7254_s3 + $0x40] sm:$0xff]  ;;  %v2151_v56 = vld [vmem:[%s7254_s3 + $0x68] sm:$0xff] }
 0x352   :  { %2425 = vperm.xlu0 %4135, %v2267_v27   ;;  %v2265_v19 = vmul.f32 %v4233_v30, %v2145_v62 }
 0x353   :  { %v2191_v47 = vadd.f32 1e-05, %v2111_v23  ;;  %v2148_v23 = vld [vmem:[%s7254_s3 + $0x50] sm:$0xff] }
 0x355   :  { %4240 = vrsqrt.f32 %v2191_v47  ;;  %2410 = vperm.xlu1 %4134, %v2264_v60  }
 0x356   :  { %v1997_v31 = vpop.xlane.xlu0 %1996  ;;  %4242 = vrsqrt.f32 %v2190_v45 }
 0x357   :  { %v4235_v15 = vpop.eup %4234  ;;  %v2112_v6 = vmul.f32 0.0051020407, %v1997_v31 }
 0x358   :  { %v2001_v40 = vpop.xlane.xlu1 %2000  ;;  %v2269_v41 = vmul.f32 %v4235_v15, %v2149_v52  ;;  %v4237_v26 = vpop.eup %4236 }
 0x359   :  { %v2192_v57 = vadd.f32 1e-05, %v2112_v6  ;;  %v2113_v50 = vmul.f32 0.0051020407, %v2001_v40  ;;  %2415 = vperm.xlu1 %4134, %v2265_v19   ;;  %v2266_v27 = vmul.f32 %v4237_v26, %v2146_v42  ;;  %v4239_v8 = vpop.eup %4238  ;;  %v2150_v40 = vld [vmem:[%s7254_s3 + $0x60] sm:$0xff] }
 0x35a   :  { %2435 = vperm.xlu0 %4135, %v2269_v41   ;;  %v2268_v62 = vmul.f32 %v4239_v8, %v2148_v23  ;;  %v2152_v41 = vld [vmem:[%s7254_s3 + $0x70] sm:$0xff] }
 0x35b   :  { %4244 = vrsqrt.f32 %v2192_v57  ;;  %v2193_v34 = vadd.f32 1e-05, %v2113_v50  ;;  %v2153_v50 = vld [vmem:[%s7254_s3 + $0x78] sm:$0xff] }
 0x35d   :  { %4246 = vrsqrt.f32 %v2193_v34  ;;  %2420 = vperm.xlu1 %4134, %v2266_v27  }
 0x35e   :  { %v2005_v45 = vpop.xlane.xlu0 %2004 }
 0x35f   :  { %v4241_v47 = vpop.eup %4240  ;;  %v2114_v60 = vmul.f32 0.0051020407, %v2005_v45 }
 0x360   :  { %v2009_v30 = vpop.xlane.xlu1 %2008  ;;  %v2271_v52 = vmul.f32 %v4241_v47, %v2151_v56  ;;  %v4243_v31 = vpop.eup %4242 }
 0x361   :  { %v2194_v15 = vadd.f32 1e-05, %v2114_v60  ;;  %v2115_v6 = vmul.f32 0.0051020407, %v2009_v30  ;;  %2430 = vperm.xlu1 %4134, %v2268_v62   ;;  %v2270_v26 = vmul.f32 %v4243_v31, %v2150_v40  ;;  %v2154_v30 = vld [vmem:[%s7254_s3 + $0x80] sm:$0xff] }
 0x362   :  { %2445 = vperm.xlu0 %4135, %v2271_v52   ;;  %v2155_v52 = vld [vmem:[%s7254_s3 + $0x88] sm:$0xff] }
 0x363   :  { %4248 = vrsqrt.f32 %v2194_v15  ;;  %v2195_v19 = vadd.f32 1e-05, %v2115_v6 }
 0x365   :  { %v4245_v57 = vpop.eup %4244  ;;  %4250 = vrsqrt.f32 %v2195_v19  ;;  %2440 = vperm.xlu1 %4134, %v2270_v26  }
 0x366   :  { %v2013_v42 = vpop.xlane.xlu0 %2012  ;;  %v2272_v34 = vmul.f32 %v4245_v57, %v2152_v41 }
 0x367   :  { %v4247_v27 = vpop.eup %4246  ;;  %v2116_v8 = vmul.f32 0.0051020407, %v2013_v42  ;;  %v2156_v42 = vld [vmem:[%s7254_s3 + $0x90] sm:$0xff] }
 0x368   :  { %v2017_v23 = vpop.xlane.xlu1 %2016  ;;  %v2273_v56 = vmul.f32 %v4247_v27, %v2153_v50  ;;  %v2157_v27 = vld [vmem:[%s7254_s3 + $0x98] sm:$0xff] }
 0x369   :  { %v2196_v45 = vadd.f32 1e-05, %v2116_v8  ;;  %v2117_v47 = vmul.f32 0.0051020407, %v2017_v23  ;;  %2450 = vperm.xlu1 %4134, %v2272_v34  }
 0x36a   :  { %2455 = vperm.xlu0 %4135, %v2273_v56  }
 0x36b   :  { %4252 = vrsqrt.f32 %v2196_v45  ;;  %v2197_v60 = vadd.f32 1e-05, %v2117_v47 }
 0x36d   :  { %v4249_v62 = vpop.eup %4248  ;;  %4254 = vrsqrt.f32 %v2197_v60 }
 0x36e   :  { %v2021_v31 = vpop.xlane.xlu0 %2020  ;;  %v2274_v15 = vmul.f32 %v4249_v62, %v2154_v30 }
 0x36f   :  { %v4251_v6 = vpop.eup %4250  ;;  %v2118_v40 = vmul.f32 0.0051020407, %v2021_v31  ;;  %v2158_v31 = vld [vmem:[%s7254_s3 + $0xa0] sm:$0xff] }
 0x370   :  { %2460 = vperm.xlu1 %4134, %v2274_v15   ;;  %v2025_v19 = vpop.xlane.xlu1 %2024  ;;  %v2275_v41 = vmul.f32 %v4251_v6, %v2155_v52  ;;  %v2159_v6 = vld [vmem:[%s7254_s3 + $0xa8] sm:$0xff] }
 0x371   :  { %v2198_v26 = vadd.f32 1e-05, %v2118_v40  ;;  %v2119_v57 = vmul.f32 0.0051020407, %v2025_v19 }
 0x372   :  { %2465 = vperm.xlu0 %4135, %v2275_v41  }
 0x373   :  { %4256 = vrsqrt.f32 %v2198_v26  ;;  %v2199_v50 = vadd.f32 1e-05, %v2119_v57 }
 0x375   :  { %v4253_v34 = vpop.eup %4252  ;;  %4258 = vrsqrt.f32 %v2199_v50 }
 0x376   :  { %v2029_v8 = vpop.xlane.xlu0 %2028  ;;  %v2276_v23 = vmul.f32 %v4253_v34, %v2156_v42 }
 0x377   :  { %v4255_v56 = vpop.eup %4254  ;;  %v2120_v45 = vmul.f32 0.0051020407, %v2029_v8  ;;  %v2160_v8 = vld [vmem:[%s7254_s3 + $0xb0] sm:$0xff] }
 0x378   :  { %2470 = vperm.xlu1 %4134, %v2276_v23   ;;  %v2033_v47 = vpop.xlane.xlu1 %2032  ;;  %v2277_v60 = vmul.f32 %v4255_v56, %v2157_v27  ;;  %v2161_v56 = vld [vmem:[%s7254_s3 + $0xb8] sm:$0xff] }
 0x379   :  { %v2200_v30 = vadd.f32 1e-05, %v2120_v45  ;;  %v2121_v62 = vmul.f32 0.0051020407, %v2033_v47 }
 0x37a   :  { %2475 = vperm.xlu0 %4135, %v2277_v60  }
 0x37b   :  { %4260 = vrsqrt.f32 %v2200_v30  ;;  %v2201_v52 = vadd.f32 1e-05, %v2121_v62 }
 0x37d   :  { %v4257_v15 = vpop.eup %4256  ;;  %4262 = vrsqrt.f32 %v2201_v52 }
 0x37e   :  { %v2037_v40 = vpop.xlane.xlu0 %2036  ;;  %v2278_v19 = vmul.f32 %v4257_v15, %v2158_v31 }
 0x37f   :  { %v4259_v41 = vpop.eup %4258  ;;  %v2122_v26 = vmul.f32 0.0051020407, %v2037_v40  ;;  %v2162_v40 = vld [vmem:[%s7254_s3 + $0xc0] sm:$0xff] }
 0x380   :  { %2480 = vperm.xlu1 %4134, %v2278_v19   ;;  %v2279_v50 = vmul.f32 %v4259_v41, %v2159_v6  ;;  %v2163_v41 = vld [vmem:[%s7254_s3 + $0xc8] sm:$0xff] }
 0x381   :  { %v2041_v57 = vpop.xlane.xlu1 %2040  ;;  %v2202_v42 = vadd.f32 1e-05, %v2122_v26 }
 0x382   :  { %v2123_v34 = vmul.f32 0.0051020407, %v2041_v57  ;;  %2485 = vperm.xlu0 %4135, %v2279_v50  }
 0x383   :  { %4264 = vrsqrt.f32 %v2202_v42 }
 0x384   :  { %v2203_v27 = vadd.f32 1e-05, %v2123_v34 }
 0x385   :  { %v4261_v23 = vpop.eup %4260 }
 0x386   :  { %4266 = vrsqrt.f32 %v2203_v27  ;;  %v2045_v45 = vpop.xlane.xlu0 %2044  ;;  %v2280_v47 = vmul.f32 %v4261_v23, %v2160_v8 }
 0x387   :  { %v4263_v60 = vpop.eup %4262  ;;  %v2124_v30 = vmul.f32 0.0051020407, %v2045_v45  ;;  %v2164_v45 = vld [vmem:[%s7254_s3 + $0xd0] sm:$0xff] }
 0x388   :  { %2490 = vperm.xlu1 %4134, %v2280_v47   ;;  %v2281_v52 = vmul.f32 %v4263_v60, %v2161_v56  ;;  %v2165_v60 = vld [vmem:[%s7254_s3 + $0xd8] sm:$0xff] }
 0x389   :  { %v2049_v62 = vpop.xlane.xlu1 %2048  ;;  %v2204_v31 = vadd.f32 1e-05, %v2124_v30 }
 0x38a   :  { %v2125_v15 = vmul.f32 0.0051020407, %v2049_v62  ;;  %2495 = vperm.xlu0 %4135, %v2281_v52  }
 0x38b   :  { %4268 = vrsqrt.f32 %v2204_v31 }
 0x38c   :  { %v2205_v6 = vadd.f32 1e-05, %v2125_v15 }
 0x38d   :  { %v4265_v19 = vpop.eup %4264 }
 0x38e   :  { %4270 = vrsqrt.f32 %v2205_v6  ;;  %v2053_v26 = vpop.xlane.xlu0 %2052  ;;  %v2282_v57 = vmul.f32 %v4265_v19, %v2162_v40 }
 0x38f   :  { %v2126_v42 = vmul.f32 0.0051020407, %v2053_v26  ;;  %v2166_v26 = vld [vmem:[%s7254_s3 + $0xe0] sm:$0xff] }
 0x390   :  { %v4267_v50 = vpop.eup %4266  ;;  %2500 = vperm.xlu1 %4134, %v2282_v57  }
 0x391   :  { %v2057_v34 = vpop.xlane.xlu1 %2056  ;;  %v2283_v27 = vmul.f32 %v4267_v50, %v2163_v41  ;;  %v2206_v8 = vadd.f32 1e-05, %v2126_v42  ;;  %v2167_v50 = vld [vmem:[%s7254_s3 + $0xe8] sm:$0xff] }
 0x392   :  { %v2127_v23 = vmul.f32 0.0051020407, %v2057_v34 }
 0x393   :  { %2505 = vperm.xlu0 %4135, %v2283_v27   ;;  %4272 = vrsqrt.f32 %v2206_v8 }
 0x394   :  { %v2207_v56 = vadd.f32 1e-05, %v2127_v23 }
 0x395   :  { %v4269_v47 = vpop.eup %4268 }
 0x396   :  { %4274 = vrsqrt.f32 %v2207_v56  ;;  %v2061_v30 = vpop.xlane.xlu0 %2060  ;;  %v2284_v62 = vmul.f32 %v4269_v47, %v2164_v45 }
 0x397   :  { %v2128_v31 = vmul.f32 0.0051020407, %v2061_v30  ;;  %v2168_v30 = vld [vmem:[%s7254_s3 + $0xf0] sm:$0xff] }
 0x398   :  { %v4271_v52 = vpop.eup %4270  ;;  %2510 = vperm.xlu1 %4134, %v2284_v62  }
 0x399   :  { %v2065_v15 = vpop.xlane.xlu1 %2064  ;;  %v2285_v6 = vmul.f32 %v4271_v52, %v2165_v60  ;;  %v2208_v40 = vadd.f32 1e-05, %v2128_v31  ;;  %v2169_v52 = vld [vmem:[%s7254_s3 + $0xf8] sm:$0xff] }
 0x39a   :  { %v2129_v19 = vmul.f32 0.0051020407, %v2065_v15 }
 0x39b   :  { %2515 = vperm.xlu0 %4135, %v2285_v6   ;;  %4276 = vrsqrt.f32 %v2208_v40 }
 0x39c   :  { %v2209_v41 = vadd.f32 1e-05, %v2129_v19 }
 0x39d   :  { %v4273_v57 = vpop.eup %4272 }
 0x39e   :  { %4278 = vrsqrt.f32 %v2209_v41  ;;  %v2069_v42 = vpop.xlane.xlu0 %2068  ;;  %v2286_v34 = vmul.f32 %v4273_v57, %v2166_v26 }
 0x39f   :  { %v2130_v8 = vmul.f32 0.0051020407, %v2069_v42  ;;  %v2170_v42 = vld [vmem:[%s7254_s3 + $0x100] sm:$0xff] }
 0x3a0   :  { %v4275_v27 = vpop.eup %4274  ;;  %2520 = vperm.xlu1 %4134, %v2286_v34  }
 0x3a1   :  { %v2073_v23 = vpop.xlane.xlu1 %2072  ;;  %v2287_v56 = vmul.f32 %v4275_v27, %v2167_v50  ;;  %v2210_v45 = vadd.f32 1e-05, %v2130_v8  ;;  %v2171_v27 = vld [vmem:[%s7254_s3 + $0x108] sm:$0xff] }
 0x3a2   :  { %v2131_v47 = vmul.f32 0.0051020407, %v2073_v23 }
 0x3a3   :  { %2525 = vperm.xlu0 %4135, %v2287_v56   ;;  %4280 = vrsqrt.f32 %v2210_v45 }
 0x3a4   :  { %v2211_v60 = vadd.f32 1e-05, %v2131_v47 }
 0x3a5   :  { %v4277_v62 = vpop.eup %4276 }
 0x3a6   :  { %4282 = vrsqrt.f32 %v2211_v60  ;;  %v2077_v31 = vpop.xlane.xlu0 %2076  ;;  %v2288_v15 = vmul.f32 %v4277_v62, %v2168_v30 }
 0x3a7   :  { %v2132_v40 = vmul.f32 0.0051020407, %v2077_v31  ;;  %v2172_v31 = vld [vmem:[%s7254_s3 + $0x110] sm:$0xff] }
 0x3a8   :  { %v4279_v6 = vpop.eup %4278  ;;  %2530 = vperm.xlu1 %4134, %v2288_v15  }
 0x3a9   :  { %v2081_v19 = vpop.xlane.xlu1 %2080  ;;  %v2289_v41 = vmul.f32 %v4279_v6, %v2169_v52  ;;  %v2212_v26 = vadd.f32 1e-05, %v2132_v40  ;;  %v2173_v6 = vld [vmem:[%s7254_s3 + $0x118] sm:$0xff] }
 0x3aa   :  { %v2133_v57 = vmul.f32 0.0051020407, %v2081_v19 }
 0x3ab   :  { %2535 = vperm.xlu0 %4135, %v2289_v41   ;;  %4284 = vrsqrt.f32 %v2212_v26 }
 0x3ac   :  { %v2213_v50 = vadd.f32 1e-05, %v2133_v57 }
 0x3ad   :  { %v4281_v34 = vpop.eup %4280 }
 0x3ae   :  { %4286 = vrsqrt.f32 %v2213_v50  ;;  %v2085_v8 = vpop.xlane.xlu0 %2084  ;;  %v2290_v23 = vmul.f32 %v4281_v34, %v2170_v42  ;;  %v2174_v50 = vld [vmem:[%s7254_s3 + $0x120] sm:$0xff] }
 0x3af   :  { %v2134_v45 = vmul.f32 0.0051020407, %v2085_v8 }
 0x3b0   :  { %v4283_v56 = vpop.eup %4282  ;;  %2540 = vperm.xlu1 %4134, %v2290_v23  }
 0x3b1   :  { %v2089_v47 = vpop.xlane.xlu1 %2088  ;;  %v2291_v60 = vmul.f32 %v4283_v56, %v2171_v27  ;;  %v2214_v30 = vadd.f32 1e-05, %v2134_v45  ;;  %v2175_v27 = vld [vmem:[%s7254_s3 + $0x128] sm:$0xff] }
 0x3b2   :  { %v2135_v62 = vmul.f32 0.0051020407, %v2089_v47 }
 0x3b3   :  { %2545 = vperm.xlu0 %4135, %v2291_v60   ;;  %4288 = vrsqrt.f32 %v2214_v30  ;;  %v2298_v30 = vld [vmem:[%s7252_s1] sm:$0xff] }
 0x3b4   :  { %v2215_v52 = vadd.f32 1e-05, %v2135_v62  ;;  %v2299_v62 = vld [vmem:[%s7252_s1 + $0x8] sm:$0xff] }
 0x3b5   :  { %v4285_v15 = vpop.eup %4284 }
 0x3b6   :  { %4290 = vrsqrt.f32 %v2215_v52  ;;  %v2292_v40 = vmul.f32 %v4285_v15, %v2172_v31  ;;  %v7523_v31 = vld [vmem:[#allocation69_spill] sm:$0xff] }
 0x3b8   :  { %v4287_v19 = vpop.eup %4286  ;;  %2550 = vperm.xlu1 %4134, %v2292_v40  }
 0x3b9   :  { %v2293_v41 = vmul.f32 %v4287_v19, %v2173_v6  ;;  %v2093_v26 = vpop.xlane.xlu0 %2092  ;;  %v7524_v6 = vld [vmem:[#allocation70_spill] sm:$0xff]  ;;  %v2300_v19 = vld [vmem:[%s7252_s1 + $0x10] sm:$0xff] }
 0x3ba   :  { %v2136_v57 = vmul.f32 0.0051020407, %v2093_v26 }
 0x3bb   :  { %2555 = vperm.xlu0 %4135, %v2293_v41   ;;  %v2301_v41 = vld [vmem:[%s7252_s1 + $0x18] sm:$0xff] }
 0x3bc   :  { %v2216_v42 = vadd.f32 1e-05, %v2136_v57  ;;  %v7525_v57 = vld [vmem:[#allocation72_spill] sm:$0xff] }
 0x3bd   :  { %v4289_v34 = vpop.eup %4288  ;;  %v2097_v8 = vpop.xlane.xlu1 %2096 }
 0x3be   :  { %4292 = vrsqrt.f32 %v2216_v42  ;;  %v2294_v23 = vmul.f32 %v4289_v34, %v2174_v50  ;;  %v2137_v45 = vmul.f32 0.0051020407, %v2097_v8  ;;  %v7526_v42 = vld [vmem:[#allocation73_spill] sm:$0xff] }
 0x3c0   :  { %v4291_v56 = vpop.eup %4290  ;;  %2560 = vperm.xlu1 %4134, %v2294_v23   ;;  %v2217_v60 = vadd.f32 1e-05, %v2137_v45  ;;  %v7527_v45 = vld [vmem:[#allocation8_spill] sm:$0xff] }
 0x3c1   :  { %v2295_v47 = vmul.f32 %v4291_v56, %v2175_v27  ;;  %v2381_v52 = vpop.permute.xlu0 %2380  ;;  %v2386_v26 = vpop.permute.xlu1 %2385 }
 0x3c2   :  { %v2578_v15 = vmul.f32 %v2381_v52, %v7523_v31  ;;  %v2579_v40 = vmul.f32 %v2381_v52, %v7524_v6  ;;  %4294 = vrsqrt.f32 %v2217_v60  ;;  %v2580_v50 = vmul.f32 %v2386_v26, %v7525_v57  ;;  %v2302_v6 = vld [vmem:[%s7252_s1 + $0x20] sm:$0xff] }
 0x3c3   :  { %2565 = vperm.xlu0 %4135, %v2295_v47   ;;  %v2581_v34 = vmul.f32 %v2386_v26, %v7526_v42  ;;  %v2303_v47 = vld [vmem:[%s7252_s1 + $0x28] sm:$0xff]  ;;  %v7528_v26 = vld [vmem:[#allocation6_spill] sm:$0xff] }
 0x3c4   :  { %v2658_v27 = vadd.f32 %v2578_v15, %v2298_v30  ;;  %v2659_v8 = vadd.f32 %v2579_v40, %v2299_v62  ;;  %v2660_v23 = vadd.f32 %v2580_v50, %v2300_v19  ;;  %v2176_v19 = vld [vmem:[%s7254_s3 + $0x130] sm:$0xff] }
 0x3c5   :  { %v2661_v56 = vadd.f32 %v2581_v34, %v2301_v41  ;;  %v2391_v60 = vpop.permute.xlu1 %2390 }
 0x3c6   :  { %v6140_v52 = vadd.f32 %v7527_v45, %v2658_v27  ;;  %v6143_v31 = vadd.f32 %v7527_v45, %v2659_v8  ;;  %v6152_v30 = vadd.f32 %v7528_v26, %v2660_v23  ;;  %v2582_v15 = vmul.f32 %v2391_v60, %v5590_v61  ;;  %v2304_v61 = vld [vmem:[%s7252_s1 + $0x30] sm:$0xff]  ;;  %v7529_v45 = vld [vmem:[#allocation10_spill] sm:$0xff] }
 0x3c7   :  { %v6155_v62 = vadd.f32 %v7528_v26, %v2661_v56  ;;  %v2583_v40 = vmul.f32 %v2391_v60, %v5593_v0  ;;  %v2305_v0 = vld [vmem:[%s7252_s1 + $0x38] sm:$0xff] }
 0x3c8   :  { %v4293_v41 = vpop.eup %4292  ;;  %v2662_v27 = vadd.f32 %v2582_v15, %v2302_v6 }
 0x3c9   :  { %v2663_v8 = vadd.f32 %v2583_v40, %v2303_v47  ;;  %v2396_v23 = vpop.permute.xlu1 %2395  ;;  %v2296_v56 = vmul.f32 %v4293_v41, %v2176_v19  ;;  %v2177_v47 = vld [vmem:[%s7254_s3 + $0x138] sm:$0xff] }
 0x3ca   :  { %v6173_v60 = vadd.f32 %v7529_v45, %v2662_v27  ;;  %v2584_v42 = vmul.f32 %v2396_v23, %v5602_v9  ;;  %v2585_v6 = vmul.f32 %v2396_v23, %v5605_v10  ;;  %v2306_v9 = vld [vmem:[%s7252_s1 + $0x40] sm:$0xff]  ;;  %v2307_v10 = vld [vmem:[%s7252_s1 + $0x48] sm:$0xff] }
 0x3cb   :  { %v6176_v26 = vadd.f32 %v7529_v45, %v2663_v8  ;;  %2570 = vperm.xlu1 %4134, %v2296_v56   ;;  %v2776_v8 = vld [vmem:[%s7255_s4 + $0x130] sm:$0xff]  ;;  %v7531_v45 = vld [vmem:[#allocation7_spill] sm:$0xff] }
 0x3cc   :  { %7530 = vst [vmem:[#allocation69_spill] sm:$0xff] %v6173_v60  ;;  %v4295_v15 = vpop.eup %4294  ;;  %v2664_v41 = vadd.f32 %v2584_v42, %v2304_v61  ;;  %v2665_v27 = vadd.f32 %v2585_v6, %v2305_v0 }
 0x3cd   :  { %v2401_v23 = vpop.permute.xlu1 %2400  ;;  %v2297_v56 = vmul.f32 %v4295_v15, %v2177_v47  ;;  %v2316_v47 = vld [vmem:[%s7252_s1 + $0x90] sm:$0xff]  ;;  %v2317_v15 = vld [vmem:[%s7252_s1 + $0x98] sm:$0xff] }
 0x3ce   :  { %v6195_v40 = vadd.f32 %v7531_v45, %v2664_v41  ;;  %v6198_v42 = vadd.f32 %v7531_v45, %v2665_v27  ;;  %v2586_v61 = vmul.f32 %v2401_v23, %v5613_v12  ;;  %v2587_v0 = vmul.f32 %v2401_v23, %v5616_v13  ;;  %v2777_v12 = vld [vmem:[%s7255_s4 + $0x138] sm:$0xff]  ;;  %v7533_v23 = vld [vmem:[#allocation12_spill] sm:$0xff] }
 0x3cf   :  { %2970 = vperm.xlu1 %4134, %v2776_v8   ;;  %2575 = vperm.xlu0 %4135, %v2297_v56   ;;  %v2308_v8 = vld [vmem:[%s7252_s1 + $0x50] sm:$0xff] }
 0x3d0   :  { %7532 = vst [vmem:[#allocation70_spill] sm:$0xff] %v6195_v40  ;;  %v2666_v57 = vadd.f32 %v2586_v61, %v2306_v9  ;;  %v2667_v34 = vadd.f32 %v2587_v0, %v2307_v10  ;;  %v2309_v9 = vld [vmem:[%s7252_s1 + $0x58] sm:$0xff] }
 0x3d1   :  { %v2426_v41 = vpop.permute.xlu0 %2425  ;;  %v2406_v10 = vpop.permute.xlu1 %2405  ;;  %v7534_v40 = vld [vmem:[#allocation13_spill] sm:$0xff] }
 0x3d2   :  { %v2596_v13 = vmul.f32 %v2426_v41, %v5664_v54  ;;  %v2597_v27 = vmul.f32 %v2426_v41, %v5667_v18  ;;  %v6222_v56 = vadd.f32 %v7533_v23, %v2666_v57  ;;  %v6225_v45 = vadd.f32 %v7533_v23, %v2667_v34  ;;  %v7537_v41 = vld [vmem:[#allocation15_spill] sm:$0xff] }
 0x3d3   :  { %v2588_v61 = vmul.f32 %v2406_v10, %v5620_v43  ;;  %v2589_v54 = vmul.f32 %v2406_v10, %v5623_v35  ;;  %2975 = vperm.xlu0 %4135, %v2777_v12   ;;  %v2310_v43 = vld [vmem:[%s7252_s1 + $0x60] sm:$0xff]  ;;  %v2311_v35 = vld [vmem:[%s7252_s1 + $0x68] sm:$0xff] }
 0x3d4   :  { %v2676_v18 = vadd.f32 %v2596_v13, %v2316_v47  ;;  %v2677_v0 = vadd.f32 %v2597_v27, %v2317_v15  ;;  %v7535_v47 = vld [vmem:[#allocation9_spill] sm:$0xff] }
 0x3d5   :  { %v2668_v19 = vadd.f32 %v2588_v61, %v2308_v8  ;;  %v2669_v50 = vadd.f32 %v2589_v54, %v2309_v9  ;;  %v2411_v34 = vpop.permute.xlu1 %2410 }
 0x3d6   :  { %v6232_v60 = vadd.f32 %v7534_v40, %v2676_v18  ;;  %v6235_v57 = vadd.f32 %v7534_v40, %v2677_v0  ;;  %v2590_v13 = vmul.f32 %v2411_v34, %v5636_v63  ;;  %v2591_v40 = vmul.f32 %v2411_v34, %v5639_v53  ;;  %v2321_v63 = vld [vmem:[%s7252_s1 + $0xb8] sm:$0xff]  ;;  %v2312_v18 = vld [vmem:[%s7252_s1 + $0x70] sm:$0xff] }
 0x3d7   :  { %v6244_v15 = vadd.f32 %v7535_v47, %v2668_v19  ;;  %v6247_v12 = vadd.f32 %v7535_v47, %v2669_v50  ;;  %v2320_v19 = vld [vmem:[%s7252_s1 + $0xb0] sm:$0xff]  ;;  %v2313_v0 = vld [vmem:[%s7252_s1 + $0x78] sm:$0xff] }
 0x3d8   :  { %v2670_v23 = vadd.f32 %v2590_v13, %v2310_v43  ;;  %v2671_v61 = vadd.f32 %v2591_v40, %v2311_v35  ;;  %v7536_v35 = vld [vmem:[#allocation14_spill] sm:$0xff] }
 0x3d9   :  { %v2436_v50 = vpop.permute.xlu0 %2435  ;;  %v2416_v43 = vpop.permute.xlu1 %2415 }
 0x3da   :  { %v2600_v53 = vmul.f32 %v2436_v50, %v5686_v16  ;;  %v2601_v54 = vmul.f32 %v2436_v50, %v5689_v25  ;;  %v6270_v34 = vadd.f32 %v7536_v35, %v2670_v23  ;;  %v6273_v47 = vadd.f32 %v7536_v35, %v2671_v61  ;;  %v7540_v35 = vld [vmem:[#allocation17_spill] sm:$0xff] }
 0x3db   :  { %v2592_v13 = vmul.f32 %v2416_v43, %v5642_v2  ;;  %v2593_v16 = vmul.f32 %v2416_v43, %v5645_v17  ;;  %v2314_v2 = vld [vmem:[%s7252_s1 + $0x80] sm:$0xff]  ;;  %v2315_v17 = vld [vmem:[%s7252_s1 + $0x88] sm:$0xff] }
 0x3dc   :  { %v2680_v25 = vadd.f32 %v2600_v53, %v2320_v19  ;;  %v2681_v40 = vadd.f32 %v2601_v54, %v2321_v63  ;;  %v7538_v19 = vld [vmem:[#allocation11_spill] sm:$0xff] }
 0x3dd   :  { %v2672_v8 = vadd.f32 %v2592_v13, %v2312_v18  ;;  %v2673_v9 = vadd.f32 %v2593_v16, %v2313_v0  ;;  %v2421_v61 = vpop.permute.xlu1 %2420  ;;  %v7543_v18 = vld [vmem:[#allocation19_spill] sm:$0xff] }
 0x3de   :  { %v6280_v10 = vadd.f32 %v7537_v41, %v2680_v25  ;;  %v6283_v23 = vadd.f32 %v7537_v41, %v2681_v40  ;;  %v2594_v54 = vmul.f32 %v2421_v61, %v5658_v21  ;;  %v2595_v41 = vmul.f32 %v2421_v61, %v5661_v1  ;;  %v2325_v21 = vld [vmem:[%s7252_s1 + $0xd8] sm:$0xff]  ;;  %v2318_v40 = vld [vmem:[%s7252_s1 + $0xa0] sm:$0xff]  ;;  %v7539_v61 = vld [vmem:[#allocation16_spill] sm:$0xff] }
 0x3df   :  { %v6292_v63 = vadd.f32 %v7538_v19, %v2672_v8  ;;  %v6295_v53 = vadd.f32 %v7538_v19, %v2673_v9  ;;  %v2324_v8 = vld [vmem:[%s7252_s1 + $0xd0] sm:$0xff] }
 0x3e0   :  { %v2674_v13 = vadd.f32 %v2594_v54, %v2314_v2  ;;  %v2675_v16 = vadd.f32 %v2595_v41, %v2315_v17  ;;  %v2319_v2 = vld [vmem:[%s7252_s1 + $0xa8] sm:$0xff] }
 0x3e1   :  { %v2446_v9 = vpop.permute.xlu0 %2445  ;;  %v2431_v17 = vpop.permute.xlu1 %2430 }
 0x3e2   :  { %v2604_v1 = vmul.f32 %v2446_v9, %v5708_v4  ;;  %v2605_v25 = vmul.f32 %v2446_v9, %v5711_v33  ;;  %v6318_v19 = vadd.f32 %v7539_v61, %v2674_v13  ;;  %v6321_v54 = vadd.f32 %v7539_v61, %v2675_v16 }
 0x3e3   :  { %v2598_v41 = vmul.f32 %v2431_v17, %v5680_v29  ;;  %v2599_v4 = vmul.f32 %v2431_v17, %v5683_v5  ;;  %v2322_v29 = vld [vmem:[%s7252_s1 + $0xc0] sm:$0xff]  ;;  %v2323_v5 = vld [vmem:[%s7252_s1 + $0xc8] sm:$0xff] }
 0x3e4   :  { %v2684_v33 = vadd.f32 %v2604_v1, %v2324_v8  ;;  %v2685_v9 = vadd.f32 %v2605_v25, %v2325_v21  ;;  %v7541_v8 = vld [vmem:[#allocation18_spill] sm:$0xff] }
 0x3e5   :  { %v2678_v43 = vadd.f32 %v2598_v41, %v2318_v40  ;;  %v2679_v50 = vadd.f32 %v2599_v4, %v2319_v2  ;;  %v2441_v16 = vpop.permute.xlu1 %2440  ;;  %v7546_v40 = vld [vmem:[#allocation21_spill] sm:$0xff] }
 0x3e6   :  { %v6328_v27 = vadd.f32 %v7540_v35, %v2684_v33  ;;  %v6331_v13 = vadd.f32 %v7540_v35, %v2685_v9  ;;  %v2602_v25 = vmul.f32 %v2441_v16, %v5702_v39  ;;  %v2603_v35 = vmul.f32 %v2441_v16, %v5705_v28  ;;  %v2329_v39 = vld [vmem:[%s7252_s1 + $0xf8] sm:$0xff]  ;;  %v2326_v9 = vld [vmem:[%s7252_s1 + $0xe0] sm:$0xff]  ;;  %v7542_v16 = vld [vmem:[#allocation20_spill] sm:$0xff] }
 0x3e7   :  { %v6340_v21 = vadd.f32 %v7541_v8, %v2678_v43  ;;  %v6343_v1 = vadd.f32 %v7541_v8, %v2679_v50  ;;  %v2328_v43 = vld [vmem:[%s7252_s1 + $0xf0] sm:$0xff] }
 0x3e8   :  { %v2682_v41 = vadd.f32 %v2602_v25, %v2322_v29  ;;  %v2683_v4 = vadd.f32 %v2603_v35, %v2323_v5  ;;  %v2327_v29 = vld [vmem:[%s7252_s1 + $0xe8] sm:$0xff] }
 0x3e9   :  { %v2456_v50 = vpop.permute.xlu0 %2455  ;;  %v2451_v5 = vpop.permute.xlu1 %2450 }
 0x3ea   :  { %v2608_v28 = vmul.f32 %v2456_v50, %v5730_v20  ;;  %v2609_v33 = vmul.f32 %v2456_v50, %v5733_v44  ;;  %v6366_v8 = vadd.f32 %v7542_v16, %v2682_v41  ;;  %v6369_v25 = vadd.f32 %v7542_v16, %v2683_v4  ;;  %v7544_v4 = vld [vmem:[#allocation22_spill] sm:$0xff] }
 0x3eb   :  { %v2606_v35 = vmul.f32 %v2451_v5, %v5724_v49  ;;  %v2607_v20 = vmul.f32 %v2451_v5, %v5727_v37  ;;  %v2330_v37 = vld [vmem:[%s7252_s1 + $0x100] sm:$0xff]  ;;  %v2333_v5 = vld [vmem:[%s7252_s1 + $0x118] sm:$0xff] }
 0x3ec   :  { %v2688_v44 = vadd.f32 %v2608_v28, %v2328_v43  ;;  %v2689_v50 = vadd.f32 %v2609_v33, %v2329_v39  ;;  %v2331_v43 = vld [vmem:[%s7252_s1 + $0x108] sm:$0xff] }
 0x3ed   :  { %v2686_v17 = vadd.f32 %v2606_v35, %v2326_v9  ;;  %v2687_v61 = vadd.f32 %v2607_v20, %v2327_v29  ;;  %v2332_v29 = vld [vmem:[%s7252_s1 + $0x110] sm:$0xff] }
 0x3ee   :  { %v6376_v0 = vadd.f32 %v7543_v18, %v2688_v44  ;;  %v6379_v41 = vadd.f32 %v7543_v18, %v2689_v50 }
 0x3ef   :  { %v6382_v16 = vadd.f32 %v7544_v4, %v2686_v17  ;;  %v6385_v49 = vadd.f32 %v7544_v4, %v2687_v61  ;;  %v2461_v39 = vpop.permute.xlu1 %2460 }
 0x3f0   :  { %v2610_v33 = vmul.f32 %v2461_v39, %v5746_v59  ;;  %v2611_v17 = vmul.f32 %v2461_v39, %v5749_v48  ;;  %v7545_v48 = vld [vmem:[#allocation24_spill] sm:$0xff] }
 0x3f1   :  { %v2466_v35 = vpop.permute.xlu0 %2465 }
 0x3f2   :  { %v2690_v20 = vadd.f32 %v2610_v33, %v2330_v37  ;;  %v2691_v44 = vadd.f32 %v2611_v17, %v2331_v43  ;;  %v2612_v50 = vmul.f32 %v2466_v35, %v5752_v22  ;;  %v2613_v59 = vmul.f32 %v2466_v35, %v5755_v55  ;;  %v2334_v22 = vld [vmem:[%s7252_s1 + $0x120] sm:$0xff]  ;;  %v2335_v55 = vld [vmem:[%s7252_s1 + $0x128] sm:$0xff]  ;;  %v7555_v33 = vld [vmem:[#allocation29_spill] sm:$0xff] }
 0x3f3   :  { %v7548_v17 = vld [vmem:[#allocation23_spill] sm:$0xff] }
 0x3f4   :  { %v6408_v4 = vadd.f32 %v7545_v48, %v2690_v20  ;;  %v6411_v39 = vadd.f32 %v7545_v48, %v2691_v44  ;;  %v2692_v28 = vadd.f32 %v2612_v50, %v2332_v29  ;;  %v2693_v61 = vadd.f32 %v2613_v59, %v2333_v5  ;;  %v7547_v59 = vld [vmem:[#allocation26_spill] sm:$0xff] }
 0x3f6   :  { %v6416_v2 = vadd.f32 %v7546_v40, %v2692_v28  ;;  %v6419_v37 = vadd.f32 %v7546_v40, %v2693_v61  ;;  %v2336_v40 = vld [vmem:[%s7252_s1 + $0x130] sm:$0xff]  ;;  %v2337_v61 = vld [vmem:[%s7252_s1 + $0x138] sm:$0xff] }
 0x3f7   :  { %v2471_v43 = vpop.permute.xlu1 %2470 }
 0x3f8   :  { %v2614_v29 = vmul.f32 %v2471_v43, %v5768_v14  ;;  %v2615_v28 = vmul.f32 %v2471_v43, %v5771_v58 }
 0x3f9   :  { %v2476_v5 = vpop.permute.xlu0 %2475 }
 0x3fa   :  { %v2694_v35 = vadd.f32 %v2614_v29, %v2334_v22  ;;  %v2695_v20 = vadd.f32 %v2615_v28, %v2335_v55  ;;  %v2616_v44 = vmul.f32 %v2476_v5, %v5774_v7  ;;  %v2617_v50 = vmul.f32 %v2476_v5, %v5777_v3  ;;  %v2338_v7 = vld [vmem:[%s7252_s1 + $0x140] sm:$0xff]  ;;  %v2339_v3 = vld [vmem:[%s7252_s1 + $0x148] sm:$0xff]  ;;  %v2341_v5 = vld [vmem:[%s7252_s1 + $0x158] sm:$0xff] }
 0x3fb   :  { %v7550_v28 = vld [vmem:[#allocation25_spill] sm:$0xff] }
 0x3fc   :  { %v6440_v48 = vadd.f32 %v7547_v59, %v2694_v35  ;;  %v6443_v14 = vadd.f32 %v7547_v59, %v2695_v20  ;;  %v2696_v58 = vadd.f32 %v2616_v44, %v2336_v40  ;;  %v2697_v43 = vadd.f32 %v2617_v50, %v2337_v61 }
 0x3fe   :  { %v6448_v9 = vadd.f32 %v7548_v17, %v2696_v58  ;;  %v6451_v22 = vadd.f32 %v7548_v17, %v2697_v43  ;;  %v2340_v17 = vld [vmem:[%s7252_s1 + $0x150] sm:$0xff]  ;;  %v7549_v58 = vld [vmem:[#allocation30_spill] sm:$0xff] }
 0x3ff   :  { %v2481_v55 = vpop.permute.xlu1 %2480 }
 0x400   :  { %v2618_v40 = vmul.f32 %v2481_v55, %v5790_v36  ;;  %v2619_v61 = vmul.f32 %v2481_v55, %v5793_v11 }
 0x401   :  { %v2486_v35 = vpop.permute.xlu0 %2485 }
 0x402   :  { %v2698_v20 = vadd.f32 %v2618_v40, %v2338_v7  ;;  %v2699_v44 = vadd.f32 %v2619_v61, %v2339_v3  ;;  %v2620_v50 = vmul.f32 %v2486_v35, %v5800_v24  ;;  %v2621_v59 = vmul.f32 %v2486_v35, %v5803_v51  ;;  %v2342_v24 = vld [vmem:[%s7252_s1 + $0x160] sm:$0xff]  ;;  %v2343_v51 = vld [vmem:[%s7252_s1 + $0x168] sm:$0xff]  ;;  %v2345_v35 = vld [vmem:[%s7252_s1 + $0x178] sm:$0xff] }
 0x404   :  { %v6472_v43 = vadd.f32 %v7549_v58, %v2698_v20  ;;  %v6475_v36 = vadd.f32 %v7549_v58, %v2699_v44  ;;  %v2700_v11 = vadd.f32 %v2620_v50, %v2340_v17  ;;  %v2701_v55 = vadd.f32 %v2621_v59, %v2341_v5  ;;  %v7551_v58 = vld [vmem:[#allocation75_spill] sm:$0xff] }
 0x406   :  { %v6480_v18 = vadd.f32 %v7550_v28, %v2700_v11  ;;  %v6483_v7 = vadd.f32 %v7550_v28, %v2701_v55  ;;  %v2344_v28 = vld [vmem:[%s7252_s1 + $0x170] sm:$0xff] }
 0x407   :  { %v2491_v3 = vpop.permute.xlu1 %2490  ;;  %v7552_v55 = vld [vmem:[#allocation36_spill] sm:$0xff] }
 0x408   :  { %v2622_v17 = vmul.f32 %v2491_v3, %v5812_v32  ;;  %v2623_v5 = vmul.f32 %v2491_v3, %v5815_v38 }
 0x409   :  { %v2496_v20 = vpop.permute.xlu0 %2495 }
 0x40a   :  { %v2702_v44 = vadd.f32 %v2622_v17, %v2342_v24  ;;  %v2703_v50 = vadd.f32 %v2623_v5, %v2343_v51  ;;  %v2624_v59 = vmul.f32 %v2496_v20, %v5822_v46  ;;  %v2625_v11 = vmul.f32 %v2496_v20, %v7551_v58  ;;  %v2346_v46 = vld [vmem:[%s7252_s1 + $0x180] sm:$0xff]  ;;  %v2347_v51 = vld [vmem:[%s7252_s1 + $0x188] sm:$0xff]  ;;  %v7561_v5 = vld [vmem:[#allocation28_spill] sm:$0xff] }
 0x40c   :  { %v6504_v40 = vadd.f32 %v7552_v55, %v2702_v44  ;;  %v6507_v32 = vadd.f32 %v7552_v55, %v2703_v50  ;;  %v2704_v38 = vadd.f32 %v2624_v59, %v2344_v28  ;;  %v2705_v3 = vadd.f32 %v2625_v11, %v2345_v35  ;;  %v7558_v35 = vld [vmem:[#allocation76_spill] sm:$0xff]  ;;  %v7559_v44 = vld [vmem:[#allocation77_spill] sm:$0xff] }
 0x40d   :  { %v2349_v59 = vld [vmem:[%s7252_s1 + $0x198] sm:$0xff]  ;;  %v7562_v28 = vld [vmem:[#allocation40_spill] sm:$0xff] }
 0x40e   :  { %7553 = vst [vmem:[#allocation72_spill] sm:$0xff] %v6504_v40  ;;  %7554 = vst [vmem:[#allocation73_spill] sm:$0xff] %v6507_v32  ;;  %v6512_v6 = vadd.f32 %v7555_v33, %v2704_v38  ;;  %v6515_v24 = vadd.f32 %v7555_v33, %v2705_v3  ;;  %v2348_v33 = vld [vmem:[%s7252_s1 + $0x190] sm:$0xff]  ;;  %v7560_v38 = vld [vmem:[#allocation27_spill] sm:$0xff] }
 0x40f   :  { %v2501_v17 = vpop.permute.xlu1 %2500 }
 0x410   :  { %7556 = vst [vmem:[#allocation8_spill] sm:$0xff] %v6512_v6  ;;  %7557 = vst [vmem:[#allocation6_spill] sm:$0xff] %v6515_v24  ;;  %v2626_v20 = vmul.f32 %v2501_v17, %v7558_v35  ;;  %v2627_v50 = vmul.f32 %v2501_v17, %v7559_v44  ;;  %v7565_v24 = vld [vmem:[#allocation33_spill] sm:$0xff] }
 0x412   :  { %v2506_v58 = vpop.permute.xlu0 %2505  ;;  %v2706_v11 = vadd.f32 %v2626_v20, %v2346_v46  ;;  %v2707_v55 = vadd.f32 %v2627_v50, %v2347_v51  ;;  %v2350_v51 = vld [vmem:[%s7252_s1 + $0x1a0] sm:$0xff]  ;;  %v7568_v50 = vld [vmem:[#allocation31_spill] sm:$0xff]  ;;  %v7572_v20 = vld [vmem:[#allocation44_spill] sm:$0xff] }
 0x413   :  { %v2628_v3 = vmul.f32 %v2506_v58, %v7560_v38  ;;  %v2629_v29 = vmul.f32 %v2506_v58, %v7561_v5  ;;  %v2351_v5 = vld [vmem:[%s7252_s1 + $0x1a8] sm:$0xff] }
 0x414   :  { %v6536_v61 = vadd.f32 %v7562_v28, %v2706_v11  ;;  %v6539_v17 = vadd.f32 %v7562_v28, %v2707_v55  ;;  %v2353_v11 = vld [vmem:[%s7252_s1 + $0x1b8] sm:$0xff] }
 0x415   :  { %v2708_v35 = vadd.f32 %v2628_v3, %v2348_v33  ;;  %v2709_v44 = vadd.f32 %v2629_v29, %v2349_v59  ;;  %v7569_v59 = vld [vmem:[#allocation32_spill] sm:$0xff]  ;;  %v7571_v29 = vld [vmem:[#allocation35_spill] sm:$0xff] }
 0x416   :  { %7563 = vst [vmem:[#allocation10_spill] sm:$0xff] %v6536_v61  ;;  %7564 = vst [vmem:[#allocation7_spill] sm:$0xff] %v6539_v17 }
 0x417   :  { %v6544_v32 = vadd.f32 %v7565_v24, %v2708_v35  ;;  %v6547_v46 = vadd.f32 %v7565_v24, %v2709_v44  ;;  %v2511_v28 = vpop.permute.xlu1 %2510  ;;  %v2352_v24 = vld [vmem:[%s7252_s1 + $0x1b0] sm:$0xff]  ;;  %v7570_v35 = vld [vmem:[#allocation34_spill] sm:$0xff] }
 0x418   :  { %v2630_v33 = vmul.f32 %v2511_v28, %v7568_v50  ;;  %v2631_v58 = vmul.f32 %v2511_v28, %v7569_v59 }
 0x419   :  { %7566 = vst [vmem:[#allocation12_spill] sm:$0xff] %v6544_v32  ;;  %7567 = vst [vmem:[#allocation13_spill] sm:$0xff] %v6547_v46  ;;  %v7575_v46 = vld [vmem:[#allocation37_spill] sm:$0xff] }
 0x41a   :  { %v2516_v55 = vpop.permute.xlu0 %2515  ;;  %v2710_v38 = vadd.f32 %v2630_v33, %v2350_v51  ;;  %v2711_v3 = vadd.f32 %v2631_v58, %v2351_v5  ;;  %v2354_v5 = vld [vmem:[%s7252_s1 + $0x1c0] sm:$0xff] }
 0x41b   :  { %v2632_v44 = vmul.f32 %v2516_v55, %v7570_v35  ;;  %v2633_v6 = vmul.f32 %v2516_v55, %v7571_v29  ;;  %v2355_v29 = vld [vmem:[%s7252_s1 + $0x1c8] sm:$0xff]  ;;  %v7578_v58 = vld [vmem:[#allocation38_spill] sm:$0xff] }
 0x41c   :  { %v6568_v40 = vadd.f32 %v7572_v20, %v2710_v38  ;;  %v6571_v28 = vadd.f32 %v7572_v20, %v2711_v3  ;;  %v2357_v38 = vld [vmem:[%s7252_s1 + $0x1d8] sm:$0xff]  ;;  %v7582_v33 = vld [vmem:[#allocation50_spill] sm:$0xff] }
 0x41d   :  { %v2712_v50 = vadd.f32 %v2632_v44, %v2352_v24  ;;  %v2713_v59 = vadd.f32 %v2633_v6, %v2353_v11  ;;  %v7579_v11 = vld [vmem:[#allocation39_spill] sm:$0xff]  ;;  %v7581_v6 = vld [vmem:[#allocation42_spill] sm:$0xff] }
 0x41e   :  { %7573 = vst [vmem:[#allocation9_spill] sm:$0xff] %v6568_v40  ;;  %7574 = vst [vmem:[#allocation14_spill] sm:$0xff] %v6571_v28 }
 0x41f   :  { %v6576_v17 = vadd.f32 %v7575_v46, %v2712_v50  ;;  %v6579_v51 = vadd.f32 %v7575_v46, %v2713_v59  ;;  %v2521_v20 = vpop.permute.xlu1 %2520  ;;  %v2356_v46 = vld [vmem:[%s7252_s1 + $0x1d0] sm:$0xff]  ;;  %v7580_v50 = vld [vmem:[#allocation41_spill] sm:$0xff] }
 0x420   :  { %v2634_v24 = vmul.f32 %v2521_v20, %v7578_v58  ;;  %v2635_v55 = vmul.f32 %v2521_v20, %v7579_v11 }
 0x421   :  { %7576 = vst [vmem:[#allocation15_spill] sm:$0xff] %v6576_v17  ;;  %7577 = vst [vmem:[#allocation11_spill] sm:$0xff] %v6579_v51  ;;  %v7585_v51 = vld [vmem:[#allocation43_spill] sm:$0xff] }
 0x422   :  { %v2526_v3 = vpop.permute.xlu0 %2525  ;;  %v2714_v35 = vadd.f32 %v2634_v24, %v2354_v5  ;;  %v2715_v44 = vadd.f32 %v2635_v55, %v2355_v29  ;;  %v2358_v29 = vld [vmem:[%s7252_s1 + $0x1e0] sm:$0xff]  ;;  %v7588_v55 = vld [vmem:[#allocation45_spill] sm:$0xff]  ;;  %v7592_v24 = vld [vmem:[#allocation56_spill] sm:$0xff] }
 0x423   :  { %v2636_v59 = vmul.f32 %v2526_v3, %v7580_v50  ;;  %v2637_v32 = vmul.f32 %v2526_v3, %v7581_v6  ;;  %v2359_v6 = vld [vmem:[%s7252_s1 + $0x1e8] sm:$0xff] }
 0x424   :  { %v6600_v61 = vadd.f32 %v7582_v33, %v2714_v35  ;;  %v6603_v20 = vadd.f32 %v7582_v33, %v2715_v44  ;;  %v2361_v35 = vld [vmem:[%s7252_s1 + $0x1f8] sm:$0xff] }
 0x425   :  { %v2716_v58 = vadd.f32 %v2636_v59, %v2356_v46  ;;  %v2717_v11 = vadd.f32 %v2637_v32, %v2357_v38  ;;  %v7589_v38 = vld [vmem:[#allocation46_spill] sm:$0xff]  ;;  %v7591_v32 = vld [vmem:[#allocation48_spill] sm:$0xff] }
 0x426   :  { %7583 = vst [vmem:[#allocation16_spill] sm:$0xff] %v6600_v61  ;;  %7584 = vst [vmem:[#allocation17_spill] sm:$0xff] %v6603_v20 }
 0x427   :  { %v6608_v28 = vadd.f32 %v7585_v51, %v2716_v58  ;;  %v6611_v5 = vadd.f32 %v7585_v51, %v2717_v11  ;;  %v2531_v33 = vpop.permute.xlu1 %2530  ;;  %v2360_v51 = vld [vmem:[%s7252_s1 + $0x1f0] sm:$0xff]  ;;  %v7590_v58 = vld [vmem:[#allocation47_spill] sm:$0xff] }
 0x428   :  { %v2638_v46 = vmul.f32 %v2531_v33, %v7588_v55  ;;  %v2639_v3 = vmul.f32 %v2531_v33, %v7589_v38 }
 0x429   :  { %7586 = vst [vmem:[#allocation18_spill] sm:$0xff] %v6608_v28  ;;  %7587 = vst [vmem:[#allocation20_spill] sm:$0xff] %v6611_v5  ;;  %v7595_v5 = vld [vmem:[#allocation49_spill] sm:$0xff] }
 0x42a   :  { %v2536_v44 = vpop.permute.xlu0 %2535  ;;  %v2718_v50 = vadd.f32 %v2638_v46, %v2358_v29  ;;  %v2719_v59 = vadd.f32 %v2639_v3, %v2359_v6  ;;  %v2362_v6 = vld [vmem:[%s7252_s1 + $0x200] sm:$0xff]  ;;  %v7598_v3 = vld [vmem:[#allocation51_spill] sm:$0xff]  ;;  %v7602_v46 = vld [vmem:[#allocation60_spill] sm:$0xff] }
 0x42b   :  { %v2640_v11 = vmul.f32 %v2536_v44, %v7590_v58  ;;  %v2641_v17 = vmul.f32 %v2536_v44, %v7591_v32  ;;  %v2363_v32 = vld [vmem:[%s7252_s1 + $0x208] sm:$0xff] }
 0x42c   :  { %v6632_v40 = vadd.f32 %v7592_v24, %v2718_v50  ;;  %v6635_v33 = vadd.f32 %v7592_v24, %v2719_v59  ;;  %v2365_v50 = vld [vmem:[%s7252_s1 + $0x218] sm:$0xff] }
 0x42d   :  { %v2720_v55 = vadd.f32 %v2640_v11, %v2360_v51  ;;  %v2721_v38 = vadd.f32 %v2641_v17, %v2361_v35  ;;  %v7599_v35 = vld [vmem:[#allocation52_spill] sm:$0xff]  ;;  %v7601_v17 = vld [vmem:[#allocation55_spill] sm:$0xff] }
 0x42e   :  { %7593 = vst [vmem:[#allocation19_spill] sm:$0xff] %v6632_v40  ;;  %7594 = vst [vmem:[#allocation22_spill] sm:$0xff] %v6635_v33 }
 0x42f   :  { %v6640_v20 = vadd.f32 %v7595_v5, %v2720_v55  ;;  %v6643_v29 = vadd.f32 %v7595_v5, %v2721_v38  ;;  %v2541_v24 = vpop.permute.xlu1 %2540  ;;  %v2364_v5 = vld [vmem:[%s7252_s1 + $0x210] sm:$0xff]  ;;  %v7600_v55 = vld [vmem:[#allocation54_spill] sm:$0xff] }
 0x430   :  { %v2642_v51 = vmul.f32 %v2541_v24, %v7598_v3  ;;  %v2643_v44 = vmul.f32 %v2541_v24, %v7599_v35 }
 0x431   :  { %7596 = vst [vmem:[#allocation24_spill] sm:$0xff] %v6640_v20  ;;  %7597 = vst [vmem:[#allocation21_spill] sm:$0xff] %v6643_v29  ;;  %v7605_v29 = vld [vmem:[#allocation53_spill] sm:$0xff] }
 0x432   :  { %v2546_v59 = vpop.permute.xlu0 %2545  ;;  %v2722_v58 = vadd.f32 %v2642_v51, %v2362_v6  ;;  %v2723_v11 = vadd.f32 %v2643_v44, %v2363_v32  ;;  %v2366_v32 = vld [vmem:[%s7252_s1 + $0x220] sm:$0xff]  ;;  %v7612_v51 = vld [vmem:[#allocation64_spill] sm:$0xff] }
 0x433   :  { %v2644_v38 = vmul.f32 %v2546_v59, %v7600_v55  ;;  %v2645_v28 = vmul.f32 %v2546_v59, %v7601_v17  ;;  %v2367_v17 = vld [vmem:[%s7252_s1 + $0x228] sm:$0xff]  ;;  %v7608_v44 = vld [vmem:[#allocation58_spill] sm:$0xff] }
 0x434   :  { %v6664_v61 = vadd.f32 %v7602_v46, %v2722_v58  ;;  %v6667_v24 = vadd.f32 %v7602_v46, %v2723_v11  ;;  %v2369_v58 = vld [vmem:[%s7252_s1 + $0x238] sm:$0xff] }
 0x435   :  { %v2724_v3 = vadd.f32 %v2644_v38, %v2364_v5  ;;  %v2725_v35 = vadd.f32 %v2645_v28, %v2365_v50  ;;  %v7609_v50 = vld [vmem:[#allocation59_spill] sm:$0xff]  ;;  %v7611_v28 = vld [vmem:[#allocation62_spill] sm:$0xff] }
 0x436   :  { %7603 = vst [vmem:[#allocation26_spill] sm:$0xff] %v6664_v61  ;;  %7604 = vst [vmem:[#allocation23_spill] sm:$0xff] %v6667_v24 }
 0x437   :  { %v6672_v33 = vadd.f32 %v7605_v29, %v2724_v3  ;;  %v6675_v6 = vadd.f32 %v7605_v29, %v2725_v35  ;;  %v2551_v46 = vpop.permute.xlu1 %2550  ;;  %v2368_v29 = vld [vmem:[%s7252_s1 + $0x230] sm:$0xff]  ;;  %v7610_v3 = vld [vmem:[#allocation61_spill] sm:$0xff] }
 0x438   :  { %v2646_v5 = vmul.f32 %v2551_v46, %v7608_v44  ;;  %v2647_v59 = vmul.f32 %v2551_v46, %v7609_v50 }
 0x439   :  { %7606 = vst [vmem:[#allocation30_spill] sm:$0xff] %v6672_v33  ;;  %7607 = vst [vmem:[#allocation25_spill] sm:$0xff] %v6675_v6  ;;  %v7615_v6 = vld [vmem:[#allocation57_spill] sm:$0xff] }
 0x43a   :  { %v2556_v11 = vpop.permute.xlu0 %2555  ;;  %v2726_v55 = vadd.f32 %v2646_v5, %v2366_v32  ;;  %v2727_v38 = vadd.f32 %v2647_v59, %v2367_v17  ;;  %v2370_v17 = vld [vmem:[%s7252_s1 + $0x240] sm:$0xff]  ;;  %v7618_v59 = vld [vmem:[#allocation65_spill] sm:$0xff]  ;;  %v7622_v5 = vld [vmem:[#allocation71_spill] sm:$0xff] }
 0x43b   :  { %v2648_v35 = vmul.f32 %v2556_v11, %v7610_v3  ;;  %v2649_v20 = vmul.f32 %v2556_v11, %v7611_v28  ;;  %v2371_v28 = vld [vmem:[%s7252_s1 + $0x248] sm:$0xff] }
 0x43c   :  { %v6696_v40 = vadd.f32 %v7612_v51, %v2726_v55  ;;  %v6699_v46 = vadd.f32 %v7612_v51, %v2727_v38  ;;  %v2373_v55 = vld [vmem:[%s7252_s1 + $0x258] sm:$0xff] }
 0x43d   :  { %v2728_v44 = vadd.f32 %v2648_v35, %v2368_v29  ;;  %v2729_v50 = vadd.f32 %v2649_v20, %v2369_v58  ;;  %v7619_v58 = vld [vmem:[#allocation66_spill] sm:$0xff]  ;;  %v7621_v20 = vld [vmem:[#allocation68_spill] sm:$0xff] }
 0x43e   :  { %7613 = vst [vmem:[#allocation75_spill] sm:$0xff] %v6696_v40  ;;  %7614 = vst [vmem:[#allocation36_spill] sm:$0xff] %v6699_v46 }
 0x43f   :  { %v6704_v24 = vadd.f32 %v7615_v6, %v2728_v44  ;;  %v6707_v32 = vadd.f32 %v7615_v6, %v2729_v50  ;;  %v2561_v51 = vpop.permute.xlu1 %2560  ;;  %v2372_v6 = vld [vmem:[%s7252_s1 + $0x250] sm:$0xff]  ;;  %v7620_v44 = vld [vmem:[#allocation67_spill] sm:$0xff] }
 0x440   :  { %v2650_v29 = vmul.f32 %v2561_v51, %v7618_v59  ;;  %v2651_v11 = vmul.f32 %v2561_v51, %v7619_v58 }
 0x441   :  { %7616 = vst [vmem:[#allocation29_spill] sm:$0xff] %v6704_v24  ;;  %7617 = vst [vmem:[#allocation76_spill] sm:$0xff] %v6707_v32  ;;  %v7624_v32 = vld [vmem:[#allocation63_spill] sm:$0xff]  ;;  %v7629_v24 = vld [vmem:[#allocation80_spill] sm:$0xff] }
 0x442   :  { %v2566_v38 = vpop.permute.xlu0 %2565  ;;  %v2730_v3 = vadd.f32 %v2650_v29, %v2370_v17  ;;  %v2731_v35 = vadd.f32 %v2651_v11, %v2371_v28  ;;  %v7626_v11 = vld [vmem:[#allocation78_spill] sm:$0xff] }
 0x443   :  { %v2652_v50 = vmul.f32 %v2566_v38, %v7620_v44  ;;  %v2653_v33 = vmul.f32 %v2566_v38, %v7621_v20 }
 0x444   :  { %v6728_v61 = vadd.f32 %v7622_v5, %v2730_v3  ;;  %v6731_v51 = vadd.f32 %v7622_v5, %v2731_v35  ;;  %v2374_v5 = vld [vmem:[%s7252_s1 + $0x260] sm:$0xff] }
 0x445   :  { %v2732_v59 = vadd.f32 %v2652_v50, %v2372_v6  ;;  %v2733_v58 = vadd.f32 %v2653_v33, %v2373_v55  ;;  %v2375_v33 = vld [vmem:[%s7252_s1 + $0x268] sm:$0xff]  ;;  %v7627_v55 = vld [vmem:[#allocation74_spill] sm:$0xff]  ;;  %v2376_v50 = vld [vmem:[%s7252_s1 + $0x270] sm:$0xff] }
 0x446   :  { %7623 = vst [vmem:[#allocation77_spill] sm:$0xff] %v6728_v61 }
 0x447   :  { %v6736_v46 = vadd.f32 %v7624_v32, %v2732_v59  ;;  %v6739_v17 = vadd.f32 %v7624_v32, %v2733_v58  ;;  %v2377_v59 = vld [vmem:[%s7252_s1 + $0x278] sm:$0xff]  ;;  %v7628_v58 = vld [vmem:[#allocation79_spill] sm:$0xff] }
 0x449   :  { %7625 = vst [vmem:[#allocation27_spill] sm:$0xff] %v6736_v46 }
 0x44a   :  { %v2571_v29 = vpop.permute.xlu1 %2570 }
 0x44b   :  { %v2654_v6 = vmul.f32 %v2571_v29, %v7626_v11  ;;  %v2655_v38 = vmul.f32 %v2571_v29, %v7627_v55 }
 0x44d   :  { %v2734_v3 = vadd.f32 %v2654_v6, %v2374_v5  ;;  %v2735_v32 = vadd.f32 %v2655_v38, %v2375_v33 }
 0x44e   :  { %v2576_v35 = vpop.permute.xlu0 %2575  ;;  %v2971_v44 = vpop.permute.xlu1 %2970 }
 0x44f   :  { %v2656_v28 = vmul.f32 %v2576_v35, %v7628_v58  ;;  %v2657_v20 = vmul.f32 %v2576_v35, %v7629_v24  ;;  %v6759_v40 = vadd.f32 %v2971_v44, %v2734_v3  ;;  %v6761_v11 = vadd.f32 %v2971_v44, %v2735_v32 }
 0x450   :  { %v7630_v24 = vmax.f32 %v6143_v31, 0.0  ;;  %v7631_v3 = vmax.f32 %v6155_v62, 0.0  ;;  %v7632_v35 = vmax.f32 %v6140_v52, 0.0  ;;  %v7633_v44 = vmax.f32 %v6152_v30, 0.0 }
 0x451   :  { %v3134_v29 = vmax.f32 %v6759_v40, 0.0  ;;  %v3135_v5 = vmax.f32 %v6761_v11, 0.0  ;;  %v2736_v33 = vadd.f32 %v2656_v28, %v2376_v50  ;;  %v2737_v6 = vadd.f32 %v2657_v20, %v2377_v59 }
 0x452   :  { %v2976_v55 = vpop.permute.xlu0 %2975  ;;  %v3203_v32 = vpack.c.bf16 %v7631_v3, %v7630_v24  ;;  %v3202_v28 = vpack.c.bf16 %v7633_v44, %v7632_v35  ;;  %v7634_v20 = vmax.f32 %v6176_v26, 0.0  ;;  %v7635_v50 = vmax.f32 %v6198_v42, 0.0 }
 0x453   :  { %v6765_v38 = vadd.f32 %v2976_v55, %v2736_v33  ;;  %v6767_v46 = vadd.f32 %v2976_v55, %v2737_v6 }
 0x454   :  { %v3205_v59 = vpack.c.bf16 %v7635_v50, %v7634_v20 }
 0x455   :  { %v3136_v61 = vmax.f32 %v6765_v38, 0.0  ;;  %v3137_v58 = vmax.f32 %v6767_v46, 0.0 }
 0x456   :  { %4296 = dma.done.wait [#allocation3], 7680 }
 0x457   :  { %4297 = vsyncadd [#allocation3], 4294959616  ;;  %3302 = vmatprep.subr.bf16.mxu1 %v3203_v32  ;;  %v7636_v33 = vld [vmem:[#allocation69_spill] sm:$0xff]  ;;  %v7638_v31 = vld [vmem:[#allocation70_spill] sm:$0xff]  ;;  %v7640_v52 = vmax.f32 %v6225_v45, 0.0  ;;  %v7641_v30 = vmax.f32 %v6247_v12, 0.0 }
 0x458   :  { %3303 = vmatpush1.bf16.msra.mxu1 %v3202_v28  ;;  %v7637_v6 = vmax.f32 %v7636_v33, 0.0  ;;  %v7639_v55 = vmax.f32 %v7638_v31, 0.0  ;;  %v7642_v26 = vmax.f32 %v6222_v56, 0.0  ;;  %v7643_v42 = vmax.f32 %v6244_v15, 0.0  ;;  %v3143_v35 = vld [vmem:[#allocation2 + $0x8] sm:$0xff]  ;;  %v3154_v46 = vld [vmem:[#allocation2 + $0x60] sm:$0xff] }
 0x459   :  { %3304 = vmatprep.subr.bf16.mxu1 %v3205_v59  ;;  %v3207_v24 = vpack.c.bf16 %v7641_v30, %v7640_v52  ;;  %v7644_v32 = vmax.f32 %v6273_v47, 0.0  ;;  %v7645_v44 = vmax.f32 %v6295_v53, 0.0  ;;  %3334 = vmatprep.mubr.bf16.mxu1 %v3143_v35  ;;  %v7646_v45 = vmax.f32 %v6270_v34, 0.0  ;;  %v3158_v11 = vld [vmem:[#allocation2 + $0x80] sm:$0xff]  ;;  %v3160_v40 = vld [vmem:[#allocation2 + $0x90] sm:$0xff]  ;;  %v3167_v38 = vld [vmem:[#allocation2 + $0xc8] sm:$0xff] }
 0x45a   :  { %v3204_v62 = vpack.c.bf16 %v7639_v55, %v7637_v6  ;;  %v3206_v3 = vpack.c.bf16 %v7643_v42, %v7642_v26  ;;  %v7647_v12 = vmax.f32 %v6292_v63, 0.0  ;;  %v7648_v56 = vmax.f32 %v6321_v54, 0.0 }
 0x45b   :  { %v3209_v28 = vpack.c.bf16 %v7645_v44, %v7644_v32  ;;  %v7649_v15 = vmax.f32 %v6235_v57, 0.0  ;;  %v7650_v59 = vmax.f32 %v6318_v19, 0.0  ;;  %v7651_v47 = vmax.f32 %v6232_v60, 0.0 }
 0x45c   :  { %3305 = vmatpush1.bf16.msra.mxu1 %v3204_v62  ;;  %v3208_v20 = vpack.c.bf16 %v7647_v12, %v7646_v45  ;;  %v7652_v33 = vmax.f32 %v6343_v1, 0.0  ;;  %v7653_v34 = vmax.f32 %v6283_v23, 0.0  ;;  %v7654_v63 = vmax.f32 %v6340_v21, 0.0 }
 0x45d   :  { %3306 = vmatprep.subr.bf16.mxu1 %v3207_v24  ;;  %v3211_v50 = vpack.c.bf16 %v7649_v15, %v7648_v56  ;;  %v3210_v53 = vpack.c.bf16 %v7651_v47, %v7650_v59  ;;  %v7655_v54 = vmax.f32 %v6280_v10, 0.0  ;;  %v7656_v57 = vmax.f32 %v6369_v25, 0.0 }
 0x45e   :  { %v3213_v6 = vpack.c.bf16 %v7653_v34, %v7652_v33  ;;  %v7657_v19 = vmax.f32 %v6331_v13, 0.0  ;;  %v7658_v60 = vmax.f32 %v6366_v8, 0.0  ;;  %v7659_v1 = vmax.f32 %v6328_v27, 0.0 }
 0x45f   :  { %v3212_v31 = vpack.c.bf16 %v7655_v54, %v7654_v63  ;;  %v7660_v23 = vmax.f32 %v6385_v49, 0.0  ;;  %v7661_v21 = vmax.f32 %v6379_v41, 0.0  ;;  %v7662_v10 = vmax.f32 %v6382_v16, 0.0  ;;  %v7694_v54 = vld [vmem:[#allocation11_spill] sm:$0xff] }
 0x460   :  { %3307 = vmatpush1.bf16.msra.mxu1 %v3206_v3  ;;  %v3215_v55 = vpack.c.bf16 %v7657_v19, %v7656_v57  ;;  %v3214_v62 = vpack.c.bf16 %v7659_v1, %v7658_v60  ;;  %v7663_v25 = vmax.f32 %v6376_v0, 0.0  ;;  %v7664_v13 = vmax.f32 %v6411_v39, 0.0  ;;  %v7696_v19 = vld [vmem:[#allocation9_spill] sm:$0xff]  ;;  %v7698_v60 = vld [vmem:[#allocation15_spill] sm:$0xff] }
 0x461   :  { %3308 = vmatprep.subr.bf16.mxu1 %v3209_v28  ;;  %v3217_v52 = vpack.c.bf16 %v7661_v21, %v7660_v23  ;;  %v7665_v8 = vmax.f32 %v6419_v37, 0.0  ;;  %v7666_v27 = vmax.f32 %v6408_v4, 0.0  ;;  %v7667_v49 = vmax.f32 %v6416_v2, 0.0  ;;  %v7678_v28 = vld [vmem:[#allocation6_spill] sm:$0xff]  ;;  %v7700_v23 = vld [vmem:[#allocation17_spill] sm:$0xff] }
 0x462   :  { %v3216_v30 = vpack.c.bf16 %v7663_v25, %v7662_v10  ;;  %v7668_v41 = vmax.f32 %v6443_v14, 0.0  ;;  %v7669_v16 = vmax.f32 %v6451_v22, 0.0  ;;  %v7670_v0 = vmax.f32 %v6440_v48, 0.0  ;;  %v7676_v22 = vld [vmem:[#allocation73_spill] sm:$0xff] }
 0x463   :  { %v3219_v24 = vpack.c.bf16 %v7665_v8, %v7664_v13  ;;  %v3218_v26 = vpack.c.bf16 %v7667_v49, %v7666_v27  ;;  %v7671_v39 = vmax.f32 %v6448_v9, 0.0  ;;  %v7672_v37 = vmax.f32 %v6475_v36, 0.0  ;;  %v7680_v9 = vld [vmem:[#allocation72_spill] sm:$0xff]  ;;  %v7706_v8 = vld [vmem:[#allocation18_spill] sm:$0xff] }
 0x464   :  { %3309 = vmatpush1.bf16.msra.mxu1 %v3208_v20  ;;  %v3221_v42 = vpack.c.bf16 %v7669_v16, %v7668_v41  ;;  %v7673_v4 = vmax.f32 %v6483_v7, 0.0  ;;  %v7674_v2 = vmax.f32 %v6472_v43, 0.0  ;;  %v7675_v14 = vmax.f32 %v6480_v18, 0.0  ;;  %v7682_v20 = vld [vmem:[#allocation8_spill] sm:$0xff]  ;;  %v7684_v7 = vld [vmem:[#allocation7_spill] sm:$0xff]  ;;  %v7688_v18 = vld [vmem:[#allocation10_spill] sm:$0xff] }
 0x465   :  { %3310 = vmatprep.subr.bf16.mxu1 %v3211_v50  ;;  %v3220_v3 = vpack.c.bf16 %v7671_v39, %v7670_v0  ;;  %v7677_v44 = vmax.f32 %v7676_v22, 0.0  ;;  %v7679_v48 = vmax.f32 %v7678_v28, 0.0  ;;  %v7681_v12 = vmax.f32 %v7680_v9, 0.0  ;;  %v7686_v50 = vld [vmem:[#allocation13_spill] sm:$0xff]  ;;  %v7708_v49 = vld [vmem:[#allocation22_spill] sm:$0xff]  ;;  %v7712_v0 = vld [vmem:[#allocation19_spill] sm:$0xff] }
 0x466   :  { %v3223_v35 = vpack.c.bf16 %v7673_v4, %v7672_v37  ;;  %v3222_v32 = vpack.c.bf16 %v7675_v14, %v7674_v2  ;;  %v7683_v36 = vmax.f32 %v7682_v20, 0.0  ;;  %v7685_v15 = vmax.f32 %v7684_v7, 0.0  ;;  %v7710_v41 = vld [vmem:[#allocation21_spill] sm:$0xff]  ;;  %v7720_v28 = vld [vmem:[#allocation26_spill] sm:$0xff]  ;;  %v7726_v7 = vld [vmem:[#allocation76_spill] sm:$0xff] }
 0x467   :  { %v3225_v45 = vpack.c.bf16 %v7679_v48, %v7677_v44  ;;  %v7687_v43 = vmax.f32 %v7686_v50, 0.0  ;;  %v7689_v47 = vmax.f32 %v7688_v18, 0.0  ;;  %v7699_v1 = vmax.f32 %v7698_v60, 0.0  ;;  %v7718_v14 = vld [vmem:[#allocation25_spill] sm:$0xff]  ;;  %v3142_v44 = vld [vmem:[#allocation2] sm:$0xff] }
 0x468   :  { %3311 = vmatpush1.bf16.msra.mxu1 %v3210_v53  ;;  %v3224_v56 = vpack.c.bf16 %v7683_v36, %v7681_v12  ;;  %v7690_v53 = vld [vmem:[#allocation12_spill] sm:$0xff]  ;;  %v7701_v21 = vmax.f32 %v7700_v23, 0.0  ;;  %v7711_v16 = vmax.f32 %v7710_v41, 0.0  ;;  %v7713_v39 = vmax.f32 %v7712_v0, 0.0  ;;  %v3146_v20 = vld [vmem:[#allocation2 + $0x20] sm:$0xff]  ;;  %v7730_v18 = vld [vmem:[#allocation29_spill] sm:$0xff] }
 0x469   :  { %3312 = vmatprep.subr.bf16.mxu1 %v3213_v6  ;;  %v3227_v59 = vpack.c.bf16 %v7687_v43, %v7685_v15  ;;  %v7691_v33 = vmax.f32 %v7690_v53, 0.0  ;;  %v7692_v6 = vld [vmem:[#allocation14_spill] sm:$0xff]  ;;  %v7721_v48 = vmax.f32 %v7720_v28, 0.0  ;;  %v7724_v36 = vld [vmem:[#allocation36_spill] sm:$0xff]  ;;  %v7727_v15 = vmax.f32 %v7726_v7, 0.0  ;;  %v7728_v43 = vld [vmem:[#allocation75_spill] sm:$0xff] }
 0x46a   :  { %v7693_v63 = vmax.f32 %v7692_v6, 0.0  ;;  %v3149_v60 = vld [vmem:[#allocation2 + $0x38] sm:$0xff]  ;;  %v3151_v23 = vld [vmem:[#allocation2 + $0x48] sm:$0xff]  ;;  %v3188_v0 = vld [vmem:[#allocation2 + $0x170] sm:$0xff] }
 0x46b   :  { %v3226_v34 = vpack.c.bf16 %v7691_v33, %v7689_v47  ;;  %v7731_v47 = vmax.f32 %v7730_v18, 0.0  ;;  %v7732_v33 = vmax.f32 %v6731_v51, 0.0  ;;  %v3240_v51 = vpack.c.bf16 %v3136_v61, %v3134_v29  ;;  %v3164_v61 = vld [vmem:[#allocation2 + $0xb0] sm:$0xff]  ;;  %v3163_v29 = vld [vmem:[#allocation2 + $0xa8] sm:$0xff]  ;;  %v3181_v41 = vld [vmem:[#allocation2 + $0x138] sm:$0xff] }
 0x46c   :  { %3313 = vmatpush1.bf16.msra.mxu1 %v3212_v31  ;;  %v7695_v31 = vmax.f32 %v7694_v54, 0.0  ;;  %v7734_v54 = vld [vmem:[#allocation77_spill] sm:$0xff]  ;;  %v3144_v28 = vld [vmem:[#allocation2 + $0x10] sm:$0xff]  ;;  %v3183_v18 = vld [vmem:[#allocation2 + $0x148] sm:$0xff] }
 0x46d   :  { %3314 = vmatprep.subr.bf16.mxu1 %v3215_v55  ;;  %v7697_v55 = vmax.f32 %v7696_v19, 0.0  ;;  %v3168_v7 = vld [vmem:[#allocation2 + $0xd0] sm:$0xff] }
 0x46e   :  { %v3229_v57 = vpack.c.bf16 %v7695_v31, %v7693_v63  ;;  %v3145_v63 = vld [vmem:[#allocation2 + $0x18] sm:$0xff]  ;;  %v7735_v31 = vmax.f32 %v7734_v54, 0.0 }
 0x470   :  { %3315 = vmatpush1.bf16.msra.mxu1 %v3214_v62  ;;  %v3228_v62 = vpack.c.bf16 %v7699_v1, %v7697_v55  ;;  %v3241_v1 = vpack.c.bf16 %v3137_v58, %v3135_v5  ;;  %v3157_v5 = vld [vmem:[#allocation2 + $0x78] sm:$0xff] }
 0x471   :  { %3316 = vmatprep.subr.bf16.mxu1 %v3217_v52  ;;  %v7702_v52 = vld [vmem:[#allocation20_spill] sm:$0xff]  ;;  %v3161_v58 = vld [vmem:[#allocation2 + $0x98] sm:$0xff] }
 0x472   :  { %v7703_v10 = vmax.f32 %v7702_v52, 0.0  ;;  %v3166_v52 = vld [vmem:[#allocation2 + $0xc0] sm:$0xff] }
 0x474   :  { %3317 = vmatpush1.bf16.msra.mxu1 %v3216_v30  ;;  %v3231_v25 = vpack.c.bf16 %v7703_v10, %v7701_v21  ;;  %v7704_v30 = vld [vmem:[#allocation16_spill] sm:$0xff]  ;;  %v3155_v21 = vld [vmem:[#allocation2 + $0x68] sm:$0xff]  ;;  %v3170_v10 = vld [vmem:[#allocation2 + $0xe0] sm:$0xff] }
 0x475   :  { %3318 = vmatprep.subr.bf16.mxu1 %v3219_v24  ;;  %v7705_v13 = vmax.f32 %v7704_v30, 0.0  ;;  %v7707_v24 = vmax.f32 %v7706_v8, 0.0  ;;  %v3173_v30 = vld [vmem:[#allocation2 + $0xf8] sm:$0xff]  ;;  %v3176_v8 = vld [vmem:[#allocation2 + $0x110] sm:$0xff] }
 0x477   :  { %v3230_v27 = vpack.c.bf16 %v7707_v24, %v7705_v13  ;;  %v3172_v13 = vld [vmem:[#allocation2 + $0xf0] sm:$0xff]  ;;  %v3175_v24 = vld [vmem:[#allocation2 + $0x108] sm:$0xff] }
 0x478   :  { %3319 = vmatpush1.bf16.msra.mxu1 %v3218_v26  ;;  %v7709_v26 = vmax.f32 %v7708_v49, 0.0  ;;  %v3178_v49 = vld [vmem:[#allocation2 + $0x120] sm:$0xff] }
 0x479   :  { %3320 = vmatprep.subr.bf16.mxu1 %v3221_v42 }
 0x47a   :  { %v3233_v42 = vpack.c.bf16 %v7711_v16, %v7709_v26  ;;  %v3182_v26 = vld [vmem:[#allocation2 + $0x140] sm:$0xff]  ;;  %v3185_v16 = vld [vmem:[#allocation2 + $0x158] sm:$0xff] }
 0x47c   :  { %3321 = vmatpush1.bf16.msra.mxu1 %v3220_v3  ;;  %v7714_v3 = vld [vmem:[#allocation24_spill] sm:$0xff] }
 0x47d   :  { %3322 = vmatprep.subr.bf16.mxu1 %v3223_v35  ;;  %v7715_v37 = vmax.f32 %v7714_v3, 0.0  ;;  %v7716_v35 = vld [vmem:[#allocation23_spill] sm:$0xff] }
 0x47e   :  { %v7717_v2 = vmax.f32 %v7716_v35, 0.0  ;;  %v3191_v3 = vld [vmem:[#allocation2 + $0x188] sm:$0xff]  ;;  %v3193_v35 = vld [vmem:[#allocation2 + $0x198] sm:$0xff] }
 0x47f   :  { %v3232_v4 = vpack.c.bf16 %v7715_v37, %v7713_v39  ;;  %v3187_v39 = vld [vmem:[#allocation2 + $0x168] sm:$0xff]  ;;  %v3190_v37 = vld [vmem:[#allocation2 + $0x180] sm:$0xff] }
 0x480   :  { %3323 = vmatpush1.bf16.msra.mxu1 %v3222_v32  ;;  %v7719_v32 = vmax.f32 %v7718_v14, 0.0  ;;  %v3196_v14 = vld [vmem:[#allocation2 + $0x1b0] sm:$0xff] }
 0x481   :  { %3324 = vmatprep.subr.bf16.mxu1 %v3225_v45  ;;  %v7722_v45 = vld [vmem:[#allocation30_spill] sm:$0xff] }
 0x482   :  { %v3235_v22 = vpack.c.bf16 %v7719_v32, %v7717_v2  ;;  %v7723_v9 = vmax.f32 %v7722_v45, 0.0  ;;  %v3197_v2 = vld [vmem:[#allocation2 + $0x1b8] sm:$0xff]  ;;  %v3200_v32 = vld [vmem:[#allocation2 + $0x1d0] sm:$0xff]  ;;  %v3150_v45 = vld [vmem:[#allocation2 + $0x40] sm:$0xff] }
 0x484   :  { %3325 = vmatpush1.bf16.msra.mxu1 %v3224_v56  ;;  %v3234_v12 = vpack.c.bf16 %v7723_v9, %v7721_v48  ;;  %v7725_v56 = vmax.f32 %v7724_v36, 0.0  ;;  %v3147_v48 = vld [vmem:[#allocation2 + $0x28] sm:$0xff]  ;;  %v3153_v9 = vld [vmem:[#allocation2 + $0x58] sm:$0xff]  ;;  %v3162_v36 = vld [vmem:[#allocation2 + $0xa0] sm:$0xff] }
 0x485   :  { %3326 = vmatprep.subr.bf16.mxu1 %v3227_v59  ;;  %v7729_v59 = vmax.f32 %v7728_v43, 0.0  ;;  %v3177_v43 = vld [vmem:[#allocation2 + $0x118] sm:$0xff] }
 0x486   :  { %v3237_v50 = vpack.c.bf16 %v7727_v15, %v7725_v56  ;;  %v3165_v56 = vld [vmem:[#allocation2 + $0xb8] sm:$0xff]  ;;  %v3171_v15 = vld [vmem:[#allocation2 + $0xe8] sm:$0xff] }
 0x487   :  { %v3236_v53 = vpack.c.bf16 %v7731_v47, %v7729_v59  ;;  %v3180_v59 = vld [vmem:[#allocation2 + $0x130] sm:$0xff]  ;;  %v3186_v47 = vld [vmem:[#allocation2 + $0x160] sm:$0xff] }
 0x488   :  { %3327 = vmatpush1.bf16.msra.mxu1 %v3226_v34  ;;  %v7733_v34 = vmax.f32 %v6739_v17, 0.0  ;;  %v3148_v17 = vld [vmem:[#allocation2 + $0x30] sm:$0xff] }
 0x489   :  { %3328 = vmatprep.subr.bf16.mxu1 %v3229_v57  ;;  %v7736_v57 = vld [vmem:[#allocation27_spill] sm:$0xff] }
 0x48a   :  { %v3239_v6 = vpack.c.bf16 %v7733_v34, %v7732_v33  ;;  %v7737_v19 = vmax.f32 %v7736_v57, 0.0  ;;  %v3192_v33 = vld [vmem:[#allocation2 + $0x190] sm:$0xff]  ;;  %v3195_v34 = vld [vmem:[#allocation2 + $0x1a8] sm:$0xff] }
 0x48c   :  { %3329 = vmatpush1.bf16.msra.mxu1 %v3228_v62  ;;  %v3238_v55 = vpack.c.bf16 %v7737_v19, %v7735_v31  ;;  %v3152_v62 = vld [vmem:[#allocation2 + $0x50] sm:$0xff] }
 0x48d   :  { %3330 = vmatprep.subr.bf16.mxu1 %v3231_v25  ;;  %v3169_v25 = vld [vmem:[#allocation2 + $0xd8] sm:$0xff] }
 0x490   :  { %3331 = vmatpush1.bf16.msra.mxu1 %v3230_v27  ;;  %v3179_v27 = vld [vmem:[#allocation2 + $0x128] sm:$0xff] }
 0x491   :  { %3332 = vmatprep.subr.bf16.mxu1 %v3233_v42  ;;  %v3184_v42 = vld [vmem:[#allocation2 + $0x150] sm:$0xff] }
 0x494   :  { %3333 = vmatpush1.bf16.msra.mxu1 %v3232_v4  ;;  %v3194_v4 = vld [vmem:[#allocation2 + $0x1a0] sm:$0xff] }
 0x495   :  { %3535 = vmatprep.subr.bf16.mxu1 %v3235_v22  ;;  %v3199_v22 = vld [vmem:[#allocation2 + $0x1c8] sm:$0xff] }
 0x497   :  { %3335 = vmatmul.mubr.bf16.vlgmr.msra.gmra.mrb[0].mxu1 %v3142_v44  ;;  %v7738_v44 = vmov 0  }
 0x498   :  { %3536 = vmatpush1.bf16.msra.mxu1 %v3234_v12  ;;  %3344 = vmatprep.mubr.bf16.mxu1 %v3146_v20  ;;  %v3156_v12 = vld [vmem:[#allocation2 + $0x70] sm:$0xff]  ;;  %v3159_v20 = vld [vmem:[#allocation2 + $0x88] sm:$0xff] }
 0x499   :  { %3537 = vmatprep.subr.bf16.mxu1 %v3237_v50  ;;  %v3174_v50 = vld [vmem:[#allocation2 + $0x100] sm:$0xff] }
 0x49c   :  { %3538 = vmatpush1.bf16.msra.mxu1 %v3236_v53  ;;  %v3189_v53 = vld [vmem:[#allocation2 + $0x178] sm:$0xff] }
 0x49d   :  { %3539 = vmatprep.subr.bf16.mxu1 %v3239_v6  ;;  %v3198_v6 = vld [vmem:[#allocation2 + $0x1c0] sm:$0xff] }
 0x49f   :  { %3345 = vmatmul.mubr.bf16.gmra.mrb[4].mxu1 %v3145_v63  ;;  %v3201_v63 = vld [vmem:[#allocation2 + $0x1d8] sm:$0xff] }
 0x4a0   :  { %3354 = vmatprep.mubr.bf16.mxu1 %v3149_v60  ;;  %3540 = vmatpush1.bf16.msra.mxu1 %v3238_v55 }
 0x4a1   :  { %3541 = vmatprep.subr.bf16.mxu1 %v3241_v1 }
 0x4a4   :  { %3542 = vmatpush1.bf16.msra.mxu1 %v3240_v51 }
 0x4a7   :  { %3355 = vmatmul.mubr.bf16.gmra.mrb[8].mxu1 %v3148_v17 }
 0x4a8   :  { %3364 = vmatprep.mubr.bf16.mxu1 %v3152_v62 }
 0x4af   :  { %3365 = vmatmul.mubr.bf16.gmra.mrb[12].mxu1 %v3151_v23 }
 0x4b0   :  { %3374 = vmatprep.mubr.bf16.mxu1 %v3155_v21 }
 0x4b7   :  { %3375 = vmatmul.mubr.bf16.gmra.mrb[16].mxu1 %v3154_v46 }
 0x4b8   :  { %3384 = vmatprep.mubr.bf16.mxu1 %v3158_v11 }
 0x4bf   :  { %3385 = vmatmul.mubr.bf16.gmra.mrb[20].mxu1 %v3157_v5 }
 0x4c0   :  { %3394 = vmatprep.mubr.bf16.mxu1 %v3161_v58 }
 0x4c7   :  { %3395 = vmatmul.mubr.bf16.gmra.mrb[24].mxu1 %v3160_v40 }
 0x4c8   :  { %3404 = vmatprep.mubr.bf16.mxu1 %v3164_v61 }
 0x4cf   :  { %3405 = vmatmul.mubr.bf16.gmra.mrb[28].mxu1 %v3163_v29 }
 0x4d0   :  { %3414 = vmatprep.mubr.bf16.mxu1 %v3167_v38 }
 0x4d7   :  { %3415 = vmatmul.mubr.bf16.gmra.mrb[32].mxu1 %v3166_v52 }
 0x4d8   :  { %3424 = vmatprep.mubr.bf16.mxu1 %v3170_v10 }
 0x4df   :  { %3425 = vmatmul.mubr.bf16.gmra.mrb[36].mxu1 %v3169_v25 }
 0x4e0   :  { %3434 = vmatprep.mubr.bf16.mxu1 %v3173_v30 }
 0x4e7   :  { %3435 = vmatmul.mubr.bf16.gmra.mrb[40].mxu1 %v3172_v13 }
 0x4e8   :  { %3444 = vmatprep.mubr.bf16.mxu1 %v3176_v8 }
 0x4ef   :  { %3445 = vmatmul.mubr.bf16.gmra.mrb[44].mxu1 %v3175_v24 }
 0x4f0   :  { %3454 = vmatprep.mubr.bf16.mxu1 %v3179_v27 }
 0x4f7   :  { %3455 = vmatmul.mubr.bf16.gmra.mrb[48].mxu1 %v3178_v49 }
 0x4f8   :  { %3464 = vmatprep.mubr.bf16.mxu1 %v3182_v26 }
 0x4ff   :  { %3465 = vmatmul.mubr.bf16.gmra.mrb[52].mxu1 %v3181_v41 }
 0x500   :  { %3474 = vmatprep.mubr.bf16.mxu1 %v3185_v16 }
 0x507   :  { %3475 = vmatmul.mubr.bf16.gmra.mrb[56].mxu1 %v3184_v42 }
 0x508   :  { %3484 = vmatprep.mubr.bf16.mxu1 %v3188_v0 }
 0x50f   :  { %3485 = vmatmul.mubr.bf16.gmra.mrb[60].mxu1 %v3187_v39 }
 0x510   :  { %3494 = vmatprep.mubr.bf16.mxu1 %v3191_v3 }
 0x517   :  { %3495 = vmatmul.mubr.bf16.gmra.mrb[64].mxu1 %v3190_v37 }
 0x518   :  { %3504 = vmatprep.mubr.bf16.mxu1 %v3194_v4 }
 0x51f   :  { %3505 = vmatmul.mubr.bf16.gmra.mrb[68].mxu1 %v3193_v35 }
 0x520   :  { %3514 = vmatprep.mubr.bf16.mxu1 %v3197_v2 }
 0x527   :  { %3515 = vmatmul.mubr.bf16.gmra.mrb[72].mxu1 %v3196_v14 }
 0x528   :  { %3524 = vmatprep.mubr.bf16.mxu1 %v3200_v32 }
 0x52f   :  { %3525 = vmatmul.mubr.bf16.gmra.mrb[76].mxu1 %v3199_v22 }
 0x530   :  { %3567 = vmatprep.mubr.bf16.mxu1 %v7738_v44 }
 0x537   :  { %3952 = vmatmul.mubr.msk.bf16.vlgmr.msra.gmra.mrb[0].mxu1 %vm1050_vm0, %v3144_v28 }
 0x538   :  { %3577 = vmatprep.mubr.bf16.mxu1 %v7738_v44 }
 0x53f   :  { %3953 = vmatmul.mubr.msk.bf16.gmra.mrb[4].mxu1 %vm1050_vm0, %v3147_v48 }
 0x540   :  { %3587 = vmatprep.mubr.bf16.mxu1 %v7738_v44 }
 0x547   :  { %3954 = vmatmul.mubr.msk.bf16.gmra.mrb[8].mxu1 %vm1050_vm0, %v3150_v45 }
 0x548   :  { %3597 = vmatprep.mubr.bf16.mxu1 %v7738_v44 }
 0x54f   :  { %3955 = vmatmul.mubr.msk.bf16.gmra.mrb[12].mxu1 %vm1050_vm0, %v3153_v9 }
 0x550   :  { %3607 = vmatprep.mubr.bf16.mxu1 %v7738_v44 }
 0x557   :  { %3956 = vmatmul.mubr.msk.bf16.gmra.mrb[16].mxu1 %vm1050_vm0, %v3156_v12 }
 0x558   :  { %3617 = vmatprep.mubr.bf16.mxu1 %v7738_v44 }
 0x55f   :  { %3957 = vmatmul.mubr.msk.bf16.gmra.mrb[20].mxu1 %vm1050_vm0, %v3159_v20 }
 0x560   :  { %3627 = vmatprep.mubr.bf16.mxu1 %v7738_v44 }
 0x567   :  { %3958 = vmatmul.mubr.msk.bf16.gmra.mrb[24].mxu1 %vm1050_vm0, %v3162_v36 }
 0x568   :  { %3637 = vmatprep.mubr.bf16.mxu1 %v7738_v44 }
 0x56f   :  { %3959 = vmatmul.mubr.msk.bf16.gmra.mrb[28].mxu1 %vm1050_vm0, %v3165_v56 }
 0x570   :  { %3647 = vmatprep.mubr.bf16.mxu1 %v7738_v44 }
 0x577   :  { %3960 = vmatmul.mubr.msk.bf16.gmra.mrb[32].mxu1 %vm1050_vm0, %v3168_v7 }
 0x578   :  { %3657 = vmatprep.mubr.bf16.mxu1 %v7738_v44 }
 0x57f   :  { %3961 = vmatmul.mubr.msk.bf16.gmra.mrb[36].mxu1 %vm1050_vm0, %v3171_v15 }
 0x580   :  { %3667 = vmatprep.mubr.bf16.mxu1 %v7738_v44 }
 0x587   :  { %3962 = vmatmul.mubr.msk.bf16.gmra.mrb[40].mxu1 %vm1050_vm0, %v3174_v50 }
 0x588   :  { %3677 = vmatprep.mubr.bf16.mxu1 %v7738_v44 }
 0x58f   :  { %3963 = vmatmul.mubr.msk.bf16.gmra.mrb[44].mxu1 %vm1050_vm0, %v3177_v43 }
 0x590   :  { %3687 = vmatprep.mubr.bf16.mxu1 %v7738_v44 }
 0x597   :  { %3964 = vmatmul.mubr.msk.bf16.gmra.mrb[48].mxu1 %vm1050_vm0, %v3180_v59 }
 0x598   :  { %3697 = vmatprep.mubr.bf16.mxu1 %v7738_v44 }
 0x59f   :  { %3965 = vmatmul.mubr.msk.bf16.gmra.mrb[52].mxu1 %vm1050_vm0, %v3183_v18 }
 0x5a0   :  { %3707 = vmatprep.mubr.bf16.mxu1 %v7738_v44 }
 0x5a7   :  { %3966 = vmatmul.mubr.msk.bf16.gmra.mrb[56].mxu1 %vm1050_vm0, %v3186_v47 }
 0x5a8   :  { %3717 = vmatprep.mubr.bf16.mxu1 %v7738_v44 }
 0x5af   :  { %3967 = vmatmul.mubr.msk.bf16.gmra.mrb[60].mxu1 %vm1050_vm0, %v3189_v53 }
 0x5b0   :  { %3727 = vmatprep.mubr.bf16.mxu1 %v7738_v44 }
 0x5b7   :  { %3968 = vmatmul.mubr.msk.bf16.gmra.mrb[64].mxu1 %vm1050_vm0, %v3192_v33 }
 0x5b8   :  { %3737 = vmatprep.mubr.bf16.mxu1 %v7738_v44 }
 0x5bf   :  { %3969 = vmatmul.mubr.msk.bf16.gmra.mrb[68].mxu1 %vm1050_vm0, %v3195_v34 }
 0x5c0   :  { %3747 = vmatprep.mubr.bf16.mxu1 %v7738_v44 }
 0x5c7   :  { %3970 = vmatmul.mubr.msk.bf16.gmra.mrb[72].mxu1 %vm1050_vm0, %v3198_v6 }
 0x5c8   :  { %3757 = vmatprep.mubr.bf16.mxu1 %v7738_v44 }
 0x5cf   :  { %3971 = vmatmul.mubr.msk.bf16.gmra.mrb[76].mxu1 %vm1050_vm0, %v3201_v63 }
 0x60a   :  { %v3569_v54 = vpop.f32.mrb[0].mxu1 }
 0x60b   :  { %3768 = vst [vmem:[%s7257_s6] sm:$0xff] %v3569_v54  ;;  %v3571_v31 = vpop.f32.mrb[1].mxu1 }
 0x60c   :  { %3769 = vst.msk [vmem:[%s7257_s6 + $0x8] sm:$0xff] %vm1577_vm1, %v3571_v31  ;;  %v3573_v57 = vpop.f32.mrb[2].mxu1 }
 0x60d   :  { %3770 = vst [vmem:[%s7257_s6 + $0x10] sm:$0xff] %v3573_v57  ;;  %v3575_v19 = vpop.f32.mrb[3].mxu1 }
 0x60e   :  { %3771 = vst.msk [vmem:[%s7257_s6 + $0x18] sm:$0xff] %vm1577_vm1, %v3575_v19 }
 0x612   :  { %v3579_v55 = vpop.f32.mrb[4].mxu1 }
 0x613   :  { %3772 = vst [vmem:[%s7257_s6 + $0x20] sm:$0xff] %v3579_v55  ;;  %v3581_v60 = vpop.f32.mrb[5].mxu1 }
 0x614   :  { %3773 = vst.msk [vmem:[%s7257_s6 + $0x28] sm:$0xff] %vm1577_vm1, %v3581_v60  ;;  %v3583_v1 = vpop.f32.mrb[6].mxu1 }
 0x615   :  { %3774 = vst [vmem:[%s7257_s6 + $0x30] sm:$0xff] %v3583_v1  ;;  %v3585_v51 = vpop.f32.mrb[7].mxu1 }
 0x616   :  { %3775 = vst.msk [vmem:[%s7257_s6 + $0x38] sm:$0xff] %vm1577_vm1, %v3585_v51 }
 0x61a   :  { %v3589_v17 = vpop.f32.mrb[8].mxu1 }
 0x61b   :  { %3776 = vst [vmem:[%s7257_s6 + $0x40] sm:$0xff] %v3589_v17  ;;  %v3591_v62 = vpop.f32.mrb[9].mxu1 }
 0x61c   :  { %3777 = vst.msk [vmem:[%s7257_s6 + $0x48] sm:$0xff] %vm1577_vm1, %v3591_v62  ;;  %v3593_v23 = vpop.f32.mrb[10].mxu1 }
 0x61d   :  { %3778 = vst [vmem:[%s7257_s6 + $0x50] sm:$0xff] %v3593_v23  ;;  %v3595_v21 = vpop.f32.mrb[11].mxu1 }
 0x61e   :  { %3779 = vst.msk [vmem:[%s7257_s6 + $0x58] sm:$0xff] %vm1577_vm1, %v3595_v21 }
 0x622   :  { %v3599_v46 = vpop.f32.mrb[12].mxu1 }
 0x623   :  { %3780 = vst [vmem:[%s7257_s6 + $0x60] sm:$0xff] %v3599_v46  ;;  %v3601_v11 = vpop.f32.mrb[13].mxu1 }
 0x624   :  { %3781 = vst.msk [vmem:[%s7257_s6 + $0x68] sm:$0xff] %vm1577_vm1, %v3601_v11  ;;  %v3603_v5 = vpop.f32.mrb[14].mxu1 }
 0x625   :  { %3782 = vst [vmem:[%s7257_s6 + $0x70] sm:$0xff] %v3603_v5  ;;  %v3605_v58 = vpop.f32.mrb[15].mxu1 }
 0x626   :  { %3783 = vst.msk [vmem:[%s7257_s6 + $0x78] sm:$0xff] %vm1577_vm1, %v3605_v58 }
 0x62a   :  { %v3609_v40 = vpop.f32.mrb[16].mxu1 }
 0x62b   :  { %3784 = vst [vmem:[%s7257_s6 + $0x80] sm:$0xff] %v3609_v40  ;;  %v3611_v61 = vpop.f32.mrb[17].mxu1 }
 0x62c   :  { %3785 = vst.msk [vmem:[%s7257_s6 + $0x88] sm:$0xff] %vm1577_vm1, %v3611_v61  ;;  %v3613_v29 = vpop.f32.mrb[18].mxu1 }
 0x62d   :  { %3786 = vst [vmem:[%s7257_s6 + $0x90] sm:$0xff] %v3613_v29  ;;  %v3615_v38 = vpop.f32.mrb[19].mxu1 }
 0x62e   :  { %3787 = vst.msk [vmem:[%s7257_s6 + $0x98] sm:$0xff] %vm1577_vm1, %v3615_v38 }
 0x632   :  { %v3619_v52 = vpop.f32.mrb[20].mxu1 }
 0x633   :  { %3788 = vst [vmem:[%s7257_s6 + $0xa0] sm:$0xff] %v3619_v52  ;;  %v3621_v10 = vpop.f32.mrb[21].mxu1 }
 0x634   :  { %3789 = vst.msk [vmem:[%s7257_s6 + $0xa8] sm:$0xff] %vm1577_vm1, %v3621_v10  ;;  %v3623_v25 = vpop.f32.mrb[22].mxu1 }
 0x635   :  { %3790 = vst [vmem:[%s7257_s6 + $0xb0] sm:$0xff] %v3623_v25  ;;  %v3625_v30 = vpop.f32.mrb[23].mxu1 }
 0x636   :  { %3791 = vst.msk [vmem:[%s7257_s6 + $0xb8] sm:$0xff] %vm1577_vm1, %v3625_v30 }
 0x63a   :  { %v3629_v13 = vpop.f32.mrb[24].mxu1 }
 0x63b   :  { %3792 = vst [vmem:[%s7257_s6 + $0xc0] sm:$0xff] %v3629_v13  ;;  %v3631_v8 = vpop.f32.mrb[25].mxu1 }
 0x63c   :  { %3793 = vst.msk [vmem:[%s7257_s6 + $0xc8] sm:$0xff] %vm1577_vm1, %v3631_v8  ;;  %v3633_v24 = vpop.f32.mrb[26].mxu1 }
 0x63d   :  { %3794 = vst [vmem:[%s7257_s6 + $0xd0] sm:$0xff] %v3633_v24  ;;  %v3635_v27 = vpop.f32.mrb[27].mxu1 }
 0x63e   :  { %3795 = vst.msk [vmem:[%s7257_s6 + $0xd8] sm:$0xff] %vm1577_vm1, %v3635_v27 }
 0x642   :  { %v3639_v49 = vpop.f32.mrb[28].mxu1 }
 0x643   :  { %3796 = vst [vmem:[%s7257_s6 + $0xe0] sm:$0xff] %v3639_v49  ;;  %v3641_v26 = vpop.f32.mrb[29].mxu1 }
 0x644   :  { %3797 = vst.msk [vmem:[%s7257_s6 + $0xe8] sm:$0xff] %vm1577_vm1, %v3641_v26  ;;  %v3643_v41 = vpop.f32.mrb[30].mxu1 }
 0x645   :  { %3798 = vst [vmem:[%s7257_s6 + $0xf0] sm:$0xff] %v3643_v41  ;;  %v3645_v16 = vpop.f32.mrb[31].mxu1 }
 0x646   :  { %3799 = vst.msk [vmem:[%s7257_s6 + $0xf8] sm:$0xff] %vm1577_vm1, %v3645_v16 }
 0x64a   :  { %v3649_v42 = vpop.f32.mrb[32].mxu1 }
 0x64b   :  { %3800 = vst [vmem:[%s7257_s6 + $0x100] sm:$0xff] %v3649_v42  ;;  %v3651_v0 = vpop.f32.mrb[33].mxu1 }
 0x64c   :  { %3801 = vst.msk [vmem:[%s7257_s6 + $0x108] sm:$0xff] %vm1577_vm1, %v3651_v0  ;;  %v3653_v39 = vpop.f32.mrb[34].mxu1 }
 0x64d   :  { %3802 = vst [vmem:[%s7257_s6 + $0x110] sm:$0xff] %v3653_v39  ;;  %v3655_v3 = vpop.f32.mrb[35].mxu1 }
 0x64e   :  { %3803 = vst.msk [vmem:[%s7257_s6 + $0x118] sm:$0xff] %vm1577_vm1, %v3655_v3 }
 0x652   :  { %v3659_v37 = vpop.f32.mrb[36].mxu1 }
 0x653   :  { %3804 = vst [vmem:[%s7257_s6 + $0x120] sm:$0xff] %v3659_v37  ;;  %v3661_v4 = vpop.f32.mrb[37].mxu1 }
 0x654   :  { %3805 = vst.msk [vmem:[%s7257_s6 + $0x128] sm:$0xff] %vm1577_vm1, %v3661_v4  ;;  %v3663_v35 = vpop.f32.mrb[38].mxu1 }
 0x655   :  { %3806 = vst [vmem:[%s7257_s6 + $0x130] sm:$0xff] %v3663_v35  ;;  %v3665_v2 = vpop.f32.mrb[39].mxu1 }
 0x656   :  { %3807 = vst.msk [vmem:[%s7257_s6 + $0x138] sm:$0xff] %vm1577_vm1, %v3665_v2 }
 0x65a   :  { %v3669_v14 = vpop.f32.mrb[40].mxu1 }
 0x65b   :  { %3808 = vst [vmem:[%s7257_s6 + $0x140] sm:$0xff] %v3669_v14  ;;  %v3671_v32 = vpop.f32.mrb[41].mxu1 }
 0x65c   :  { %3809 = vst.msk [vmem:[%s7257_s6 + $0x148] sm:$0xff] %vm1577_vm1, %v3671_v32  ;;  %v3673_v22 = vpop.f32.mrb[42].mxu1 }
 0x65d   :  { %3810 = vst [vmem:[%s7257_s6 + $0x150] sm:$0xff] %v3673_v22  ;;  %v3675_v44 = vpop.f32.mrb[43].mxu1 }
 0x65e   :  { %3811 = vst.msk [vmem:[%s7257_s6 + $0x158] sm:$0xff] %vm1577_vm1, %v3675_v44 }
 0x662   :  { %v3679_v28 = vpop.f32.mrb[44].mxu1 }
 0x663   :  { %3812 = vst [vmem:[%s7257_s6 + $0x160] sm:$0xff] %v3679_v28  ;;  %v3681_v48 = vpop.f32.mrb[45].mxu1 }
 0x664   :  { %3813 = vst.msk [vmem:[%s7257_s6 + $0x168] sm:$0xff] %vm1577_vm1, %v3681_v48  ;;  %v3683_v45 = vpop.f32.mrb[46].mxu1 }
 0x665   :  { %3814 = vst [vmem:[%s7257_s6 + $0x170] sm:$0xff] %v3683_v45  ;;  %v3685_v9 = vpop.f32.mrb[47].mxu1 }
 0x666   :  { %3815 = vst.msk [vmem:[%s7257_s6 + $0x178] sm:$0xff] %vm1577_vm1, %v3685_v9 }
 0x66a   :  { %v3689_v12 = vpop.f32.mrb[48].mxu1 }
 0x66b   :  { %3816 = vst [vmem:[%s7257_s6 + $0x180] sm:$0xff] %v3689_v12  ;;  %v3691_v20 = vpop.f32.mrb[49].mxu1 }
 0x66c   :  { %3817 = vst.msk [vmem:[%s7257_s6 + $0x188] sm:$0xff] %vm1577_vm1, %v3691_v20  ;;  %v3693_v36 = vpop.f32.mrb[50].mxu1 }
 0x66d   :  { %3818 = vst [vmem:[%s7257_s6 + $0x190] sm:$0xff] %v3693_v36  ;;  %v3695_v56 = vpop.f32.mrb[51].mxu1 }
 0x66e   :  { %3819 = vst.msk [vmem:[%s7257_s6 + $0x198] sm:$0xff] %vm1577_vm1, %v3695_v56 }
 0x672   :  { %v3699_v7 = vpop.f32.mrb[52].mxu1 }
 0x673   :  { %3820 = vst [vmem:[%s7257_s6 + $0x1a0] sm:$0xff] %v3699_v7  ;;  %v3701_v15 = vpop.f32.mrb[53].mxu1 }
 0x674   :  { %3821 = vst.msk [vmem:[%s7257_s6 + $0x1a8] sm:$0xff] %vm1577_vm1, %v3701_v15  ;;  %v3703_v50 = vpop.f32.mrb[54].mxu1 }
 0x675   :  { %3822 = vst [vmem:[%s7257_s6 + $0x1b0] sm:$0xff] %v3703_v50  ;;  %v3705_v43 = vpop.f32.mrb[55].mxu1 }
 0x676   :  { %3823 = vst.msk [vmem:[%s7257_s6 + $0x1b8] sm:$0xff] %vm1577_vm1, %v3705_v43 }
 0x67a   :  { %v3709_v59 = vpop.f32.mrb[56].mxu1 }
 0x67b   :  { %3824 = vst [vmem:[%s7257_s6 + $0x1c0] sm:$0xff] %v3709_v59  ;;  %v3711_v18 = vpop.f32.mrb[57].mxu1 }
 0x67c   :  { %3825 = vst.msk [vmem:[%s7257_s6 + $0x1c8] sm:$0xff] %vm1577_vm1, %v3711_v18  ;;  %v3713_v47 = vpop.f32.mrb[58].mxu1 }
 0x67d   :  { %3826 = vst [vmem:[%s7257_s6 + $0x1d0] sm:$0xff] %v3713_v47  ;;  %v3715_v53 = vpop.f32.mrb[59].mxu1 }
 0x67e   :  { %3827 = vst.msk [vmem:[%s7257_s6 + $0x1d8] sm:$0xff] %vm1577_vm1, %v3715_v53 }
 0x682   :  { %v3719_v33 = vpop.f32.mrb[60].mxu1 }
 0x683   :  { %3828 = vst [vmem:[%s7257_s6 + $0x1e0] sm:$0xff] %v3719_v33  ;;  %v3721_v34 = vpop.f32.mrb[61].mxu1 }
 0x684   :  { %3829 = vst.msk [vmem:[%s7257_s6 + $0x1e8] sm:$0xff] %vm1577_vm1, %v3721_v34  ;;  %v3723_v6 = vpop.f32.mrb[62].mxu1 }
 0x685   :  { %3830 = vst [vmem:[%s7257_s6 + $0x1f0] sm:$0xff] %v3723_v6  ;;  %v3725_v63 = vpop.f32.mrb[63].mxu1 }
 0x686   :  { %3831 = vst.msk [vmem:[%s7257_s6 + $0x1f8] sm:$0xff] %vm1577_vm1, %v3725_v63 }
 0x68a   :  { %v3729_v54 = vpop.f32.mrb[64].mxu1 }
 0x68b   :  { %3832 = vst [vmem:[%s7257_s6 + $0x200] sm:$0xff] %v3729_v54  ;;  %v3731_v31 = vpop.f32.mrb[65].mxu1 }
 0x68c   :  { %3833 = vst.msk [vmem:[%s7257_s6 + $0x208] sm:$0xff] %vm1577_vm1, %v3731_v31  ;;  %v3733_v57 = vpop.f32.mrb[66].mxu1 }
 0x68d   :  { %3834 = vst [vmem:[%s7257_s6 + $0x210] sm:$0xff] %v3733_v57  ;;  %v3735_v19 = vpop.f32.mrb[67].mxu1 }
 0x68e   :  { %3835 = vst.msk [vmem:[%s7257_s6 + $0x218] sm:$0xff] %vm1577_vm1, %v3735_v19 }
 0x692   :  { %v3739_v55 = vpop.f32.mrb[68].mxu1 }
 0x693   :  { %3836 = vst [vmem:[%s7257_s6 + $0x220] sm:$0xff] %v3739_v55  ;;  %v3741_v60 = vpop.f32.mrb[69].mxu1 }
 0x694   :  { %3837 = vst.msk [vmem:[%s7257_s6 + $0x228] sm:$0xff] %vm1577_vm1, %v3741_v60  ;;  %v3743_v1 = vpop.f32.mrb[70].mxu1 }
 0x695   :  { %3838 = vst [vmem:[%s7257_s6 + $0x230] sm:$0xff] %v3743_v1  ;;  %v3745_v51 = vpop.f32.mrb[71].mxu1 }
 0x696   :  { %3839 = vst.msk [vmem:[%s7257_s6 + $0x238] sm:$0xff] %vm1577_vm1, %v3745_v51 }
 0x69a   :  { %v3749_v17 = vpop.f32.mrb[72].mxu1 }
 0x69b   :  { %3840 = vst [vmem:[%s7257_s6 + $0x240] sm:$0xff] %v3749_v17  ;;  %v3751_v62 = vpop.f32.mrb[73].mxu1 }
 0x69c   :  { %3841 = vst.msk [vmem:[%s7257_s6 + $0x248] sm:$0xff] %vm1577_vm1, %v3751_v62  ;;  %v3753_v23 = vpop.f32.mrb[74].mxu1 }
 0x69d   :  { %3842 = vst [vmem:[%s7257_s6 + $0x250] sm:$0xff] %v3753_v23  ;;  %v3755_v21 = vpop.f32.mrb[75].mxu1 }
 0x69e   :  { %3843 = vst.msk [vmem:[%s7257_s6 + $0x258] sm:$0xff] %vm1577_vm1, %v3755_v21 }
 0x6a2   :  { %v3759_v46 = vpop.f32.mrb[76].mxu1 }
 0x6a3   :  { %3844 = vst [vmem:[%s7257_s6 + $0x260] sm:$0xff] %v3759_v46  ;;  %v3761_v11 = vpop.f32.mrb[77].mxu1 }
 0x6a4   :  { %3845 = vst.msk [vmem:[%s7257_s6 + $0x268] sm:$0xff] %vm1577_vm1, %v3761_v11  ;;  %v3763_v5 = vpop.f32.mrb[78].mxu1 }
 0x6a5   :  { %3846 = vst [vmem:[%s7257_s6 + $0x270] sm:$0xff] %v3763_v5  ;;  %v3765_v58 = vpop.f32.mrb[79].mxu1 }
 0x6a6   :  { %3847 = vst.msk [vmem:[%s7257_s6 + $0x278] sm:$0xff] %vm1577_vm1, %v3765_v58 }
 0x6a7   :  { %3852 = vsyncmov [#allocation3] }
 0x6aa   :  { %s3853_s29 = vpop.sfrf %3852 }
 0x6ab   :  { %p3972_p0 = scmp.ne.s32.totalorder %s3853_s29, 0 }
 0x6ad   :  { %3857 = shalt.err (%p3972_p0)  }

</bundles_post_ra>
